<compile_context>
chip_gen: v5e
topology: v5e:2x2
jax: 0.10.0
libtpu: 0.0.40
codegen_flags: <defaults>
</compile_context>

<pallas_src>
import functools

import jax
import jax.numpy as jnp
from jax import lax
from jax.experimental import pallas as pl
from jax.experimental.pallas import tpu as pltpu


def _round_up(a, m):
    return (a + m - 1) // m * m


def _lstm_kernel(x_ref, wih_ref, whh_ref, b_ref, wfc_ref, bfc_ref, out_ref,
                 proj_ref, act_ref, *, num_layers, seq_len, h_pad, k_pad):
    """One grid step = one (batch tile, layer) pair.

    x_ref    : (S, Bt, K_pad)   time-major padded input (f32), resident across layers
    wih_ref  : (1, K_pad, 4H)   this layer's input->gates weight (matmul dtype)
    whh_ref  : (1, H_pad, 4H)   this layer's recurrent weight (matmul dtype)
    b_ref    : (1, 1, 4H)       combined bias b_ih + b_hh (f32)
    wfc_ref  : (H_pad, O_pad)   final Linear weight (matmul dtype)
    bfc_ref  : (1, O_pad)       final Linear bias (f32)
    out_ref  : (Bt, O_pad)      output block (written only on the last layer)
    proj_ref : (S, Bt, 4H)      VMEM scratch: hoisted input projection (+bias)
    act_ref  : (S, Bt, H_pad)   VMEM scratch: this layer's hidden sequence
    """
    layer = pl.program_id(1)
    S = seq_len
    H = h_pad
    G = 4 * H
    Bt = act_ref.shape[1]
    f32 = jnp.float32
    mm_dtype = wih_ref.dtype
    bias = b_ref[0]                                         # (1, G) f32

    # ---- Hoisted, batched input projection for this layer -> proj_ref ----
    @pl.when(layer == 0)
    def _():
        x2d = x_ref[...].reshape(S * Bt, k_pad).astype(mm_dtype)
        p = jnp.dot(x2d, wih_ref[0], preferred_element_type=f32) + bias
        proj_ref[...] = p.reshape(S, Bt, G)

    @pl.when(layer > 0)
    def _():
        a2d = act_ref[...].reshape(S * Bt, H).astype(mm_dtype)
        p = jnp.dot(a2d, wih_ref[0, :H, :], preferred_element_type=f32) + bias
        proj_ref[...] = p.reshape(S, Bt, G)

    w_hh = whh_ref[0]                                       # (H, G)

    # ---- t == 0 peeled: h_{-1} = c_{-1} = 0 -> no recurrent dot, no forget term ----
    g0 = proj_ref[0]                                        # (Bt, G) f32
    i0 = jax.nn.sigmoid(g0[:, 0 * H:1 * H])
    gg0 = jnp.tanh(g0[:, 2 * H:3 * H])
    o0 = jax.nn.sigmoid(g0[:, 3 * H:4 * H])
    c = i0 * gg0
    h = o0 * jnp.tanh(c)
    act_ref[0] = h

    # ---- t >= 1: one (Bt,H)@(H,4H) dot + gate math per step ----
    def step(t, carry):
        h, c = carry
        gates = proj_ref[t] + jnp.dot(h.astype(mm_dtype), w_hh,
                                      preferred_element_type=f32)
        i_g = jax.nn.sigmoid(gates[:, 0 * H:1 * H])
        f_g = jax.nn.sigmoid(gates[:, 1 * H:2 * H])
        g_g = jnp.tanh(gates[:, 2 * H:3 * H])
        o_g = jax.nn.sigmoid(gates[:, 3 * H:4 * H])
        c = f_g * c + i_g * g_g
        h = o_g * jnp.tanh(c)
        act_ref[t] = h
        return (h, c)

    unroll = True if S <= 16 else 8
    h, c = lax.fori_loop(1, S, step, (h, c), unroll=unroll)

    # ---- Final Linear on the last timestep of the top layer ----
    @pl.when(layer == num_layers - 1)
    def _():
        out_ref[...] = (jnp.dot(h.astype(mm_dtype), wfc_ref[...],
                                preferred_element_type=f32)
                        + bfc_ref[...]).astype(out_ref.dtype)


def lstm_forward(x, params, *, num_layers, hidden_dim, output_dim,
                 matmul_dtype=jnp.bfloat16, batch_tile=None):
    """x: (B, S, D) float32 -> (B, output_dim) float32."""
    B, S, D = x.shape
    H = hidden_dim
    O = output_dim

    H_pad = _round_up(H, 128)
    B_pad = _round_up(B, 8)
    K_pad = max(_round_up(D, 128), H_pad)
    O_pad = _round_up(O, 128)
    G = 4 * H_pad
    Bt = batch_tile if batch_tile is not None else B_pad
    assert Bt % 8 == 0 and B_pad % Bt == 0
    n_bt = B_pad // Bt

    # ---- pack / pad weights (per-gate column padding preserves i,f,g,o layout) ----
    def pad_gate_cols(w, rows_pad):
        # w: (K, 4H) -> (rows_pad, 4*H_pad)
        K = w.shape[0]
        chunks = [jnp.pad(w[:, g * H:(g + 1) * H],
                          ((0, rows_pad - K), (0, H_pad - H))) for g in range(4)]
        return jnp.concatenate(chunks, axis=1)

    wih_layers = [pad_gate_cols(params["wih0"], K_pad)]
    for i in range(num_layers - 1):
        wih_layers.append(pad_gate_cols(params["wih_rest"][i], K_pad))
    wih = jnp.stack(wih_layers).astype(matmul_dtype)                 # (L, K_pad, G)
    whh = jnp.stack([pad_gate_cols(params["whh"][i], H_pad)
                     for i in range(num_layers)]).astype(matmul_dtype)  # (L, H_pad, G)
    b = jnp.stack([jnp.concatenate(
            [jnp.pad(params["b"][i, g * H:(g + 1) * H], (0, H_pad - H))
             for g in range(4)])
         for i in range(num_layers)])[:, None, :]                    # (L, 1, G) f32
    wfc = jnp.pad(params["wfc"],
                  ((0, H_pad - H), (0, O_pad - O))).astype(matmul_dtype)  # (H_pad, O_pad)
    bfc = jnp.pad(params["bfc"], ((0, 0), (0, O_pad - O)))           # (1, O_pad) f32

    # Time-major, tile-padded input: (S, B_pad, K_pad).
    x_tm = jnp.pad(jnp.transpose(x, (1, 0, 2)),
                   ((0, 0), (0, B_pad - B), (0, K_pad - D)))

    kernel = functools.partial(_lstm_kernel, num_layers=num_layers, seq_len=S,
                               h_pad=H_pad, k_pad=K_pad)

    # VMEM footprint estimate (double-buffered inputs/outputs + scratch).
    mm_bytes = jnp.dtype(matmul_dtype).itemsize
    est = (2 * S * Bt * K_pad * 4 + 2 * K_pad * G * mm_bytes + 2 * H_pad * G * mm_bytes
           + 2 * G * 4 + 2 * H_pad * O_pad * mm_bytes + 2 * O_pad * 4
           + 2 * Bt * O_pad * 4 + S * Bt * G * 4 + S * Bt * H_pad * 4)
    vmem_limit = int(min(max(2 * est, 32 * 1024 * 1024), 64 * 1024 * 1024))

    out_pad = pl.pallas_call(
        kernel,
        out_shape=jax.ShapeDtypeStruct((B_pad, O_pad), jnp.float32),
        grid_spec=pltpu.PrefetchScalarGridSpec(
            num_scalar_prefetch=0,
            grid=(n_bt, num_layers),
            in_specs=[
                pl.BlockSpec((S, Bt, K_pad), lambda bt, l: (0, bt, 0)),   # x (time-major)
                pl.BlockSpec((1, K_pad, G), lambda bt, l: (l, 0, 0)),     # W_ih (per layer)
                pl.BlockSpec((1, H_pad, G), lambda bt, l: (l, 0, 0)),     # W_hh (per layer)
                pl.BlockSpec((1, 1, G), lambda bt, l: (l, 0, 0)),         # bias (per layer)
                pl.BlockSpec((H_pad, O_pad), lambda bt, l: (0, 0)),       # FC weight
                pl.BlockSpec((1, O_pad), lambda bt, l: (0, 0)),           # FC bias
            ],
            out_specs=pl.BlockSpec((Bt, O_pad), lambda bt, l: (bt, 0)),
            scratch_shapes=[pltpu.VMEM((S, Bt, G), jnp.float32),          # proj
                            pltpu.VMEM((S, Bt, H_pad), jnp.float32)],     # activations
        ),
        compiler_params=pltpu.CompilerParams(
            dimension_semantics=("parallel", "arbitrary"),
            vmem_limit_bytes=vmem_limit),
    )(x_tm, wih, whh, b, wfc, bfc)

    return out_pad[:B, :O]


def lstm_reference(x, params, *, num_layers, hidden_dim):
    """Pure-JAX reference with PyTorch LSTM semantics (gate order i,f,g,o)."""
    B, S, D = x.shape
    H = hidden_dim
    h = jnp.zeros((num_layers, B, H), jnp.float32)
    c = jnp.zeros((num_layers, B, H), jnp.float32)
    for t in range(S):
        inp = x[:, t, :]
        for l in range(num_layers):
            w_ih = params["wih0"] if l == 0 else params["wih_rest"][l - 1]
            gates = inp @ w_ih + h[l] @ params["whh"][l] + params["b"][l]
            i_g = jax.nn.sigmoid(gates[:, 0 * H:1 * H])
            f_g = jax.nn.sigmoid(gates[:, 1 * H:2 * H])
            g_g = jnp.tanh(gates[:, 2 * H:3 * H])
            o_g = jax.nn.sigmoid(gates[:, 3 * H:4 * H])
            c = c.at[l].set(f_g * c[l] + i_g * g_g)
            h = h.at[l].set(o_g * jnp.tanh(c[l]))
            inp = h[l]
    return h[num_layers - 1] @ params["wfc"] + params["bfc"][0]


def init_params(key, input_dim, hidden_dim, num_layers, output_dim):
    """Deterministic init matching nn.LSTM / nn.Linear parameter shapes
    (weights stored pre-transposed for row-major matmul; b = b_ih + b_hh)."""
    H = hidden_dim
    scale = 1.0 / jnp.sqrt(jnp.float32(H))
    ks = jax.random.split(key, 7)
    u = lambda k, shape: jax.random.uniform(k, shape, jnp.float32, -scale, scale)
    wih0 = u(ks[0], (input_dim, 4 * H))
    wih_rest = u(ks[1], (num_layers - 1, H, 4 * H))
    whh = u(ks[2], (num_layers, H, 4 * H))
    b = u(ks[3], (num_layers, 4 * H)) + u(ks[4], (num_layers, 4 * H))
    wfc = u(ks[5], (H, output_dim))
    bfc = u(ks[6], (1, output_dim))
    return dict(wih0=wih0, wih_rest=wih_rest, whh=whh, b=b, wfc=wfc, bfc=bfc)


if __name__ == "__main__":
    INPUT_DIM, HIDDEN_DIM, NUM_LAYERS, OUTPUT_DIM = 8, 32, 2, 4
    BATCH, SEQ = 4, 8

    key = jax.random.PRNGKey(0)
    k_x, k_p = jax.random.split(key)
    x = jax.random.normal(k_x, (BATCH, SEQ, INPUT_DIM), jnp.float32)
    params = init_params(k_p, INPUT_DIM, HIDDEN_DIM, NUM_LAYERS, OUTPUT_DIM)

    ref = lstm_reference(x, params, num_layers=NUM_LAYERS, hidden_dim=HIDDEN_DIM)

    # f32 matmul path: tight check against the reference.
    out_f32 = lstm_forward(x, params, num_layers=NUM_LAYERS, hidden_dim=HIDDEN_DIM,
                           output_dim=OUTPUT_DIM, matmul_dtype=jnp.float32)
    out_f32 = jax.block_until_ready(out_f32)
    assert out_f32.shape == (BATCH, OUTPUT_DIM)
    assert jnp.allclose(out_f32, ref, atol=1e-4, rtol=1e-4), "f32 kernel mismatch vs reference"

    # Default bf16-weight fast path (MXU-native on v5e/v6e/v7x; f32 accumulation / gates / state).
    out_bf16 = lstm_forward(x, params, num_layers=NUM_LAYERS, hidden_dim=HIDDEN_DIM,
                            output_dim=OUTPUT_DIM)
    out_bf16 = jax.block_until_ready(out_bf16)
    assert out_bf16.shape == (BATCH, OUTPUT_DIM)
    assert jnp.allclose(out_bf16, ref, atol=5e-2), "bf16-matmul kernel too far from reference"

    print("KERNEL_OK")
</pallas_src>

<mosaic_0001>
module attributes {stable_mosaic.version = 11 : i64} {
  func.func @_lstm_kernel(%arg0: i32, %arg1: i32, %arg2: memref<8x8x128xf32, #tpu.memory_space<vmem>>, %arg3: memref<1x128x512xf32, #tpu.memory_space<vmem>>, %arg4: memref<1x128x512xf32, #tpu.memory_space<vmem>>, %arg5: memref<1x1x512xf32, #tpu.memory_space<vmem>>, %arg6: memref<128x128xf32, #tpu.memory_space<vmem>>, %arg7: memref<1x128xf32, #tpu.memory_space<vmem>>, %arg8: memref<8x128xf32, #tpu.memory_space<vmem>>, %arg9: memref<8x8x512xf32, #tpu.memory_space<vmem>>, %arg10: memref<8x8x128xf32, #tpu.memory_space<vmem>>) attributes {dimension_semantics = [#tpu.dimension_semantics<parallel>, #tpu.dimension_semantics<arbitrary>], iteration_bounds = array<i64: 1, 2>, scalar_prefetch = 0 : i64, scratch_operands = 2 : i64, tpu.core_type = #tpu.core_type<tc>, window_params = [{transform_indices = @transform_0, window_bounds = array<i64: 8, 8, 128>}, {transform_indices = @transform_1, window_bounds = array<i64: 1, 128, 512>}, {transform_indices = @transform_2, window_bounds = array<i64: 1, 128, 512>}, {transform_indices = @transform_3, window_bounds = array<i64: 1, 1, 512>}, {pipeline_mode = #tpu.pipeline_mode<synchronous>, transform_indices = @transform_4, window_bounds = array<i64: 128, 128>}, {pipeline_mode = #tpu.pipeline_mode<synchronous>, transform_indices = @transform_5, window_bounds = array<i64: 1, 128>}, {transform_indices = @transform_6, window_bounds = array<i64: 8, 128>}]} {
    %c0 = arith.constant 0 : index
    %c0_0 = arith.constant 0 : index
    %c0_1 = arith.constant 0 : index
    %0 = vector.load %arg5[%c0, %c0_0, %c0_1] : memref<1x1x512xf32, #tpu.memory_space<vmem>>, vector<1x1x512xf32>
    %1 = vector.shape_cast %0 : vector<1x1x512xf32> to vector<1x512xf32>
    %c0_i32 = arith.constant 0 : i32
    %2 = arith.cmpi eq, %arg1, %c0_i32 : i32
    %3 = arith.extui %2 : i1 to i32
    %c0_i32_2 = arith.constant 0 : i32
    %4 = arith.cmpi ne, %3, %c0_i32_2 : i32
    scf.if %4 {
      %c0_74 = arith.constant 0 : index
      %c0_75 = arith.constant 0 : index
      %c0_76 = arith.constant 0 : index
      %273 = vector.load %arg2[%c0_74, %c0_75, %c0_76] : memref<8x8x128xf32, #tpu.memory_space<vmem>>, vector<8x8x128xf32>
      %274 = vector.shape_cast %273 : vector<8x8x128xf32> to vector<64x128xf32>
      %c0_77 = arith.constant 0 : index
      %c0_78 = arith.constant 0 : index
      %c0_79 = arith.constant 0 : index
      %275 = vector.load %arg3[%c0_77, %c0_78, %c0_79] : memref<1x128x512xf32, #tpu.memory_space<vmem>>, vector<1x128x512xf32>
      %276 = vector.shape_cast %275 : vector<1x128x512xf32> to vector<128x512xf32>
      %cst_80 = arith.constant dense<0.000000e+00> : vector<64x512xf32>
      %277 = tpu.matmul %274, %276, %cst_80 {dimension_numbers = #tpu.dot_dimension_numbers<[1], [0], [0], [1], [0, 0, 1, 1], [], []>} : vector<64x128xf32>, vector<128x512xf32>, vector<64x512xf32> -> vector<64x512xf32>
      %278 = vector.broadcast %1 : vector<1x512xf32> to vector<64x512xf32>
      %279 = arith.addf %277, %278 : vector<64x512xf32>
      %280 = vector.shape_cast %279 : vector<64x512xf32> to vector<8x8x512xf32>
      %c0_81 = arith.constant 0 : index
      %c0_82 = arith.constant 0 : index
      %c0_83 = arith.constant 0 : index
      %281 = vector.load %arg9[%c0_81, %c0_82, %c0_83] : memref<8x8x512xf32, #tpu.memory_space<vmem>>, vector<8x8x512xf32>
      tpu.vector_store %arg9[%c0_81, %c0_82, %c0_83], %280 {strides = array<i32>} : memref<8x8x512xf32, #tpu.memory_space<vmem>>, vector<8x8x512xf32>,
    } else {
    }
    %c0_i32_3 = arith.constant 0 : i32
    %5 = arith.cmpi sgt, %arg1, %c0_i32_3 : i32
    %6 = arith.extui %5 : i1 to i32
    %c0_i32_4 = arith.constant 0 : i32
    %7 = arith.cmpi ne, %6, %c0_i32_4 : i32
    scf.if %7 {
      %c0_74 = arith.constant 0 : index
      %c0_75 = arith.constant 0 : index
      %c0_76 = arith.constant 0 : index
      %273 = vector.load %arg10[%c0_74, %c0_75, %c0_76] : memref<8x8x128xf32, #tpu.memory_space<vmem>>, vector<8x8x128xf32>
      %274 = vector.shape_cast %273 : vector<8x8x128xf32> to vector<64x128xf32>
      %c0_77 = arith.constant 0 : index
      %c0_78 = arith.constant 0 : index
      %c0_79 = arith.constant 0 : index
      %275 = vector.load %arg3[%c0_77, %c0_78, %c0_79] : memref<1x128x512xf32, #tpu.memory_space<vmem>>, vector<1x128x512xf32>
      %276 = vector.shape_cast %275 : vector<1x128x512xf32> to vector<128x512xf32>
      %cst_80 = arith.constant dense<0.000000e+00> : vector<64x512xf32>
      %277 = tpu.matmul %274, %276, %cst_80 {dimension_numbers = #tpu.dot_dimension_numbers<[1], [0], [0], [1], [0, 0, 1, 1], [], []>} : vector<64x128xf32>, vector<128x512xf32>, vector<64x512xf32> -> vector<64x512xf32>
      %278 = vector.broadcast %1 : vector<1x512xf32> to vector<64x512xf32>
      %279 = arith.addf %277, %278 : vector<64x512xf32>
      %280 = vector.shape_cast %279 : vector<64x512xf32> to vector<8x8x512xf32>
      %c0_81 = arith.constant 0 : index
      %c0_82 = arith.constant 0 : index
      %c0_83 = arith.constant 0 : index
      %281 = vector.load %arg9[%c0_81, %c0_82, %c0_83] : memref<8x8x512xf32, #tpu.memory_space<vmem>>, vector<8x8x512xf32>
      tpu.vector_store %arg9[%c0_81, %c0_82, %c0_83], %280 {strides = array<i32>} : memref<8x8x512xf32, #tpu.memory_space<vmem>>, vector<8x8x512xf32>,
    } else {
    }
    %c0_5 = arith.constant 0 : index
    %c0_6 = arith.constant 0 : index
    %c0_7 = arith.constant 0 : index
    %8 = vector.load %arg4[%c0_5, %c0_6, %c0_7] : memref<1x128x512xf32, #tpu.memory_space<vmem>>, vector<1x128x512xf32>
    %9 = vector.shape_cast %8 : vector<1x128x512xf32> to vector<128x512xf32>
    %c0_8 = arith.constant 0 : index
    %c0_9 = arith.constant 0 : index
    %c0_10 = arith.constant 0 : index
    %10 = vector.load %arg9[%c0_8, %c0_9, %c0_10] : memref<8x8x512xf32, #tpu.memory_space<vmem>>, vector<1x8x512xf32>
    %11 = vector.shape_cast %10 : vector<1x8x512xf32> to vector<8x512xf32>
    %12 = vector.extract_strided_slice %11 {offsets = [0, 0], sizes = [8, 128], strides = [1, 1]} : vector<8x512xf32> to vector<8x128xf32>
    %13 = arith.negf %12 : vector<8x128xf32>
    %14 = math.exp %13 : vector<8x128xf32>
    %cst = arith.constant 1.000000e+00 : f32
    %15 = vector.broadcast %cst : f32 to vector<8x128xf32>
    %16 = arith.addf %15, %14 : vector<8x128xf32>
    %17 = arith.divf %15, %16 : vector<8x128xf32>
    %18 = vector.extract_strided_slice %11 {offsets = [0, 256], sizes = [8, 128], strides = [1, 1]} : vector<8x512xf32> to vector<8x128xf32>
    %19 = math.tanh %18 : vector<8x128xf32>
    %20 = vector.extract_strided_slice %11 {offsets = [0, 384], sizes = [8, 128], strides = [1, 1]} : vector<8x512xf32> to vector<8x128xf32>
    %21 = arith.negf %20 : vector<8x128xf32>
    %22 = math.exp %21 : vector<8x128xf32>
    %cst_11 = arith.constant 1.000000e+00 : f32
    %23 = vector.broadcast %cst_11 : f32 to vector<8x128xf32>
    %24 = arith.addf %23, %22 : vector<8x128xf32>
    %25 = arith.divf %23, %24 : vector<8x128xf32>
    %26 = arith.mulf %17, %19 : vector<8x128xf32>
    %27 = math.tanh %26 : vector<8x128xf32>
    %28 = arith.mulf %25, %27 : vector<8x128xf32>
    %c0_12 = arith.constant 0 : index
    %c0_13 = arith.constant 0 : index
    %c0_14 = arith.constant 0 : index
    %29 = vector.load %arg10[%c0_12, %c0_13, %c0_14] : memref<8x8x128xf32, #tpu.memory_space<vmem>>, vector<1x8x128xf32>
    %30 = vector.shape_cast %29 : vector<1x8x128xf32> to vector<8x128xf32>
    %31 = vector.shape_cast %28 : vector<8x128xf32> to vector<1x8x128xf32>
    tpu.vector_store %arg10[%c0_12, %c0_13, %c0_14], %31 {strides = array<i32>} : memref<8x8x128xf32, #tpu.memory_space<vmem>>, vector<1x8x128xf32>,
    %c1_i32 = arith.constant 1 : i32
    %32 = arith.index_cast %c1_i32 : i32 to index
    %c0_15 = arith.constant 0 : index
    %c0_16 = arith.constant 0 : index
    %33 = vector.load %arg9[%32, %c0_15, %c0_16] : memref<8x8x512xf32, #tpu.memory_space<vmem>>, vector<1x8x512xf32>
    %34 = vector.shape_cast %33 : vector<1x8x512xf32> to vector<8x512xf32>
    %cst_17 = arith.constant dense<0.000000e+00> : vector<8x512xf32>
    %35 = tpu.matmul %28, %9, %cst_17 {dimension_numbers = #tpu.dot_dimension_numbers<[1], [0], [0], [1], [0, 0, 1, 1], [], []>} : vector<8x128xf32>, vector<128x512xf32>, vector<8x512xf32> -> vector<8x512xf32>
    %36 = arith.addf %34, %35 : vector<8x512xf32>
    %37 = vector.extract_strided_slice %36 {offsets = [0, 0], sizes = [8, 128], strides = [1, 1]} : vector<8x512xf32> to vector<8x128xf32>
    %38 = arith.negf %37 : vector<8x128xf32>
    %39 = math.exp %38 : vector<8x128xf32>
    %cst_18 = arith.constant 1.000000e+00 : f32
    %40 = vector.broadcast %cst_18 : f32 to vector<8x128xf32>
    %41 = arith.addf %40, %39 : vector<8x128xf32>
    %42 = arith.divf %40, %41 : vector<8x128xf32>
    %43 = vector.extract_strided_slice %36 {offsets = [0, 128], sizes = [8, 128], strides = [1, 1]} : vector<8x512xf32> to vector<8x128xf32>
    %44 = arith.negf %43 : vector<8x128xf32>
    %45 = math.exp %44 : vector<8x128xf32>
    %cst_19 = arith.constant 1.000000e+00 : f32
    %46 = vector.broadcast %cst_19 : f32 to vector<8x128xf32>
    %47 = arith.addf %46, %45 : vector<8x128xf32>
    %48 = arith.divf %46, %47 : vector<8x128xf32>
    %49 = vector.extract_strided_slice %36 {offsets = [0, 256], sizes = [8, 128], strides = [1, 1]} : vector<8x512xf32> to vector<8x128xf32>
    %50 = math.tanh %49 : vector<8x128xf32>
    %51 = vector.extract_strided_slice %36 {offsets = [0, 384], sizes = [8, 128], strides = [1, 1]} : vector<8x512xf32> to vector<8x128xf32>
    %52 = arith.negf %51 : vector<8x128xf32>
    %53 = math.exp %52 : vector<8x128xf32>
    %cst_20 = arith.constant 1.000000e+00 : f32
    %54 = vector.broadcast %cst_20 : f32 to vector<8x128xf32>
    %55 = arith.addf %54, %53 : vector<8x128xf32>
    %56 = arith.divf %54, %55 : vector<8x128xf32>
    %57 = arith.mulf %48, %26 : vector<8x128xf32>
    %58 = arith.mulf %42, %50 : vector<8x128xf32>
    %59 = arith.addf %57, %58 : vector<8x128xf32>
    %60 = math.tanh %59 : vector<8x128xf32>
    %61 = arith.mulf %56, %60 : vector<8x128xf32>
    %62 = arith.index_cast %c1_i32 : i32 to index
    %c0_21 = arith.constant 0 : index
    %c0_22 = arith.constant 0 : index
    %63 = vector.load %arg10[%62, %c0_21, %c0_22] : memref<8x8x128xf32, #tpu.memory_space<vmem>>, vector<1x8x128xf32>
    %64 = vector.shape_cast %63 : vector<1x8x128xf32> to vector<8x128xf32>
    %65 = vector.shape_cast %61 : vector<8x128xf32> to vector<1x8x128xf32>
    tpu.vector_store %arg10[%62, %c0_21, %c0_22], %65 {strides = array<i32>} : memref<8x8x128xf32, #tpu.memory_space<vmem>>, vector<1x8x128xf32>,
    %c2_i32 = arith.constant 2 : i32
    %66 = arith.index_cast %c2_i32 : i32 to index
    %c0_23 = arith.constant 0 : index
    %c0_24 = arith.constant 0 : index
    %67 = vector.load %arg9[%66, %c0_23, %c0_24] : memref<8x8x512xf32, #tpu.memory_space<vmem>>, vector<1x8x512xf32>
    %68 = vector.shape_cast %67 : vector<1x8x512xf32> to vector<8x512xf32>
    %cst_25 = arith.constant dense<0.000000e+00> : vector<8x512xf32>
    %69 = tpu.matmul %61, %9, %cst_25 {dimension_numbers = #tpu.dot_dimension_numbers<[1], [0], [0], [1], [0, 0, 1, 1], [], []>} : vector<8x128xf32>, vector<128x512xf32>, vector<8x512xf32> -> vector<8x512xf32>
    %70 = arith.addf %68, %69 : vector<8x512xf32>
    %71 = vector.extract_strided_slice %70 {offsets = [0, 0], sizes = [8, 128], strides = [1, 1]} : vector<8x512xf32> to vector<8x128xf32>
    %72 = arith.negf %71 : vector<8x128xf32>
    %73 = math.exp %72 : vector<8x128xf32>
    %cst_26 = arith.constant 1.000000e+00 : f32
    %74 = vector.broadcast %cst_26 : f32 to vector<8x128xf32>
    %75 = arith.addf %74, %73 : vector<8x128xf32>
    %76 = arith.divf %74, %75 : vector<8x128xf32>
    %77 = vector.extract_strided_slice %70 {offsets = [0, 128], sizes = [8, 128], strides = [1, 1]} : vector<8x512xf32> to vector<8x128xf32>
    %78 = arith.negf %77 : vector<8x128xf32>
    %79 = math.exp %78 : vector<8x128xf32>
    %cst_27 = arith.constant 1.000000e+00 : f32
    %80 = vector.broadcast %cst_27 : f32 to vector<8x128xf32>
    %81 = arith.addf %80, %79 : vector<8x128xf32>
    %82 = arith.divf %80, %81 : vector<8x128xf32>
    %83 = vector.extract_strided_slice %70 {offsets = [0, 256], sizes = [8, 128], strides = [1, 1]} : vector<8x512xf32> to vector<8x128xf32>
    %84 = math.tanh %83 : vector<8x128xf32>
    %85 = vector.extract_strided_slice %70 {offsets = [0, 384], sizes = [8, 128], strides = [1, 1]} : vector<8x512xf32> to vector<8x128xf32>
    %86 = arith.negf %85 : vector<8x128xf32>
    %87 = math.exp %86 : vector<8x128xf32>
    %cst_28 = arith.constant 1.000000e+00 : f32
    %88 = vector.broadcast %cst_28 : f32 to vector<8x128xf32>
    %89 = arith.addf %88, %87 : vector<8x128xf32>
    %90 = arith.divf %88, %89 : vector<8x128xf32>
    %91 = arith.mulf %82, %59 : vector<8x128xf32>
    %92 = arith.mulf %76, %84 : vector<8x128xf32>
    %93 = arith.addf %91, %92 : vector<8x128xf32>
    %94 = math.tanh %93 : vector<8x128xf32>
    %95 = arith.mulf %90, %94 : vector<8x128xf32>
    %96 = arith.index_cast %c2_i32 : i32 to index
    %c0_29 = arith.constant 0 : index
    %c0_30 = arith.constant 0 : index
    %97 = vector.load %arg10[%96, %c0_29, %c0_30] : memref<8x8x128xf32, #tpu.memory_space<vmem>>, vector<1x8x128xf32>
    %98 = vector.shape_cast %97 : vector<1x8x128xf32> to vector<8x128xf32>
    %99 = vector.shape_cast %95 : vector<8x128xf32> to vector<1x8x128xf32>
    tpu.vector_store %arg10[%96, %c0_29, %c0_30], %99 {strides = array<i32>} : memref<8x8x128xf32, #tpu.memory_space<vmem>>, vector<1x8x128xf32>,
    %c3_i32 = arith.constant 3 : i32
    %100 = arith.index_cast %c3_i32 : i32 to index
    %c0_31 = arith.constant 0 : index
    %c0_32 = arith.constant 0 : index
    %101 = vector.load %arg9[%100, %c0_31, %c0_32] : memref<8x8x512xf32, #tpu.memory_space<vmem>>, vector<1x8x512xf32>
    %102 = vector.shape_cast %101 : vector<1x8x512xf32> to vector<8x512xf32>
    %cst_33 = arith.constant dense<0.000000e+00> : vector<8x512xf32>
    %103 = tpu.matmul %95, %9, %cst_33 {dimension_numbers = #tpu.dot_dimension_numbers<[1], [0], [0], [1], [0, 0, 1, 1], [], []>} : vector<8x128xf32>, vector<128x512xf32>, vector<8x512xf32> -> vector<8x512xf32>
    %104 = arith.addf %102, %103 : vector<8x512xf32>
    %105 = vector.extract_strided_slice %104 {offsets = [0, 0], sizes = [8, 128], strides = [1, 1]} : vector<8x512xf32> to vector<8x128xf32>
    %106 = arith.negf %105 : vector<8x128xf32>
    %107 = math.exp %106 : vector<8x128xf32>
    %cst_34 = arith.constant 1.000000e+00 : f32
    %108 = vector.broadcast %cst_34 : f32 to vector<8x128xf32>
    %109 = arith.addf %108, %107 : vector<8x128xf32>
    %110 = arith.divf %108, %109 : vector<8x128xf32>
    %111 = vector.extract_strided_slice %104 {offsets = [0, 128], sizes = [8, 128], strides = [1, 1]} : vector<8x512xf32> to vector<8x128xf32>
    %112 = arith.negf %111 : vector<8x128xf32>
    %113 = math.exp %112 : vector<8x128xf32>
    %cst_35 = arith.constant 1.000000e+00 : f32
    %114 = vector.broadcast %cst_35 : f32 to vector<8x128xf32>
    %115 = arith.addf %114, %113 : vector<8x128xf32>
    %116 = arith.divf %114, %115 : vector<8x128xf32>
    %117 = vector.extract_strided_slice %104 {offsets = [0, 256], sizes = [8, 128], strides = [1, 1]} : vector<8x512xf32> to vector<8x128xf32>
    %118 = math.tanh %117 : vector<8x128xf32>
    %119 = vector.extract_strided_slice %104 {offsets = [0, 384], sizes = [8, 128], strides = [1, 1]} : vector<8x512xf32> to vector<8x128xf32>
    %120 = arith.negf %119 : vector<8x128xf32>
    %121 = math.exp %120 : vector<8x128xf32>
    %cst_36 = arith.constant 1.000000e+00 : f32
    %122 = vector.broadcast %cst_36 : f32 to vector<8x128xf32>
    %123 = arith.addf %122, %121 : vector<8x128xf32>
    %124 = arith.divf %122, %123 : vector<8x128xf32>
    %125 = arith.mulf %116, %93 : vector<8x128xf32>
    %126 = arith.mulf %110, %118 : vector<8x128xf32>
    %127 = arith.addf %125, %126 : vector<8x128xf32>
    %128 = math.tanh %127 : vector<8x128xf32>
    %129 = arith.mulf %124, %128 : vector<8x128xf32>
    %130 = arith.index_cast %c3_i32 : i32 to index
    %c0_37 = arith.constant 0 : index
    %c0_38 = arith.constant 0 : index
    %131 = vector.load %arg10[%130, %c0_37, %c0_38] : memref<8x8x128xf32, #tpu.memory_space<vmem>>, vector<1x8x128xf32>
    %132 = vector.shape_cast %131 : vector<1x8x128xf32> to vector<8x128xf32>
    %133 = vector.shape_cast %129 : vector<8x128xf32> to vector<1x8x128xf32>
    tpu.vector_store %arg10[%130, %c0_37, %c0_38], %133 {strides = array<i32>} : memref<8x8x128xf32, #tpu.memory_space<vmem>>, vector<1x8x128xf32>,
    %c4_i32 = arith.constant 4 : i32
    %134 = arith.index_cast %c4_i32 : i32 to index
    %c0_39 = arith.constant 0 : index
    %c0_40 = arith.constant 0 : index
    %135 = vector.load %arg9[%134, %c0_39, %c0_40] : memref<8x8x512xf32, #tpu.memory_space<vmem>>, vector<1x8x512xf32>
    %136 = vector.shape_cast %135 : vector<1x8x512xf32> to vector<8x512xf32>
    %cst_41 = arith.constant dense<0.000000e+00> : vector<8x512xf32>
    %137 = tpu.matmul %129, %9, %cst_41 {dimension_numbers = #tpu.dot_dimension_numbers<[1], [0], [0], [1], [0, 0, 1, 1], [], []>} : vector<8x128xf32>, vector<128x512xf32>, vector<8x512xf32> -> vector<8x512xf32>
    %138 = arith.addf %136, %137 : vector<8x512xf32>
    %139 = vector.extract_strided_slice %138 {offsets = [0, 0], sizes = [8, 128], strides = [1, 1]} : vector<8x512xf32> to vector<8x128xf32>
    %140 = arith.negf %139 : vector<8x128xf32>
    %141 = math.exp %140 : vector<8x128xf32>
    %cst_42 = arith.constant 1.000000e+00 : f32
    %142 = vector.broadcast %cst_42 : f32 to vector<8x128xf32>
    %143 = arith.addf %142, %141 : vector<8x128xf32>
    %144 = arith.divf %142, %143 : vector<8x128xf32>
    %145 = vector.extract_strided_slice %138 {offsets = [0, 128], sizes = [8, 128], strides = [1, 1]} : vector<8x512xf32> to vector<8x128xf32>
    %146 = arith.negf %145 : vector<8x128xf32>
    %147 = math.exp %146 : vector<8x128xf32>
    %cst_43 = arith.constant 1.000000e+00 : f32
    %148 = vector.broadcast %cst_43 : f32 to vector<8x128xf32>
    %149 = arith.addf %148, %147 : vector<8x128xf32>
    %150 = arith.divf %148, %149 : vector<8x128xf32>
    %151 = vector.extract_strided_slice %138 {offsets = [0, 256], sizes = [8, 128], strides = [1, 1]} : vector<8x512xf32> to vector<8x128xf32>
    %152 = math.tanh %151 : vector<8x128xf32>
    %153 = vector.extract_strided_slice %138 {offsets = [0, 384], sizes = [8, 128], strides = [1, 1]} : vector<8x512xf32> to vector<8x128xf32>
    %154 = arith.negf %153 : vector<8x128xf32>
    %155 = math.exp %154 : vector<8x128xf32>
    %cst_44 = arith.constant 1.000000e+00 : f32
    %156 = vector.broadcast %cst_44 : f32 to vector<8x128xf32>
    %157 = arith.addf %156, %155 : vector<8x128xf32>
    %158 = arith.divf %156, %157 : vector<8x128xf32>
    %159 = arith.mulf %150, %127 : vector<8x128xf32>
    %160 = arith.mulf %144, %152 : vector<8x128xf32>
    %161 = arith.addf %159, %160 : vector<8x128xf32>
    %162 = math.tanh %161 : vector<8x128xf32>
    %163 = arith.mulf %158, %162 : vector<8x128xf32>
    %164 = arith.index_cast %c4_i32 : i32 to index
    %c0_45 = arith.constant 0 : index
    %c0_46 = arith.constant 0 : index
    %165 = vector.load %arg10[%164, %c0_45, %c0_46] : memref<8x8x128xf32, #tpu.memory_space<vmem>>, vector<1x8x128xf32>
    %166 = vector.shape_cast %165 : vector<1x8x128xf32> to vector<8x128xf32>
    %167 = vector.shape_cast %163 : vector<8x128xf32> to vector<1x8x128xf32>
    tpu.vector_store %arg10[%164, %c0_45, %c0_46], %167 {strides = array<i32>} : memref<8x8x128xf32, #tpu.memory_space<vmem>>, vector<1x8x128xf32>,
    %c5_i32 = arith.constant 5 : i32
    %168 = arith.index_cast %c5_i32 : i32 to index
    %c0_47 = arith.constant 0 : index
    %c0_48 = arith.constant 0 : index
    %169 = vector.load %arg9[%168, %c0_47, %c0_48] : memref<8x8x512xf32, #tpu.memory_space<vmem>>, vector<1x8x512xf32>
    %170 = vector.shape_cast %169 : vector<1x8x512xf32> to vector<8x512xf32>
    %cst_49 = arith.constant dense<0.000000e+00> : vector<8x512xf32>
    %171 = tpu.matmul %163, %9, %cst_49 {dimension_numbers = #tpu.dot_dimension_numbers<[1], [0], [0], [1], [0, 0, 1, 1], [], []>} : vector<8x128xf32>, vector<128x512xf32>, vector<8x512xf32> -> vector<8x512xf32>
    %172 = arith.addf %170, %171 : vector<8x512xf32>
    %173 = vector.extract_strided_slice %172 {offsets = [0, 0], sizes = [8, 128], strides = [1, 1]} : vector<8x512xf32> to vector<8x128xf32>
    %174 = arith.negf %173 : vector<8x128xf32>
    %175 = math.exp %174 : vector<8x128xf32>
    %cst_50 = arith.constant 1.000000e+00 : f32
    %176 = vector.broadcast %cst_50 : f32 to vector<8x128xf32>
    %177 = arith.addf %176, %175 : vector<8x128xf32>
    %178 = arith.divf %176, %177 : vector<8x128xf32>
    %179 = vector.extract_strided_slice %172 {offsets = [0, 128], sizes = [8, 128], strides = [1, 1]} : vector<8x512xf32> to vector<8x128xf32>
    %180 = arith.negf %179 : vector<8x128xf32>
    %181 = math.exp %180 : vector<8x128xf32>
    %cst_51 = arith.constant 1.000000e+00 : f32
    %182 = vector.broadcast %cst_51 : f32 to vector<8x128xf32>
    %183 = arith.addf %182, %181 : vector<8x128xf32>
    %184 = arith.divf %182, %183 : vector<8x128xf32>
    %185 = vector.extract_strided_slice %172 {offsets = [0, 256], sizes = [8, 128], strides = [1, 1]} : vector<8x512xf32> to vector<8x128xf32>
    %186 = math.tanh %185 : vector<8x128xf32>
    %187 = vector.extract_strided_slice %172 {offsets = [0, 384], sizes = [8, 128], strides = [1, 1]} : vector<8x512xf32> to vector<8x128xf32>
    %188 = arith.negf %187 : vector<8x128xf32>
    %189 = math.exp %188 : vector<8x128xf32>
    %cst_52 = arith.constant 1.000000e+00 : f32
    %190 = vector.broadcast %cst_52 : f32 to vector<8x128xf32>
    %191 = arith.addf %190, %189 : vector<8x128xf32>
    %192 = arith.divf %190, %191 : vector<8x128xf32>
    %193 = arith.mulf %184, %161 : vector<8x128xf32>
    %194 = arith.mulf %178, %186 : vector<8x128xf32>
    %195 = arith.addf %193, %194 : vector<8x128xf32>
    %196 = math.tanh %195 : vector<8x128xf32>
    %197 = arith.mulf %192, %196 : vector<8x128xf32>
    %198 = arith.index_cast %c5_i32 : i32 to index
    %c0_53 = arith.constant 0 : index
    %c0_54 = arith.constant 0 : index
    %199 = vector.load %arg10[%198, %c0_53, %c0_54] : memref<8x8x128xf32, #tpu.memory_space<vmem>>, vector<1x8x128xf32>
    %200 = vector.shape_cast %199 : vector<1x8x128xf32> to vector<8x128xf32>
    %201 = vector.shape_cast %197 : vector<8x128xf32> to vector<1x8x128xf32>
    tpu.vector_store %arg10[%198, %c0_53, %c0_54], %201 {strides = array<i32>} : memref<8x8x128xf32, #tpu.memory_space<vmem>>, vector<1x8x128xf32>,
    %c6_i32 = arith.constant 6 : i32
    %202 = arith.index_cast %c6_i32 : i32 to index
    %c0_55 = arith.constant 0 : index
    %c0_56 = arith.constant 0 : index
    %203 = vector.load %arg9[%202, %c0_55, %c0_56] : memref<8x8x512xf32, #tpu.memory_space<vmem>>, vector<1x8x512xf32>
    %204 = vector.shape_cast %203 : vector<1x8x512xf32> to vector<8x512xf32>
    %cst_57 = arith.constant dense<0.000000e+00> : vector<8x512xf32>
    %205 = tpu.matmul %197, %9, %cst_57 {dimension_numbers = #tpu.dot_dimension_numbers<[1], [0], [0], [1], [0, 0, 1, 1], [], []>} : vector<8x128xf32>, vector<128x512xf32>, vector<8x512xf32> -> vector<8x512xf32>
    %206 = arith.addf %204, %205 : vector<8x512xf32>
    %207 = vector.extract_strided_slice %206 {offsets = [0, 0], sizes = [8, 128], strides = [1, 1]} : vector<8x512xf32> to vector<8x128xf32>
    %208 = arith.negf %207 : vector<8x128xf32>
    %209 = math.exp %208 : vector<8x128xf32>
    %cst_58 = arith.constant 1.000000e+00 : f32
    %210 = vector.broadcast %cst_58 : f32 to vector<8x128xf32>
    %211 = arith.addf %210, %209 : vector<8x128xf32>
    %212 = arith.divf %210, %211 : vector<8x128xf32>
    %213 = vector.extract_strided_slice %206 {offsets = [0, 128], sizes = [8, 128], strides = [1, 1]} : vector<8x512xf32> to vector<8x128xf32>
    %214 = arith.negf %213 : vector<8x128xf32>
    %215 = math.exp %214 : vector<8x128xf32>
    %cst_59 = arith.constant 1.000000e+00 : f32
    %216 = vector.broadcast %cst_59 : f32 to vector<8x128xf32>
    %217 = arith.addf %216, %215 : vector<8x128xf32>
    %218 = arith.divf %216, %217 : vector<8x128xf32>
    %219 = vector.extract_strided_slice %206 {offsets = [0, 256], sizes = [8, 128], strides = [1, 1]} : vector<8x512xf32> to vector<8x128xf32>
    %220 = math.tanh %219 : vector<8x128xf32>
    %221 = vector.extract_strided_slice %206 {offsets = [0, 384], sizes = [8, 128], strides = [1, 1]} : vector<8x512xf32> to vector<8x128xf32>
    %222 = arith.negf %221 : vector<8x128xf32>
    %223 = math.exp %222 : vector<8x128xf32>
    %cst_60 = arith.constant 1.000000e+00 : f32
    %224 = vector.broadcast %cst_60 : f32 to vector<8x128xf32>
    %225 = arith.addf %224, %223 : vector<8x128xf32>
    %226 = arith.divf %224, %225 : vector<8x128xf32>
    %227 = arith.mulf %218, %195 : vector<8x128xf32>
    %228 = arith.mulf %212, %220 : vector<8x128xf32>
    %229 = arith.addf %227, %228 : vector<8x128xf32>
    %230 = math.tanh %229 : vector<8x128xf32>
    %231 = arith.mulf %226, %230 : vector<8x128xf32>
    %232 = arith.index_cast %c6_i32 : i32 to index
    %c0_61 = arith.constant 0 : index
    %c0_62 = arith.constant 0 : index
    %233 = vector.load %arg10[%232, %c0_61, %c0_62] : memref<8x8x128xf32, #tpu.memory_space<vmem>>, vector<1x8x128xf32>
    %234 = vector.shape_cast %233 : vector<1x8x128xf32> to vector<8x128xf32>
    %235 = vector.shape_cast %231 : vector<8x128xf32> to vector<1x8x128xf32>
    tpu.vector_store %arg10[%232, %c0_61, %c0_62], %235 {strides = array<i32>} : memref<8x8x128xf32, #tpu.memory_space<vmem>>, vector<1x8x128xf32>,
    %c7_i32 = arith.constant 7 : i32
    %236 = arith.index_cast %c7_i32 : i32 to index
    %c0_63 = arith.constant 0 : index
    %c0_64 = arith.constant 0 : index
    %237 = vector.load %arg9[%236, %c0_63, %c0_64] : memref<8x8x512xf32, #tpu.memory_space<vmem>>, vector<1x8x512xf32>
    %238 = vector.shape_cast %237 : vector<1x8x512xf32> to vector<8x512xf32>
    %cst_65 = arith.constant dense<0.000000e+00> : vector<8x512xf32>
    %239 = tpu.matmul %231, %9, %cst_65 {dimension_numbers = #tpu.dot_dimension_numbers<[1], [0], [0], [1], [0, 0, 1, 1], [], []>} : vector<8x128xf32>, vector<128x512xf32>, vector<8x512xf32> -> vector<8x512xf32>
    %240 = arith.addf %238, %239 : vector<8x512xf32>
    %241 = vector.extract_strided_slice %240 {offsets = [0, 0], sizes = [8, 128], strides = [1, 1]} : vector<8x512xf32> to vector<8x128xf32>
    %242 = arith.negf %241 : vector<8x128xf32>
    %243 = math.exp %242 : vector<8x128xf32>
    %cst_66 = arith.constant 1.000000e+00 : f32
    %244 = vector.broadcast %cst_66 : f32 to vector<8x128xf32>
    %245 = arith.addf %244, %243 : vector<8x128xf32>
    %246 = arith.divf %244, %245 : vector<8x128xf32>
    %247 = vector.extract_strided_slice %240 {offsets = [0, 128], sizes = [8, 128], strides = [1, 1]} : vector<8x512xf32> to vector<8x128xf32>
    %248 = arith.negf %247 : vector<8x128xf32>
    %249 = math.exp %248 : vector<8x128xf32>
    %cst_67 = arith.constant 1.000000e+00 : f32
    %250 = vector.broadcast %cst_67 : f32 to vector<8x128xf32>
    %251 = arith.addf %250, %249 : vector<8x128xf32>
    %252 = arith.divf %250, %251 : vector<8x128xf32>
    %253 = vector.extract_strided_slice %240 {offsets = [0, 256], sizes = [8, 128], strides = [1, 1]} : vector<8x512xf32> to vector<8x128xf32>
    %254 = math.tanh %253 : vector<8x128xf32>
    %255 = vector.extract_strided_slice %240 {offsets = [0, 384], sizes = [8, 128], strides = [1, 1]} : vector<8x512xf32> to vector<8x128xf32>
    %256 = arith.negf %255 : vector<8x128xf32>
    %257 = math.exp %256 : vector<8x128xf32>
    %cst_68 = arith.constant 1.000000e+00 : f32
    %258 = vector.broadcast %cst_68 : f32 to vector<8x128xf32>
    %259 = arith.addf %258, %257 : vector<8x128xf32>
    %260 = arith.divf %258, %259 : vector<8x128xf32>
    %261 = arith.mulf %252, %229 : vector<8x128xf32>
    %262 = arith.mulf %246, %254 : vector<8x128xf32>
    %263 = arith.addf %261, %262 : vector<8x128xf32>
    %264 = math.tanh %263 : vector<8x128xf32>
    %265 = arith.mulf %260, %264 : vector<8x128xf32>
    %266 = arith.index_cast %c7_i32 : i32 to index
    %c0_69 = arith.constant 0 : index
    %c0_70 = arith.constant 0 : index
    %267 = vector.load %arg10[%266, %c0_69, %c0_70] : memref<8x8x128xf32, #tpu.memory_space<vmem>>, vector<1x8x128xf32>
    %268 = vector.shape_cast %267 : vector<1x8x128xf32> to vector<8x128xf32>
    %269 = vector.shape_cast %265 : vector<8x128xf32> to vector<1x8x128xf32>
    tpu.vector_store %arg10[%266, %c0_69, %c0_70], %269 {strides = array<i32>} : memref<8x8x128xf32, #tpu.memory_space<vmem>>, vector<1x8x128xf32>,
    %c7_i32_71 = arith.constant 7 : i32
    %c1_i32_72 = arith.constant 1 : i32
    %270 = arith.cmpi eq, %arg1, %c1_i32_72 : i32
    %271 = arith.extui %270 : i1 to i32
    %c0_i32_73 = arith.constant 0 : i32
    %272 = arith.cmpi ne, %271, %c0_i32_73 : i32
    scf.if %272 {
      %c0_74 = arith.constant 0 : index
      %c0_75 = arith.constant 0 : index
      %273 = vector.load %arg6[%c0_74, %c0_75] : memref<128x128xf32, #tpu.memory_space<vmem>>, vector<128x128xf32>
      %cst_76 = arith.constant dense<0.000000e+00> : vector<8x128xf32>
      %274 = tpu.matmul %265, %273, %cst_76 {dimension_numbers = #tpu.dot_dimension_numbers<[1], [0], [0], [1], [0, 0, 1, 1], [], []>} : vector<8x128xf32>, vector<128x128xf32>, vector<8x128xf32> -> vector<8x128xf32>
      %c0_77 = arith.constant 0 : index
      %c0_78 = arith.constant 0 : index
      %275 = vector.load %arg7[%c0_77, %c0_78] : memref<1x128xf32, #tpu.memory_space<vmem>>, vector<1x128xf32>
      %276 = vector.broadcast %275 : vector<1x128xf32> to vector<8x128xf32>
      %277 = arith.addf %274, %276 : vector<8x128xf32>
      %c0_79 = arith.constant 0 : index
      %c0_80 = arith.constant 0 : index
      %278 = vector.load %arg8[%c0_79, %c0_80] : memref<8x128xf32, #tpu.memory_space<vmem>>, vector<8x128xf32>
      tpu.vector_store %arg8[%c0_79, %c0_80], %277 {strides = array<i32>} : memref<8x128xf32, #tpu.memory_space<vmem>>, vector<8x128xf32>,
    } else {
    }
    return
  }
  func.func @transform_0(%arg0: i32, %arg1: i32) -> (i32, i32, i32) {
    %c0_i32 = arith.constant 0 : i32
    %c0_i32_0 = arith.constant 0 : i32
    %c0_i32_1 = arith.constant 0 : i32
    return %c0_i32, %arg0, %c0_i32_0 : i32, i32, i32
  }
  func.func @transform_1(%arg0: i32, %arg1: i32) -> (i32, i32, i32) {
    %c0_i32 = arith.constant 0 : i32
    %c0_i32_0 = arith.constant 0 : i32
    %c0_i32_1 = arith.constant 0 : i32
    return %arg1, %c0_i32, %c0_i32_0 : i32, i32, i32
  }
  func.func @transform_2(%arg0: i32, %arg1: i32) -> (i32, i32, i32) {
    %c0_i32 = arith.constant 0 : i32
    %c0_i32_0 = arith.constant 0 : i32
    %c0_i32_1 = arith.constant 0 : i32
    return %arg1, %c0_i32, %c0_i32_0 : i32, i32, i32
  }
  func.func @transform_3(%arg0: i32, %arg1: i32) -> (i32, i32, i32) {
    %c0_i32 = arith.constant 0 : i32
    %c0_i32_0 = arith.constant 0 : i32
    %c0_i32_1 = arith.constant 0 : i32
    return %arg1, %c0_i32, %c0_i32_0 : i32, i32, i32
  }
  func.func @transform_4(%arg0: i32, %arg1: i32) -> (i32, i32) {
    %c0_i32 = arith.constant 0 : i32
    %c0_i32_0 = arith.constant 0 : i32
    %c0_i32_1 = arith.constant 0 : i32
    return %c0_i32, %c0_i32_0 : i32, i32
  }
  func.func @transform_5(%arg0: i32, %arg1: i32) -> (i32, i32) {
    %c0_i32 = arith.constant 0 : i32
    %c0_i32_0 = arith.constant 0 : i32
    %c0_i32_1 = arith.constant 0 : i32
    return %c0_i32, %c0_i32_0 : i32, i32
  }
  func.func @transform_6(%arg0: i32, %arg1: i32) -> (i32, i32) {
    %c0_i32 = arith.constant 0 : i32
    %c0_i32_0 = arith.constant 0 : i32
    return %arg0, %c0_i32 : i32, i32
  }
}

</mosaic_0001>

<bundles_post_ra>
// kernel: tpu_custom_call.1
= control target key start
LH: loop header
LB: loop body
LE: loop exit
PB: predicated region body
PF: predicated region fallthrough
CT: control target
= control target key end

     0   :  { %s4225_s0 = inlined_call_operand.hbm [shape: f32[8,8,128], index: 0, kind: input, shape index: {}]   ;;  %s4226_s1 = inlined_call_operand.hbm [shape: f32[2,128,512], index: 1, kind: input, shape index: {}]   ;;  %s4227_s2 = inlined_call_operand.hbm [shape: f32[2,128,512], index: 2, kind: input, shape index: {}]   ;;  %s4228_s3 = inlined_call_operand.hbm [shape: f32[2,1,512], index: 3, kind: input, shape index: {}]   ;;  %s4229_s4 = inlined_call_operand.hbm [shape: f32[128,128], index: 4, kind: input, shape index: {}]   ;;  %s4230_s5 = inlined_call_operand.vmem [shape: f32[1,128], index: 5, kind: input, shape index: {}]   ;;  %s4231_s6 = inlined_call_operand.hbm [shape: f32[8,128], index: 6, kind: output, shape index: {}]  }
   0x1   :  { %4340 = sst [smem:[#allocation59_spill]] %s4225_s0 }
   0x2   :  { %4341 = sst [smem:[#allocation60_spill]] %s4226_s1 }
   0x3   :  { %4342 = sst [smem:[#allocation61_spill]] %s4229_s4 }
   0x4   :  { %4343 = sst [smem:[#allocation62_spill]] %s4230_s5 }
   0x5   :  { %4344 = sst [smem:[#allocation63_spill]] %s4231_s6 }
   0x6   :  { %11 = vsyncpa [#allocation5], 0 }
   0x7   :  { %12 = vsyncpa [#allocation8], 0 }
   0x8   :  { %14 = vsyncpa [#allocation8 + $0x1], 0 }
   0x9   :  { %15 = vsyncpa [#allocation11], 0 }
   0xa   :  { %17 = vsyncpa [#allocation11 + $0x1], 0 }
   0xb   :  { %18 = vsyncpa [#allocation6], 0  ;;  %s2954_s21 = smov 0   ;;  %s2956_s22 = smov 0  }
   0xc   :  { %s2958_s23 = smov 0   ;;  %s2960_s24 = smov 0  }
   0xd   :  { %s2962_s25 = smov 0   ;;  %s2964_s26 = smov 0  }
   0xe LB: > { %4345 = sst [smem:[#allocation19_spill]] %s2898_s23  ;;  %s2983_s27 = sadd.s32 4294967295, %s2910_s26   ;;  %s2910_s26 = sphi %s2964_s26, %s24_s26   ;;  %s2906_s25 = sphi %s2962_s25, %s4501_s25   ;;  %s2902_s24 = sphi %s2960_s24, %s4500_s24   ;;  %s2898_s23 = sphi %s2958_s23, %s4496_s23   ;;  %s2894_s22 = sphi %s2956_s22, %s4499_s22   ;;  %s2890_s21 = sphi %s2954_s21, %s4498_s21  }
   0xf   : > { %p82_p0 = scmp.ne.s32.totalorder %s2894_s22, %s2890_s21  ;;  %p83_p1 = scmp.eq.s32.totalorder %s2983_s27, 0 }
  0x10   : > { %p2330_p2 = scmp.ge.s32.totalorder %s2910_s26, 1  ;;  %p213_p3 = scmp.lt.s32.totalorder %s2910_s26, 3 }
  0x11   : > { %p2991_p4 = por %p83_p1, %p82_p0  ;;  %s4348_s4 = sld [smem:[#allocation61_spill]] }
  0x12   : > { %p2995_p5 = pnand %p2330_p2, %p213_p3  ;;  %s2912_s9 = smov [#allocation12]  }
  0x13   : > { %s242_s10 = sshll.u32 %s2912_s9, 4  ;;  %s4232_s12 = smov 128   ;;  %s243_s10 = int_to_ptr.vmem [resolvable:$true] %s242_s10 }
  0x14   : > { %p2398_p6 = pneg %p2995_p5  ;;  %s4233_s13 = smov 8  }
  0x15   : > { %s33_s14 = sadd.s32 1, %s2906_s25  ;;  %s69_s15 = sadd.s32 1, %s2898_s23 }
  0x16   : > { %p3006_p7 = pnand %p2398_p6, %p83_p1  ;;  %p34_p8 = scmp.ge.s32.totalorder %s33_s14, 2 }
  0x17   : > { %s240_s8 = sshll.u32 %s4348_s4, 4  ;;  %p76_p9 = scmp.ne.s32.totalorder %s2898_s23, %s2894_s22  ;;  %s241_s8 = int_to_ptr.hbm [resolvable:$true] %s240_s8 }
  0x18   : > { %2404 = dma.hbm_to_vmem [thread:$0]  (!%p3006_p7), %s241_s8, 2048, %s243_s10, [#allocation11], %s4232_s12, %s4232_s12, %s4233_s13  }
  0x19   : > { %p77_p10 = scmp.eq.s32.totalorder %s2910_s26, 0  ;;  %s4503_s14 = smov (%p34_p8, %s33_s14), 0 }
  0x1a   : > { %4350 = sst [smem:[#allocation20_spill]] %s4503_s14  ;;  %p2417_p12 = scmp.lt.s32.totalorder %s2910_s26, 2 }
  0x1b   : > { %p3022_p11 = por %p77_p10, %p76_p9  ;;  %s66_s17 = ssub.s32 %s2906_s25, %s4503_s14 }
  0x1c   : > { %s4236_s18 = sand.u32 1, %s2910_s26   ;;  %p67_p13 = scmp.eq.s32.totalorder %s66_s17, 0 }
  0x1d   : > { %s261_s19 = sand.u32 1, %s2898_s23   ;;  %s2378_s20 = sshll.u32 %s2906_s25, 9 }
  0x1e   : > { %s3033_s21 = scalar_select %p67_p13, %s2898_s23, %s69_s15  }
  0x1f   : > { %s2334_s30 = sshll.u32 %s261_s19, 9  ;;  %s4353_s1 = sld [smem:[#allocation60_spill]] }
  0x20   : > { %4352 = sst [smem:[#allocation21_spill]] %s3033_s21  ;;  %s263_s12 = scalar_lea.vmem [#allocation7], %s2334_s30 }
  0x21   : > { %s271_s13 = sshll.u32 %s263_s12, 4  ;;  %p3042_p0 = pnand %p2417_p12, %p3022_p11  ;;  %s272_s13 = int_to_ptr.vmem [resolvable:$true] %s271_s13 }
  0x22   : > { %s260_s15 = scalar_lea.sflag [#allocation8], %s4236_s18  ;;  %s2915_s17 = smov 512  }
  0x23   : > { %s2916_s14 = smov 32   ;;  %s290_s12 = scalar_lea.hbm %s4227_s2, %s2378_s20 }
  0x24   : > { %s285_s16 = scalar_lea.vmem [#allocation9], %s2334_s30  ;;  %s4355_s0 = sld [smem:[#allocation59_spill]] }
  0x25   : > { %s268_s9 = scalar_lea.hbm %s4353_s1, %s2378_s20  ;;  %s291_s1 = sshll.u32 %s290_s12, 4  ;;  %s292_s1 = int_to_ptr.hbm [resolvable:$true] %s291_s1 }
  0x26   : > { %s269_s10 = sshll.u32 %s268_s9, 4  ;;  %s293_s9 = sshll.u32 %s285_s16, 4  ;;  %s270_s10 = int_to_ptr.hbm [resolvable:$true] %s269_s10  ;;  %s294_s9 = int_to_ptr.vmem [resolvable:$true] %s293_s9 }
  0x27   : > { %2408 = dma.hbm_to_vmem [thread:$0]  (!%p3042_p0), %s270_s10, 8192, %s272_s13, %s260_s15, %s2915_s17, %s2915_s17, %s2916_s14  }
  0x28   : > { %s2917_s6 = smov [#allocation4]   ;;  %s2340_s13 = sshll.u32 %s261_s19, 2 }
  0x29   : > { %s228_s5 = sshll.u32 %s2917_s6, 4  ;;  %s4356_s10 = smov 8   ;;  %s229_s5 = int_to_ptr.vmem [resolvable:$true] %s228_s5 }
  0x2a   : > { %s226_s18 = sshll.u32 %s4355_s0, 4  ;;  %s4357_s7 = smov 128   ;;  %s227_s18 = int_to_ptr.hbm [resolvable:$true] %s226_s18 }
  0x2b   : > { %2401 = dma.hbm_to_vmem [thread:$0]  (!%p3006_p7), %s227_s18, 1024, %s229_s5, [#allocation5], %s4357_s7, %s4357_s7, %s4356_s10  }
  0x2c   : > { %2411 = dma.hbm_to_vmem [thread:$0]  (!%p3042_p0), %s292_s1, 8192, %s294_s9, %s260_s15, %s2915_s17, %s2915_s17, %s2916_s14  }
  0x2d   : > { %s2341_s20 = sshll.u32 %s2906_s25, 2  ;;  %s307_s21 = scalar_lea.vmem [#allocation10], %s2340_s13 }
  0x2e   : > { %s311_s23 = scalar_lea.hbm %s4228_s3, %s2341_s20  ;;  %s315_s12 = sshll.u32 %s307_s21, 4  ;;  %s316_s12 = int_to_ptr.vmem [resolvable:$true] %s315_s12 }
  0x2f   : > { %s313_s16 = sshll.u32 %s311_s23, 4  ;;  %s4358_s6 = sand.u32 1, %s2910_s26   ;;  %s314_s16 = int_to_ptr.hbm [resolvable:$true] %s313_s16 }
  0x30   : > { %s304_s0 = scalar_lea.sflag [#allocation11], %s4358_s6  ;;  %324 = sbr.rel (%p2995_p5) target bundleno = 1943 (0x797), region = 44 }
  0x31   : > { %2414 = dma.hbm_to_vmem [thread:$0]  (!%p3042_p0), %s314_s16, 64, %s316_s12, %s304_s0  }
  0x35   : > { %2869 = dma.done.wait (%p83_p1), [#allocation5], 1024  }
  0x36   : > { %2871 = vsyncadd (%p83_p1), [#allocation5], 4294966272  ;;  %s331_s1 = sand.u32 1, %s2983_s27   ;;  %s333_s5 = sand.u32 1, %s2894_s22  }
  0x37   : > { %s2344_s11 = sshll.u32 %s333_s5, 9  ;;  %s332_s14 = scalar_lea.sflag [#allocation8], %s331_s1 }
  0x38   : > { %s3079_s18 = scalar_lea.vmem [#allocation7], %s2344_s11 }
  0x39   : > { %2873 = dma.done.wait (%p2991_p4), %s332_s14, 16384  }
  0x3a   : > { %2875 = vsyncadd (%p2991_p4), %s332_s14, 4294950912  ;;  %s2346_s0 = sshll.u32 %s333_s5, 2  ;;  %s3085_s4 = scalar_lea.vmem [#allocation9], %s2344_s11 }
  0x3b   : > { %s352_s29 = scalar_lea.sflag [#allocation11], %s331_s1  ;;  %s355_s19 = scalar_lea.vmem [#allocation10], %s2346_s0 }
  0x3c   : > { %2877 = dma.done.wait (%p2991_p4), %s352_s29, 64  }
  0x3d   : > { %2879 = vsyncadd (%p2991_p4), %s352_s29, 4294967232 }
  0x3e   : > { %2881 = dma.done.wait (%p83_p1), [#allocation11], 2048  }
  0x3f   : > { %2883 = vsyncadd (%p83_p1), [#allocation11], 4294965248  ;;  %v3095_v0 = vld [vmem:[%s355_s19] sm:$0xf]  ;;  %p2348_p2 = scmp.ne.s32.totalorder %s2902_s24, 0 }
  0x41   : > { %399 = sbr.rel (%p2348_p2) target bundleno = 294 (0x126), region = 68 }
  0x46   : > { %v470_v1 = vld [vmem:[%s3079_s18 + $0x1f0] sm:$0xff]  ;;  %v471_v2 = vld [vmem:[%s3079_s18 + $0x1f8] sm:$0xff]  ;;  %v468_v7 = vld [vmem:[%s3079_s18 + $0x1e0] sm:$0xff] }
  0x47   : > { %v466_v3 = vld [vmem:[%s3079_s18 + $0x1d0] sm:$0xff]  ;;  %563 = vmatpush.msra.mxu2 %v470_v1  ;;  %604 = vmatpush.msra.mxu3 %v471_v2  ;;  %v467_v4 = vld [vmem:[%s3079_s18 + $0x1d8] sm:$0xff]  ;;  %v469_v8 = vld [vmem:[%s3079_s18 + $0x1e8] sm:$0xff] }
  0x48   : > { %v462_v5 = vld [vmem:[%s3079_s18 + $0x1b0] sm:$0xff]  ;;  %v463_v6 = vld [vmem:[%s3079_s18 + $0x1b8] sm:$0xff]  ;;  %v464_v9 = vld [vmem:[%s3079_s18 + $0x1c0] sm:$0xff]  ;;  %481 = vmatpush.msra.mxu0 %v468_v7  ;;  %522 = vmatpush.msra.mxu1 %v469_v8 }
  0x49   : > { %564 = vmatpush.msra.mxu2 %v466_v3  ;;  %605 = vmatpush.msra.mxu3 %v467_v4  ;;  %v465_v10 = vld [vmem:[%s3079_s18 + $0x1c8] sm:$0xff]  ;;  %v458_v11 = vld [vmem:[%s3079_s18 + $0x190] sm:$0xff]  ;;  %v459_v12 = vld [vmem:[%s3079_s18 + $0x198] sm:$0xff] }
  0x4a   : > { %v460_v13 = vld [vmem:[%s3079_s18 + $0x1a0] sm:$0xff]  ;;  %v461_v14 = vld [vmem:[%s3079_s18 + $0x1a8] sm:$0xff]  ;;  %482 = vmatpush.msra.mxu0 %v464_v9  ;;  %523 = vmatpush.msra.mxu1 %v465_v10  ;;  %v454_v15 = vld [vmem:[%s3079_s18 + $0x170] sm:$0xff]  ;;  %v3163_v10 = vperm.slane %v3095_v0, 0 }
  0x4b   : > { %565 = vmatpush.msra.mxu2 %v462_v5  ;;  %606 = vmatpush.msra.mxu3 %v463_v6  ;;  %v455_v16 = vld [vmem:[%s3079_s18 + $0x178] sm:$0xff]  ;;  %v456_v17 = vld [vmem:[%s3079_s18 + $0x180] sm:$0xff]  ;;  %v457_v18 = vld [vmem:[%s3079_s18 + $0x188] sm:$0xff] }
  0x4c   : > { %483 = vmatpush.msra.mxu0 %v460_v13  ;;  %524 = vmatpush.msra.mxu1 %v461_v14  ;;  %v450_v19 = vld [vmem:[%s3079_s18 + $0x150] sm:$0xff]  ;;  %v451_v20 = vld [vmem:[%s3079_s18 + $0x158] sm:$0xff]  ;;  %v452_v21 = vld [vmem:[%s3079_s18 + $0x160] sm:$0xff]  ;;  %v3172_v13 = vperm.slane %v3095_v0, 3 }
  0x4d   : > { %566 = vmatpush.msra.mxu2 %v458_v11  ;;  %607 = vmatpush.msra.mxu3 %v459_v12  ;;  %v453_v22 = vld [vmem:[%s3079_s18 + $0x168] sm:$0xff]  ;;  %v446_v23 = vld [vmem:[%s3079_s18 + $0x130] sm:$0xff]  ;;  %v447_v24 = vld [vmem:[%s3079_s18 + $0x138] sm:$0xff]  ;;  %v3166_v11 = vperm.slane %v3095_v0, 1  ;;  %v3169_v12 = vperm.slane %v3095_v0, 2 }
  0x4e   : > { %484 = vmatpush.msra.mxu0 %v456_v17  ;;  %525 = vmatpush.msra.mxu1 %v457_v18  ;;  %v448_v25 = vld [vmem:[%s3079_s18 + $0x140] sm:$0xff]  ;;  %v449_v26 = vld [vmem:[%s3079_s18 + $0x148] sm:$0xff]  ;;  %v442_v27 = vld [vmem:[%s3079_s18 + $0x110] sm:$0xff] }
  0x4f   : > { %567 = vmatpush.msra.mxu2 %v454_v15  ;;  %608 = vmatpush.msra.mxu3 %v455_v16  ;;  %v443_v28 = vld [vmem:[%s3079_s18 + $0x118] sm:$0xff]  ;;  %v444_v29 = vld [vmem:[%s3079_s18 + $0x120] sm:$0xff]  ;;  %v445_v30 = vld [vmem:[%s3079_s18 + $0x128] sm:$0xff] }
  0x50   : > { %485 = vmatpush.msra.mxu0 %v452_v21  ;;  %526 = vmatpush.msra.mxu1 %v453_v22  ;;  %v438_v31 = vld [vmem:[%s3079_s18 + $0xf0] sm:$0xff]  ;;  %v439_v32 = vld [vmem:[%s3079_s18 + $0xf8] sm:$0xff]  ;;  %v440_v33 = vld [vmem:[%s3079_s18 + $0x100] sm:$0xff] }
  0x51   : > { %568 = vmatpush.msra.mxu2 %v450_v19  ;;  %609 = vmatpush.msra.mxu3 %v451_v20  ;;  %v441_v34 = vld [vmem:[%s3079_s18 + $0x108] sm:$0xff]  ;;  %v434_v35 = vld [vmem:[%s3079_s18 + $0xd0] sm:$0xff]  ;;  %v435_v36 = vld [vmem:[%s3079_s18 + $0xd8] sm:$0xff] }
  0x52   : > { %486 = vmatpush.msra.mxu0 %v448_v25  ;;  %527 = vmatpush.msra.mxu1 %v449_v26  ;;  %v436_v37 = vld [vmem:[%s3079_s18 + $0xe0] sm:$0xff]  ;;  %v437_v38 = vld [vmem:[%s3079_s18 + $0xe8] sm:$0xff]  ;;  %v430_v39 = vld [vmem:[%s3079_s18 + $0xb0] sm:$0xff] }
  0x53   : > { %569 = vmatpush.msra.mxu2 %v446_v23  ;;  %610 = vmatpush.msra.mxu3 %v447_v24  ;;  %v431_v40 = vld [vmem:[%s3079_s18 + $0xb8] sm:$0xff]  ;;  %v432_v41 = vld [vmem:[%s3079_s18 + $0xc0] sm:$0xff]  ;;  %v433_v42 = vld [vmem:[%s3079_s18 + $0xc8] sm:$0xff] }
  0x54   : > { %487 = vmatpush.msra.mxu0 %v444_v29  ;;  %528 = vmatpush.msra.mxu1 %v445_v30  ;;  %v426_v43 = vld [vmem:[%s3079_s18 + $0x90] sm:$0xff]  ;;  %v427_v44 = vld [vmem:[%s3079_s18 + $0x98] sm:$0xff]  ;;  %v428_v45 = vld [vmem:[%s3079_s18 + $0xa0] sm:$0xff] }
  0x55   : > { %570 = vmatpush.msra.mxu2 %v442_v27  ;;  %611 = vmatpush.msra.mxu3 %v443_v28  ;;  %v429_v46 = vld [vmem:[%s3079_s18 + $0xa8] sm:$0xff]  ;;  %v422_v47 = vld [vmem:[%s3079_s18 + $0x70] sm:$0xff]  ;;  %v423_v48 = vld [vmem:[%s3079_s18 + $0x78] sm:$0xff] }
  0x56   : > { %488 = vmatpush.msra.mxu0 %v440_v33  ;;  %529 = vmatpush.msra.mxu1 %v441_v34  ;;  %v424_v49 = vld [vmem:[%s3079_s18 + $0x80] sm:$0xff]  ;;  %v425_v50 = vld [vmem:[%s3079_s18 + $0x88] sm:$0xff]  ;;  %v418_v51 = vld [vmem:[%s3079_s18 + $0x50] sm:$0xff] }
  0x57   : > { %571 = vmatpush.msra.mxu2 %v438_v31  ;;  %612 = vmatpush.msra.mxu3 %v439_v32  ;;  %v419_v52 = vld [vmem:[%s3079_s18 + $0x58] sm:$0xff]  ;;  %v420_v53 = vld [vmem:[%s3079_s18 + $0x60] sm:$0xff]  ;;  %v421_v54 = vld [vmem:[%s3079_s18 + $0x68] sm:$0xff] }
  0x58   : > { %489 = vmatpush.msra.mxu0 %v436_v37  ;;  %530 = vmatpush.msra.mxu1 %v437_v38  ;;  %v414_v55 = vld [vmem:[%s3079_s18 + $0x30] sm:$0xff]  ;;  %v415_v56 = vld [vmem:[%s3079_s18 + $0x38] sm:$0xff]  ;;  %v416_v57 = vld [vmem:[%s3079_s18 + $0x40] sm:$0xff] }
  0x59   : > { %572 = vmatpush.msra.mxu2 %v434_v35  ;;  %613 = vmatpush.msra.mxu3 %v435_v36  ;;  %v417_v58 = vld [vmem:[%s3079_s18 + $0x48] sm:$0xff]  ;;  %v410_v59 = vld [vmem:[%s3079_s18 + $0x10] sm:$0xff]  ;;  %v411_v60 = vld [vmem:[%s3079_s18 + $0x18] sm:$0xff] }
  0x5a   : > { %490 = vmatpush.msra.mxu0 %v432_v41  ;;  %531 = vmatpush.msra.mxu1 %v433_v42  ;;  %v400_v61 = vld [vmem:[#allocation4] sm:$0xff]  ;;  %v413_v63 = vld [vmem:[%s3079_s18 + $0x28] sm:$0xff]  ;;  %v402_v4 = vld [vmem:[#allocation4 + $0x10] sm:$0xff] }
  0x5b   : > { %573 = vmatpush.msra.mxu2 %v430_v39  ;;  %614 = vmatpush.msra.mxu3 %v431_v40  ;;  %v412_v62 = vld [vmem:[%s3079_s18 + $0x20] sm:$0xff]  ;;  %v409_v2 = vld [vmem:[%s3079_s18 + $0x8] sm:$0xff]  ;;  %v403_v5 = vld [vmem:[#allocation4 + $0x18] sm:$0xff] }
  0x5c   : > { %491 = vmatpush.msra.mxu0 %v428_v45  ;;  %532 = vmatpush.msra.mxu1 %v429_v46  ;;  %v408_v1 = vld [vmem:[%s3079_s18] sm:$0xff]  ;;  %v401_v3 = vld [vmem:[#allocation4 + $0x8] sm:$0xff]  ;;  %v406_v8 = vld [vmem:[#allocation4 + $0x30] sm:$0xff] }
  0x5d   : > { %574 = vmatpush.msra.mxu2 %v426_v43  ;;  %615 = vmatpush.msra.mxu3 %v427_v44  ;;  %v404_v6 = vld [vmem:[#allocation4 + $0x20] sm:$0xff]  ;;  %v405_v7 = vld [vmem:[#allocation4 + $0x28] sm:$0xff]  ;;  %v407_v9 = vld [vmem:[#allocation4 + $0x38] sm:$0xff] }
  0x5e   : > { %492 = vmatpush.msra.mxu0 %v424_v49  ;;  %533 = vmatpush.msra.mxu1 %v425_v50 }
  0x5f   : > { %575 = vmatpush.msra.mxu2 %v422_v47  ;;  %616 = vmatpush.msra.mxu3 %v423_v48 }
  0x60   : > { %493 = vmatpush.msra.mxu0 %v420_v53  ;;  %534 = vmatpush.msra.mxu1 %v421_v54 }
  0x61   : > { %576 = vmatpush.msra.mxu2 %v418_v51  ;;  %617 = vmatpush.msra.mxu3 %v419_v52 }
  0x62   : > { %494 = vmatpush.msra.mxu0 %v416_v57  ;;  %535 = vmatpush.msra.mxu1 %v417_v58 }
  0x63   : > { %577 = vmatpush.msra.mxu2 %v414_v55  ;;  %618 = vmatpush.msra.mxu3 %v415_v56 }
  0x64   : > { %495 = vmatpush.msra.mxu0 %v412_v62  ;;  %536 = vmatpush.msra.mxu1 %v413_v63 }
  0x65   : > { %578 = vmatpush.msra.mxu2 %v410_v59  ;;  %619 = vmatpush.msra.mxu3 %v411_v60 }
  0x66   : > { %579 = vmatmul.f32.vlgmr.msra.gmra.mxu2 %v400_v61  ;;  %620 = vmatmul.f32.vlgmr.msra.gmra.mxu3 %v400_v61 }
  0x67   : > { %496 = vmatpush.msra.mxu0 %v408_v1  ;;  %537 = vmatpush.msra.mxu1 %v409_v2 }
  0x68   : > { %497 = vmatmul.f32.vlgmr.msra.gmra.mxu0 %v400_v61  ;;  %538 = vmatmul.f32.vlgmr.msra.gmra.mxu1 %v400_v61 }
  0x6e   : > { %582 = vmatmul.f32.gmra.mxu2 %v401_v3  ;;  %623 = vmatmul.f32.gmra.mxu3 %v401_v3 }
  0x70   : > { %500 = vmatmul.f32.gmra.mxu0 %v401_v3  ;;  %541 = vmatmul.f32.gmra.mxu1 %v401_v3 }
  0x76   : > { %585 = vmatmul.f32.gmra.mxu2 %v402_v4  ;;  %626 = vmatmul.f32.gmra.mxu3 %v402_v4 }
  0x78   : > { %503 = vmatmul.f32.gmra.mxu0 %v402_v4  ;;  %544 = vmatmul.f32.gmra.mxu1 %v402_v4 }
  0x7e   : > { %588 = vmatmul.f32.gmra.mxu2 %v403_v5  ;;  %629 = vmatmul.f32.gmra.mxu3 %v403_v5 }
  0x80   : > { %506 = vmatmul.f32.gmra.mxu0 %v403_v5  ;;  %547 = vmatmul.f32.gmra.mxu1 %v403_v5 }
  0x86   : > { %591 = vmatmul.f32.gmra.mxu2 %v404_v6  ;;  %632 = vmatmul.f32.gmra.mxu3 %v404_v6 }
  0x88   : > { %509 = vmatmul.f32.gmra.mxu0 %v404_v6  ;;  %550 = vmatmul.f32.gmra.mxu1 %v404_v6 }
  0x8e   : > { %594 = vmatmul.f32.gmra.mxu2 %v405_v7  ;;  %635 = vmatmul.f32.gmra.mxu3 %v405_v7 }
  0x90   : > { %512 = vmatmul.f32.gmra.mxu0 %v405_v7  ;;  %553 = vmatmul.f32.gmra.mxu1 %v405_v7 }
  0x96   : > { %597 = vmatmul.f32.gmra.mxu2 %v406_v8  ;;  %638 = vmatmul.f32.gmra.mxu3 %v406_v8 }
  0x98   : > { %515 = vmatmul.f32.gmra.mxu0 %v406_v8  ;;  %556 = vmatmul.f32.gmra.mxu1 %v406_v8 }
  0x9e   : > { %600 = vmatmul.f32.gmra.mxu2 %v407_v9  ;;  %641 = vmatmul.f32.gmra.mxu3 %v407_v9 }
  0xa0   : > { %518 = vmatmul.f32.gmra.mxu0 %v407_v9  ;;  %559 = vmatmul.f32.gmra.mxu1 %v407_v9 }
  0xe5   : > { %v498_v14 = vpop.f32.mrf.mxu0  ;;  %v539_v15 = vpop.f32.mrf.mxu1 }
  0xe6   : > { %v499_v16 = vadd.f32 %v498_v14, %v3163_v10 }
  0xe8   : > { %645 = vst [vmem:[#allocation2 + $0xb0] sm:$0xff] %v499_v16 }
  0xe9   : > { %v580_v17 = vpop.f32.mrf.mxu2  ;;  %v621_v18 = vpop.f32.mrf.mxu3 }
  0xea   : > { %v581_v19 = vadd.f32 %v580_v17, %v3169_v12  ;;  %v622_v20 = vadd.f32 %v621_v18, %v3172_v13 }
  0xec   : > { %647 = vst [vmem:[#allocation2 + $0xd8] sm:$0xff] %v581_v19 }
  0xed   : > { %648 = vst [vmem:[#allocation2 + $0x18] sm:$0xff] %v622_v20  ;;  %v501_v21 = vpop.f32.mrf.mxu0  ;;  %v542_v22 = vpop.f32.mrf.mxu1 }
  0xee   : > { %v502_v23 = vadd.f32 %v501_v21, %v3163_v10  ;;  %v543_v24 = vadd.f32 %v542_v22, %v3166_v11 }
  0xf0   : > { %649 = vst [vmem:[#allocation2 + $0x50] sm:$0xff] %v502_v23 }
  0xf1   : > { %v583_v25 = vpop.f32.mrf.mxu2  ;;  %v624_v26 = vpop.f32.mrf.mxu3  ;;  %650 = vst [vmem:[#allocation2 + $0x68] sm:$0xff] %v543_v24 }
  0xf2   : > { %v584_v27 = vadd.f32 %v583_v25, %v3169_v12  ;;  %v625_v28 = vadd.f32 %v624_v26, %v3172_v13 }
  0xf4   : > { %651 = vst [vmem:[#allocation2 + $0x30] sm:$0xff] %v584_v27 }
  0xf5   : > { %652 = vst [vmem:[#allocation2 + $0x48] sm:$0xff] %v625_v28  ;;  %v504_v29 = vpop.f32.mrf.mxu0  ;;  %v545_v30 = vpop.f32.mrf.mxu1 }
  0xf6   : > { %v505_v31 = vadd.f32 %v504_v29, %v3163_v10  ;;  %v546_v32 = vadd.f32 %v545_v30, %v3166_v11 }
  0xf8   : > { %653 = vst [vmem:[#allocation2 + $0x80] sm:$0xff] %v505_v31 }
  0xf9   : > { %v586_v33 = vpop.f32.mrf.mxu2  ;;  %v627_v34 = vpop.f32.mrf.mxu3  ;;  %654 = vst [vmem:[#allocation2 + $0x88] sm:$0xff] %v546_v32 }
  0xfa   : > { %v587_v35 = vadd.f32 %v586_v33, %v3169_v12  ;;  %v628_v36 = vadd.f32 %v627_v34, %v3172_v13 }
  0xfc   : > { %655 = vst [vmem:[#allocation2 + $0xe8] sm:$0xff] %v587_v35 }
  0xfd   : > { %656 = vst [vmem:[#allocation2 + $0xb8] sm:$0xff] %v628_v36  ;;  %v507_v37 = vpop.f32.mrf.mxu0  ;;  %v548_v38 = vpop.f32.mrf.mxu1 }
  0xfe   : > { %v508_v39 = vadd.f32 %v507_v37, %v3163_v10  ;;  %v549_v40 = vadd.f32 %v548_v38, %v3166_v11 }
 0x100   : > { %657 = vst [vmem:[#allocation2 + $0x60] sm:$0xff] %v508_v39 }
 0x101   : > { %v589_v41 = vpop.f32.mrf.mxu2  ;;  %v630_v42 = vpop.f32.mrf.mxu3  ;;  %658 = vst [vmem:[#allocation2 + $0xf0] sm:$0xff] %v549_v40 }
 0x102   : > { %v590_v43 = vadd.f32 %v589_v41, %v3169_v12  ;;  %v631_v44 = vadd.f32 %v630_v42, %v3172_v13 }
 0x104   : > { %659 = vst [vmem:[#allocation2 + $0x8] sm:$0xff] %v590_v43 }
 0x105   : > { %660 = vst [vmem:[#allocation2 + $0x78] sm:$0xff] %v631_v44  ;;  %v510_v45 = vpop.f32.mrf.mxu0  ;;  %v551_v46 = vpop.f32.mrf.mxu1 }
 0x106   : > { %v511_v47 = vadd.f32 %v510_v45, %v3163_v10  ;;  %v552_v48 = vadd.f32 %v551_v46, %v3166_v11 }
 0x108   : > { %661 = vst [vmem:[#allocation2 + $0x38] sm:$0xff] %v511_v47 }
 0x109   : > { %v592_v49 = vpop.f32.mrf.mxu2  ;;  %v633_v50 = vpop.f32.mrf.mxu3  ;;  %662 = vst [vmem:[#allocation2 + $0x58] sm:$0xff] %v552_v48 }
 0x10a   : > { %v593_v51 = vadd.f32 %v592_v49, %v3169_v12  ;;  %v634_v52 = vadd.f32 %v633_v50, %v3172_v13 }
 0x10c   : > { %663 = vst [vmem:[#allocation2 + $0x40] sm:$0xff] %v593_v51 }
 0x10d   : > { %664 = vst [vmem:[#allocation2 + $0xc8] sm:$0xff] %v634_v52  ;;  %v513_v53 = vpop.f32.mrf.mxu0  ;;  %v554_v54 = vpop.f32.mrf.mxu1 }
 0x10e   : > { %v514_v55 = vadd.f32 %v513_v53, %v3163_v10  ;;  %v555_v56 = vadd.f32 %v554_v54, %v3166_v11 }
 0x110   : > { %665 = vst [vmem:[#allocation2 + $0xe0] sm:$0xff] %v514_v55 }
 0x111   : > { %v595_v57 = vpop.f32.mrf.mxu2  ;;  %v636_v58 = vpop.f32.mrf.mxu3  ;;  %666 = vst [vmem:[#allocation2 + $0x90] sm:$0xff] %v555_v56 }
 0x112   : > { %v596_v59 = vadd.f32 %v595_v57, %v3169_v12  ;;  %v637_v60 = vadd.f32 %v636_v58, %v3172_v13 }
 0x114   : > { %667 = vst [vmem:[#allocation2 + $0x70] sm:$0xff] %v596_v59 }
 0x115   : > { %668 = vst [vmem:[#allocation2 + $0xc0] sm:$0xff] %v637_v60  ;;  %v516_v61 = vpop.f32.mrf.mxu0  ;;  %v557_v62 = vpop.f32.mrf.mxu1 }
 0x116   : > { %v517_v63 = vadd.f32 %v516_v61, %v3163_v10  ;;  %v558_v1 = vadd.f32 %v557_v62, %v3166_v11 }
 0x118   : > { %669 = vst [vmem:[#allocation2 + $0xa8] sm:$0xff] %v517_v63 }
 0x119   : > { %v598_v2 = vpop.f32.mrf.mxu2  ;;  %v639_v3 = vpop.f32.mrf.mxu3  ;;  %670 = vst [vmem:[#allocation2 + $0xd0] sm:$0xff] %v558_v1 }
 0x11a   : > { %v599_v4 = vadd.f32 %v598_v2, %v3169_v12  ;;  %v640_v5 = vadd.f32 %v639_v3, %v3172_v13 }
 0x11c   : > { %671 = vst [vmem:[#allocation2 + $0x10] sm:$0xff] %v599_v4 }
 0x11d   : > { %672 = vst [vmem:[#allocation2 + $0x28] sm:$0xff] %v640_v5  ;;  %v519_v6 = vpop.f32.mrf.mxu0  ;;  %v560_v7 = vpop.f32.mrf.mxu1 }
 0x11e   : > { %v520_v8 = vadd.f32 %v519_v6, %v3163_v10  ;;  %v561_v9 = vadd.f32 %v560_v7, %v3166_v11 }
 0x120   : > { %673 = vst [vmem:[#allocation2 + $0xa0] sm:$0xff] %v520_v8 }
 0x121   : > { %v601_v14 = vpop.f32.mrf.mxu2  ;;  %v642_v15 = vpop.f32.mrf.mxu3  ;;  %674 = vst [vmem:[#allocation2 + $0xf8] sm:$0xff] %v561_v9 }
 0x122   : > { %v602_v16 = vadd.f32 %v601_v14, %v3169_v12  ;;  %v643_v17 = vadd.f32 %v642_v15, %v3172_v13 }
 0x124   : > { %675 = vst [vmem:[#allocation2 + $0x20] sm:$0xff] %v602_v16 }
 0x125   : > { %676 = vst [vmem:[#allocation2 + $0x98] sm:$0xff] %v643_v17 }
 0x126 PF: > { %p2349_p1 = scmp.le.s32.totalorder %s2902_s24, 0 }
 0x128   : > { %680 = sbr.rel (%p2349_p1) target bundleno = 525 (0x20d), region = 72 }
 0x12d   : > { %v751_v10 = vld [vmem:[%s3079_s18 + $0x1f0] sm:$0xff]  ;;  %v752_v11 = vld [vmem:[%s3079_s18 + $0x1f8] sm:$0xff]  ;;  %v749_v20 = vld [vmem:[%s3079_s18 + $0x1e0] sm:$0xff] }
 0x12e   : > { %v747_v12 = vld [vmem:[%s3079_s18 + $0x1d0] sm:$0xff]  ;;  %844 = vmatpush.msra.mxu2 %v751_v10  ;;  %885 = vmatpush.msra.mxu3 %v752_v11  ;;  %v748_v13 = vld [vmem:[%s3079_s18 + $0x1d8] sm:$0xff]  ;;  %v750_v21 = vld [vmem:[%s3079_s18 + $0x1e8] sm:$0xff] }
 0x12f   : > { %v743_v18 = vld [vmem:[%s3079_s18 + $0x1b0] sm:$0xff]  ;;  %v744_v19 = vld [vmem:[%s3079_s18 + $0x1b8] sm:$0xff]  ;;  %v745_v22 = vld [vmem:[%s3079_s18 + $0x1c0] sm:$0xff]  ;;  %762 = vmatpush.msra.mxu0 %v749_v20  ;;  %803 = vmatpush.msra.mxu1 %v750_v21 }
 0x130   : > { %845 = vmatpush.msra.mxu2 %v747_v12  ;;  %886 = vmatpush.msra.mxu3 %v748_v13  ;;  %v746_v23 = vld [vmem:[%s3079_s18 + $0x1c8] sm:$0xff]  ;;  %v739_v24 = vld [vmem:[%s3079_s18 + $0x190] sm:$0xff]  ;;  %v740_v25 = vld [vmem:[%s3079_s18 + $0x198] sm:$0xff] }
 0x131   : > { %v741_v26 = vld [vmem:[%s3079_s18 + $0x1a0] sm:$0xff]  ;;  %v742_v27 = vld [vmem:[%s3079_s18 + $0x1a8] sm:$0xff]  ;;  %763 = vmatpush.msra.mxu0 %v745_v22  ;;  %804 = vmatpush.msra.mxu1 %v746_v23  ;;  %v735_v28 = vld [vmem:[%s3079_s18 + $0x170] sm:$0xff]  ;;  %v3271_v23 = vperm.slane %v3095_v0, 0 }
 0x132   : > { %846 = vmatpush.msra.mxu2 %v743_v18  ;;  %887 = vmatpush.msra.mxu3 %v744_v19  ;;  %v736_v29 = vld [vmem:[%s3079_s18 + $0x178] sm:$0xff]  ;;  %v737_v30 = vld [vmem:[%s3079_s18 + $0x180] sm:$0xff]  ;;  %v738_v31 = vld [vmem:[%s3079_s18 + $0x188] sm:$0xff] }
 0x133   : > { %764 = vmatpush.msra.mxu0 %v741_v26  ;;  %805 = vmatpush.msra.mxu1 %v742_v27  ;;  %v731_v32 = vld [vmem:[%s3079_s18 + $0x150] sm:$0xff]  ;;  %v732_v33 = vld [vmem:[%s3079_s18 + $0x158] sm:$0xff]  ;;  %v733_v34 = vld [vmem:[%s3079_s18 + $0x160] sm:$0xff]  ;;  %v3280_v26 = vperm.slane %v3095_v0, 3 }
 0x134   : > { %847 = vmatpush.msra.mxu2 %v739_v24  ;;  %888 = vmatpush.msra.mxu3 %v740_v25  ;;  %v734_v35 = vld [vmem:[%s3079_s18 + $0x168] sm:$0xff]  ;;  %v727_v36 = vld [vmem:[%s3079_s18 + $0x130] sm:$0xff]  ;;  %v728_v37 = vld [vmem:[%s3079_s18 + $0x138] sm:$0xff]  ;;  %v3274_v24 = vperm.slane %v3095_v0, 1  ;;  %v3277_v25 = vperm.slane %v3095_v0, 2 }
 0x135   : > { %765 = vmatpush.msra.mxu0 %v737_v30  ;;  %806 = vmatpush.msra.mxu1 %v738_v31  ;;  %v729_v38 = vld [vmem:[%s3079_s18 + $0x140] sm:$0xff]  ;;  %v730_v39 = vld [vmem:[%s3079_s18 + $0x148] sm:$0xff]  ;;  %v723_v40 = vld [vmem:[%s3079_s18 + $0x110] sm:$0xff] }
 0x136   : > { %848 = vmatpush.msra.mxu2 %v735_v28  ;;  %889 = vmatpush.msra.mxu3 %v736_v29  ;;  %v724_v41 = vld [vmem:[%s3079_s18 + $0x118] sm:$0xff]  ;;  %v725_v42 = vld [vmem:[%s3079_s18 + $0x120] sm:$0xff]  ;;  %v726_v43 = vld [vmem:[%s3079_s18 + $0x128] sm:$0xff] }
 0x137   : > { %766 = vmatpush.msra.mxu0 %v733_v34  ;;  %807 = vmatpush.msra.mxu1 %v734_v35  ;;  %v719_v44 = vld [vmem:[%s3079_s18 + $0xf0] sm:$0xff]  ;;  %v720_v45 = vld [vmem:[%s3079_s18 + $0xf8] sm:$0xff]  ;;  %v721_v46 = vld [vmem:[%s3079_s18 + $0x100] sm:$0xff] }
 0x138   : > { %849 = vmatpush.msra.mxu2 %v731_v32  ;;  %890 = vmatpush.msra.mxu3 %v732_v33  ;;  %v722_v47 = vld [vmem:[%s3079_s18 + $0x108] sm:$0xff]  ;;  %v715_v48 = vld [vmem:[%s3079_s18 + $0xd0] sm:$0xff]  ;;  %v716_v49 = vld [vmem:[%s3079_s18 + $0xd8] sm:$0xff] }
 0x139   : > { %767 = vmatpush.msra.mxu0 %v729_v38  ;;  %808 = vmatpush.msra.mxu1 %v730_v39  ;;  %v717_v50 = vld [vmem:[%s3079_s18 + $0xe0] sm:$0xff]  ;;  %v718_v51 = vld [vmem:[%s3079_s18 + $0xe8] sm:$0xff]  ;;  %v711_v52 = vld [vmem:[%s3079_s18 + $0xb0] sm:$0xff] }
 0x13a   : > { %850 = vmatpush.msra.mxu2 %v727_v36  ;;  %891 = vmatpush.msra.mxu3 %v728_v37  ;;  %v712_v53 = vld [vmem:[%s3079_s18 + $0xb8] sm:$0xff]  ;;  %v713_v54 = vld [vmem:[%s3079_s18 + $0xc0] sm:$0xff]  ;;  %v714_v55 = vld [vmem:[%s3079_s18 + $0xc8] sm:$0xff] }
 0x13b   : > { %768 = vmatpush.msra.mxu0 %v725_v42  ;;  %809 = vmatpush.msra.mxu1 %v726_v43  ;;  %v707_v56 = vld [vmem:[%s3079_s18 + $0x90] sm:$0xff]  ;;  %v708_v57 = vld [vmem:[%s3079_s18 + $0x98] sm:$0xff]  ;;  %v709_v58 = vld [vmem:[%s3079_s18 + $0xa0] sm:$0xff] }
 0x13c   : > { %851 = vmatpush.msra.mxu2 %v723_v40  ;;  %892 = vmatpush.msra.mxu3 %v724_v41  ;;  %v710_v59 = vld [vmem:[%s3079_s18 + $0xa8] sm:$0xff]  ;;  %v703_v60 = vld [vmem:[%s3079_s18 + $0x70] sm:$0xff]  ;;  %v704_v61 = vld [vmem:[%s3079_s18 + $0x78] sm:$0xff] }
 0x13d   : > { %769 = vmatpush.msra.mxu0 %v721_v46  ;;  %810 = vmatpush.msra.mxu1 %v722_v47  ;;  %v705_v62 = vld [vmem:[%s3079_s18 + $0x80] sm:$0xff]  ;;  %v706_v63 = vld [vmem:[%s3079_s18 + $0x88] sm:$0xff]  ;;  %v699_v1 = vld [vmem:[%s3079_s18 + $0x50] sm:$0xff] }
 0x13e   : > { %852 = vmatpush.msra.mxu2 %v719_v44  ;;  %893 = vmatpush.msra.mxu3 %v720_v45  ;;  %v700_v2 = vld [vmem:[%s3079_s18 + $0x58] sm:$0xff]  ;;  %v701_v3 = vld [vmem:[%s3079_s18 + $0x60] sm:$0xff]  ;;  %v702_v4 = vld [vmem:[%s3079_s18 + $0x68] sm:$0xff] }
 0x13f   : > { %770 = vmatpush.msra.mxu0 %v717_v50  ;;  %811 = vmatpush.msra.mxu1 %v718_v51  ;;  %v695_v5 = vld [vmem:[%s3079_s18 + $0x30] sm:$0xff]  ;;  %v696_v6 = vld [vmem:[%s3079_s18 + $0x38] sm:$0xff]  ;;  %v697_v7 = vld [vmem:[%s3079_s18 + $0x40] sm:$0xff] }
 0x140   : > { %853 = vmatpush.msra.mxu2 %v715_v48  ;;  %894 = vmatpush.msra.mxu3 %v716_v49  ;;  %v698_v8 = vld [vmem:[%s3079_s18 + $0x48] sm:$0xff]  ;;  %v691_v9 = vld [vmem:[%s3079_s18 + $0x10] sm:$0xff]  ;;  %v692_v14 = vld [vmem:[%s3079_s18 + $0x18] sm:$0xff] }
 0x141   : > { %771 = vmatpush.msra.mxu0 %v713_v54  ;;  %812 = vmatpush.msra.mxu1 %v714_v55  ;;  %v681_v15 = vld [vmem:[#allocation3] sm:$0xff]  ;;  %v694_v17 = vld [vmem:[%s3079_s18 + $0x28] sm:$0xff]  ;;  %v684_v18 = vld [vmem:[#allocation3 + $0x38] sm:$0xff] }
 0x142   : > { %854 = vmatpush.msra.mxu2 %v711_v52  ;;  %895 = vmatpush.msra.mxu3 %v712_v53  ;;  %v693_v16 = vld [vmem:[%s3079_s18 + $0x20] sm:$0xff]  ;;  %v690_v11 = vld [vmem:[%s3079_s18 + $0x8] sm:$0xff]  ;;  %v685_v19 = vld [vmem:[#allocation3 + $0x10] sm:$0xff] }
 0x143   : > { %772 = vmatpush.msra.mxu0 %v709_v58  ;;  %813 = vmatpush.msra.mxu1 %v710_v59  ;;  %v689_v10 = vld [vmem:[%s3079_s18] sm:$0xff]  ;;  %v682_v12 = vld [vmem:[#allocation3 + $0x8] sm:$0xff]  ;;  %v686_v20 = vld [vmem:[#allocation3 + $0x30] sm:$0xff] }
 0x144   : > { %855 = vmatpush.msra.mxu2 %v707_v56  ;;  %896 = vmatpush.msra.mxu3 %v708_v57  ;;  %v683_v13 = vld [vmem:[#allocation3 + $0x28] sm:$0xff]  ;;  %v687_v21 = vld [vmem:[#allocation3 + $0x18] sm:$0xff]  ;;  %v688_v22 = vld [vmem:[#allocation3 + $0x20] sm:$0xff] }
 0x145   : > { %773 = vmatpush.msra.mxu0 %v705_v62  ;;  %814 = vmatpush.msra.mxu1 %v706_v63 }
 0x146   : > { %856 = vmatpush.msra.mxu2 %v703_v60  ;;  %897 = vmatpush.msra.mxu3 %v704_v61 }
 0x147   : > { %774 = vmatpush.msra.mxu0 %v701_v3  ;;  %815 = vmatpush.msra.mxu1 %v702_v4 }
 0x148   : > { %857 = vmatpush.msra.mxu2 %v699_v1  ;;  %898 = vmatpush.msra.mxu3 %v700_v2 }
 0x149   : > { %775 = vmatpush.msra.mxu0 %v697_v7  ;;  %816 = vmatpush.msra.mxu1 %v698_v8 }
 0x14a   : > { %858 = vmatpush.msra.mxu2 %v695_v5  ;;  %899 = vmatpush.msra.mxu3 %v696_v6 }
 0x14b   : > { %776 = vmatpush.msra.mxu0 %v693_v16  ;;  %817 = vmatpush.msra.mxu1 %v694_v17 }
 0x14c   : > { %859 = vmatpush.msra.mxu2 %v691_v9  ;;  %900 = vmatpush.msra.mxu3 %v692_v14 }
 0x14d   : > { %860 = vmatmul.f32.vlgmr.msra.gmra.mxu2 %v681_v15  ;;  %901 = vmatmul.f32.vlgmr.msra.gmra.mxu3 %v681_v15 }
 0x14e   : > { %777 = vmatpush.msra.mxu0 %v689_v10  ;;  %818 = vmatpush.msra.mxu1 %v690_v11 }
 0x14f   : > { %778 = vmatmul.f32.vlgmr.msra.gmra.mxu0 %v681_v15  ;;  %819 = vmatmul.f32.vlgmr.msra.gmra.mxu1 %v681_v15 }
 0x155   : > { %863 = vmatmul.f32.gmra.mxu2 %v682_v12  ;;  %904 = vmatmul.f32.gmra.mxu3 %v682_v12 }
 0x157   : > { %781 = vmatmul.f32.gmra.mxu0 %v682_v12  ;;  %822 = vmatmul.f32.gmra.mxu1 %v682_v12 }
 0x15d   : > { %866 = vmatmul.f32.gmra.mxu2 %v683_v13  ;;  %907 = vmatmul.f32.gmra.mxu3 %v683_v13 }
 0x15f   : > { %784 = vmatmul.f32.gmra.mxu0 %v683_v13  ;;  %825 = vmatmul.f32.gmra.mxu1 %v683_v13 }
 0x165   : > { %869 = vmatmul.f32.gmra.mxu2 %v684_v18  ;;  %910 = vmatmul.f32.gmra.mxu3 %v684_v18 }
 0x167   : > { %787 = vmatmul.f32.gmra.mxu0 %v684_v18  ;;  %828 = vmatmul.f32.gmra.mxu1 %v684_v18 }
 0x16d   : > { %872 = vmatmul.f32.gmra.mxu2 %v685_v19  ;;  %913 = vmatmul.f32.gmra.mxu3 %v685_v19 }
 0x16f   : > { %790 = vmatmul.f32.gmra.mxu0 %v685_v19  ;;  %831 = vmatmul.f32.gmra.mxu1 %v685_v19 }
 0x175   : > { %875 = vmatmul.f32.gmra.mxu2 %v686_v20  ;;  %916 = vmatmul.f32.gmra.mxu3 %v686_v20 }
 0x177   : > { %793 = vmatmul.f32.gmra.mxu0 %v686_v20  ;;  %834 = vmatmul.f32.gmra.mxu1 %v686_v20 }
 0x17d   : > { %878 = vmatmul.f32.gmra.mxu2 %v687_v21  ;;  %919 = vmatmul.f32.gmra.mxu3 %v687_v21 }
 0x17f   : > { %796 = vmatmul.f32.gmra.mxu0 %v687_v21  ;;  %837 = vmatmul.f32.gmra.mxu1 %v687_v21 }
 0x185   : > { %881 = vmatmul.f32.gmra.mxu2 %v688_v22  ;;  %922 = vmatmul.f32.gmra.mxu3 %v688_v22 }
 0x187   : > { %799 = vmatmul.f32.gmra.mxu0 %v688_v22  ;;  %840 = vmatmul.f32.gmra.mxu1 %v688_v22 }
 0x1cc   : > { %v779_v27 = vpop.f32.mrf.mxu0  ;;  %v820_v28 = vpop.f32.mrf.mxu1 }
 0x1cd   : > { %v780_v29 = vadd.f32 %v779_v27, %v3271_v23 }
 0x1cf   : > { %926 = vst [vmem:[#allocation2 + $0xb0] sm:$0xff] %v780_v29 }
 0x1d0   : > { %v861_v30 = vpop.f32.mrf.mxu2  ;;  %v902_v31 = vpop.f32.mrf.mxu3 }
 0x1d1   : > { %v862_v32 = vadd.f32 %v861_v30, %v3277_v25  ;;  %v903_v33 = vadd.f32 %v902_v31, %v3280_v26 }
 0x1d3   : > { %928 = vst [vmem:[#allocation2 + $0xd8] sm:$0xff] %v862_v32 }
 0x1d4   : > { %929 = vst [vmem:[#allocation2 + $0x18] sm:$0xff] %v903_v33  ;;  %v782_v34 = vpop.f32.mrf.mxu0  ;;  %v823_v35 = vpop.f32.mrf.mxu1 }
 0x1d5   : > { %v783_v36 = vadd.f32 %v782_v34, %v3271_v23  ;;  %v824_v0 = vadd.f32 %v823_v35, %v3274_v24 }
 0x1d7   : > { %930 = vst [vmem:[#allocation2 + $0x50] sm:$0xff] %v783_v36 }
 0x1d8   : > { %v864_v37 = vpop.f32.mrf.mxu2  ;;  %v905_v38 = vpop.f32.mrf.mxu3  ;;  %931 = vst [vmem:[#allocation2 + $0x68] sm:$0xff] %v824_v0 }
 0x1d9   : > { %v865_v39 = vadd.f32 %v864_v37, %v3277_v25  ;;  %v906_v40 = vadd.f32 %v905_v38, %v3280_v26 }
 0x1db   : > { %932 = vst [vmem:[#allocation2 + $0x30] sm:$0xff] %v865_v39 }
 0x1dc   : > { %933 = vst [vmem:[#allocation2 + $0x48] sm:$0xff] %v906_v40  ;;  %v785_v41 = vpop.f32.mrf.mxu0  ;;  %v826_v42 = vpop.f32.mrf.mxu1 }
 0x1dd   : > { %v786_v43 = vadd.f32 %v785_v41, %v3271_v23  ;;  %v827_v44 = vadd.f32 %v826_v42, %v3274_v24 }
 0x1df   : > { %934 = vst [vmem:[#allocation2 + $0x80] sm:$0xff] %v786_v43 }
 0x1e0   : > { %v867_v45 = vpop.f32.mrf.mxu2  ;;  %v908_v46 = vpop.f32.mrf.mxu3  ;;  %935 = vst [vmem:[#allocation2 + $0x88] sm:$0xff] %v827_v44 }
 0x1e1   : > { %v868_v47 = vadd.f32 %v867_v45, %v3277_v25  ;;  %v909_v48 = vadd.f32 %v908_v46, %v3280_v26 }
 0x1e3   : > { %936 = vst [vmem:[#allocation2 + $0xe8] sm:$0xff] %v868_v47 }
 0x1e4   : > { %937 = vst [vmem:[#allocation2 + $0xb8] sm:$0xff] %v909_v48  ;;  %v788_v49 = vpop.f32.mrf.mxu0  ;;  %v829_v50 = vpop.f32.mrf.mxu1 }
 0x1e5   : > { %v789_v51 = vadd.f32 %v788_v49, %v3271_v23  ;;  %v830_v52 = vadd.f32 %v829_v50, %v3274_v24 }
 0x1e7   : > { %938 = vst [vmem:[#allocation2 + $0x60] sm:$0xff] %v789_v51 }
 0x1e8   : > { %v870_v53 = vpop.f32.mrf.mxu2  ;;  %v911_v54 = vpop.f32.mrf.mxu3  ;;  %939 = vst [vmem:[#allocation2 + $0xf0] sm:$0xff] %v830_v52 }
 0x1e9   : > { %v871_v55 = vadd.f32 %v870_v53, %v3277_v25  ;;  %v912_v56 = vadd.f32 %v911_v54, %v3280_v26 }
 0x1eb   : > { %940 = vst [vmem:[#allocation2 + $0x8] sm:$0xff] %v871_v55 }
 0x1ec   : > { %941 = vst [vmem:[#allocation2 + $0x78] sm:$0xff] %v912_v56  ;;  %v791_v57 = vpop.f32.mrf.mxu0  ;;  %v832_v58 = vpop.f32.mrf.mxu1 }
 0x1ed   : > { %v792_v59 = vadd.f32 %v791_v57, %v3271_v23  ;;  %v833_v60 = vadd.f32 %v832_v58, %v3274_v24 }
 0x1ef   : > { %942 = vst [vmem:[#allocation2 + $0x38] sm:$0xff] %v792_v59 }
 0x1f0   : > { %v873_v61 = vpop.f32.mrf.mxu2  ;;  %v914_v62 = vpop.f32.mrf.mxu3  ;;  %943 = vst [vmem:[#allocation2 + $0x58] sm:$0xff] %v833_v60 }
 0x1f1   : > { %v874_v63 = vadd.f32 %v873_v61, %v3277_v25  ;;  %v915_v1 = vadd.f32 %v914_v62, %v3280_v26 }
 0x1f3   : > { %944 = vst [vmem:[#allocation2 + $0x40] sm:$0xff] %v874_v63 }
 0x1f4   : > { %945 = vst [vmem:[#allocation2 + $0xc8] sm:$0xff] %v915_v1  ;;  %v794_v2 = vpop.f32.mrf.mxu0  ;;  %v835_v3 = vpop.f32.mrf.mxu1 }
 0x1f5   : > { %v795_v4 = vadd.f32 %v794_v2, %v3271_v23  ;;  %v836_v5 = vadd.f32 %v835_v3, %v3274_v24 }
 0x1f7   : > { %946 = vst [vmem:[#allocation2 + $0xe0] sm:$0xff] %v795_v4 }
 0x1f8   : > { %v876_v6 = vpop.f32.mrf.mxu2  ;;  %v917_v7 = vpop.f32.mrf.mxu3  ;;  %947 = vst [vmem:[#allocation2 + $0x90] sm:$0xff] %v836_v5 }
 0x1f9   : > { %v877_v8 = vadd.f32 %v876_v6, %v3277_v25  ;;  %v918_v9 = vadd.f32 %v917_v7, %v3280_v26 }
 0x1fb   : > { %948 = vst [vmem:[#allocation2 + $0x70] sm:$0xff] %v877_v8 }
 0x1fc   : > { %949 = vst [vmem:[#allocation2 + $0xc0] sm:$0xff] %v918_v9  ;;  %v797_v14 = vpop.f32.mrf.mxu0  ;;  %v838_v15 = vpop.f32.mrf.mxu1 }
 0x1fd   : > { %v798_v16 = vadd.f32 %v797_v14, %v3271_v23  ;;  %v839_v17 = vadd.f32 %v838_v15, %v3274_v24 }
 0x1ff   : > { %950 = vst [vmem:[#allocation2 + $0xa8] sm:$0xff] %v798_v16 }
 0x200   : > { %v879_v10 = vpop.f32.mrf.mxu2  ;;  %v920_v11 = vpop.f32.mrf.mxu3  ;;  %951 = vst [vmem:[#allocation2 + $0xd0] sm:$0xff] %v839_v17 }
 0x201   : > { %v880_v12 = vadd.f32 %v879_v10, %v3277_v25  ;;  %v921_v13 = vadd.f32 %v920_v11, %v3280_v26 }
 0x203   : > { %952 = vst [vmem:[#allocation2 + $0x10] sm:$0xff] %v880_v12 }
 0x204   : > { %953 = vst [vmem:[#allocation2 + $0x28] sm:$0xff] %v921_v13  ;;  %v800_v18 = vpop.f32.mrf.mxu0  ;;  %v841_v19 = vpop.f32.mrf.mxu1 }
 0x205   : > { %v801_v20 = vadd.f32 %v800_v18, %v3271_v23  ;;  %v842_v21 = vadd.f32 %v841_v19, %v3274_v24 }
 0x207   : > { %954 = vst [vmem:[#allocation2 + $0xa0] sm:$0xff] %v801_v20 }
 0x208   : > { %v882_v22 = vpop.f32.mrf.mxu2  ;;  %v923_v27 = vpop.f32.mrf.mxu3  ;;  %955 = vst [vmem:[#allocation2 + $0xf8] sm:$0xff] %v842_v21 }
 0x209   : > { %v883_v28 = vadd.f32 %v882_v22, %v3277_v25  ;;  %v924_v29 = vadd.f32 %v923_v27, %v3280_v26 }
 0x20b   : > { %956 = vst [vmem:[#allocation2 + $0x20] sm:$0xff] %v883_v28 }
 0x20c   : > { %957 = vst [vmem:[#allocation2 + $0x98] sm:$0xff] %v924_v29 }
 0x20d PF: > { %v3314_v23 = vld [vmem:[%s3085_s4 + $0x1e0] sm:$0xff]  ;;  %v3317_v24 = vld [vmem:[%s3085_s4 + $0x1e8] sm:$0xff]  ;;  %v3320_v25 = vld [vmem:[%s3085_s4 + $0x1f8] sm:$0xff]  ;;  %p2373_p3 = scmp.ne.s32.totalorder %s2902_s24, 1 }
 0x20e   : > { %4359 = vst [vmem:[#allocation22_spill] sm:$0xff] %v3314_v23  ;;  %1073 = vmatpush.msra.mxu0 %v3314_v23  ;;  %1093 = vmatpush.msra.mxu1 %v3317_v24  ;;  %v3325_v26 = vld [vmem:[%s3085_s4 + $0x1c0] sm:$0xff]  ;;  %v3328_v30 = vld [vmem:[%s3085_s4 + $0x1c8] sm:$0xff]  ;;  %v3331_v31 = vld [vmem:[%s3085_s4 + $0x1d8] sm:$0xff]  ;;  %s4493_s15 = sld [smem:[#allocation62_spill]] (!%p2373_p3) }
 0x20f   : > { %4360 = vst [vmem:[#allocation23_spill] sm:$0xff] %v3317_v24  ;;  %1133 = vmatpush.msra.mxu3 %v3320_v25  ;;  %v3335_v32 = vld [vmem:[%s3085_s4 + $0x1a0] sm:$0xff]  ;;  %v3338_v33 = vld [vmem:[%s3085_s4 + $0x1a8] sm:$0xff]  ;;  %v3343_v34 = vld [vmem:[%s3085_s4 + $0x1b8] sm:$0xff] }
 0x210   : > { %4361 = vst [vmem:[#allocation24_spill] sm:$0xff] %v3320_v25  ;;  %1074 = vmatpush.msra.mxu0 %v3325_v26  ;;  %1094 = vmatpush.msra.mxu1 %v3328_v30  ;;  %v3347_v35 = vld [vmem:[%s3085_s4 + $0x180] sm:$0xff]  ;;  %v3350_v36 = vld [vmem:[%s3085_s4 + $0x188] sm:$0xff]  ;;  %v3355_v0 = vld [vmem:[%s3085_s4 + $0x198] sm:$0xff] }
 0x211   : > { %4362 = vst [vmem:[#allocation25_spill] sm:$0xff] %v3325_v26  ;;  %1134 = vmatpush.msra.mxu3 %v3331_v31  ;;  %v3359_v37 = vld [vmem:[%s3085_s4 + $0x160] sm:$0xff]  ;;  %v3362_v38 = vld [vmem:[%s3085_s4 + $0x168] sm:$0xff]  ;;  %v3367_v39 = vld [vmem:[%s3085_s4 + $0x178] sm:$0xff] }
 0x212   : > { %4363 = vst [vmem:[#allocation26_spill] sm:$0xff] %v3328_v30  ;;  %1075 = vmatpush.msra.mxu0 %v3335_v32  ;;  %1095 = vmatpush.msra.mxu1 %v3338_v33  ;;  %v3371_v40 = vld [vmem:[%s3085_s4 + $0x140] sm:$0xff]  ;;  %v3374_v41 = vld [vmem:[%s3085_s4 + $0x148] sm:$0xff]  ;;  %v3377_v42 = vld [vmem:[%s3085_s4 + $0x1f0] sm:$0xff] }
 0x213   : > { %4364 = vst [vmem:[#allocation27_spill] sm:$0xff] %v3331_v31  ;;  %1135 = vmatpush.msra.mxu3 %v3343_v34  ;;  %v3382_v43 = vld [vmem:[%s3085_s4 + $0x158] sm:$0xff]  ;;  %v3385_v44 = vld [vmem:[%s3085_s4 + $0x1d0] sm:$0xff]  ;;  %v3389_v45 = vld [vmem:[%s3085_s4 + $0x120] sm:$0xff]  ;;  %1113 = vmatpush.msra.mxu2 %v3377_v42 }
 0x214   : > { %4365 = vst [vmem:[#allocation28_spill] sm:$0xff] %v3335_v32  ;;  %1076 = vmatpush.msra.mxu0 %v3347_v35  ;;  %1096 = vmatpush.msra.mxu1 %v3350_v36  ;;  %v3392_v46 = vld [vmem:[%s3085_s4 + $0x128] sm:$0xff]  ;;  %v3398_v47 = vld [vmem:[%s3085_s4 + $0x138] sm:$0xff]  ;;  %v3401_v48 = vld [vmem:[%s3085_s4 + $0x1b0] sm:$0xff] }
 0x215   : > { %4366 = vst [vmem:[#allocation29_spill] sm:$0xff] %v3343_v34  ;;  %1136 = vmatpush.msra.mxu3 %v3355_v0  ;;  %v3405_v49 = vld [vmem:[%s3085_s4 + $0x100] sm:$0xff]  ;;  %v3408_v50 = vld [vmem:[%s3085_s4 + $0x108] sm:$0xff]  ;;  %1114 = vmatpush.msra.mxu2 %v3385_v44  ;;  %v3414_v51 = vld [vmem:[%s3085_s4 + $0x118] sm:$0xff] }
 0x216   : > { %4367 = vst [vmem:[#allocation30_spill] sm:$0xff] %v3347_v35  ;;  %1077 = vmatpush.msra.mxu0 %v3359_v37  ;;  %1097 = vmatpush.msra.mxu1 %v3362_v38  ;;  %v3417_v52 = vld [vmem:[%s3085_s4 + $0x190] sm:$0xff]  ;;  %v3421_v53 = vld [vmem:[%s3085_s4 + $0xe0] sm:$0xff]  ;;  %v3424_v54 = vld [vmem:[%s3085_s4 + $0xe8] sm:$0xff] }
 0x217   : > { %4368 = vst [vmem:[#allocation31_spill] sm:$0xff] %v3371_v40  ;;  %1137 = vmatpush.msra.mxu3 %v3367_v39  ;;  %1115 = vmatpush.msra.mxu2 %v3401_v48  ;;  %v3430_v55 = vld [vmem:[%s3085_s4 + $0xf8] sm:$0xff]  ;;  %v3433_v56 = vld [vmem:[%s3085_s4 + $0x170] sm:$0xff]  ;;  %v3437_v57 = vld [vmem:[%s3085_s4 + $0xc0] sm:$0xff] }
 0x218   : > { %4369 = vst [vmem:[#allocation32_spill] sm:$0xff] %v3382_v43  ;;  %1078 = vmatpush.msra.mxu0 %v3371_v40  ;;  %1098 = vmatpush.msra.mxu1 %v3374_v41  ;;  %v3440_v58 = vld [vmem:[%s3085_s4 + $0xc8] sm:$0xff]  ;;  %v3446_v59 = vld [vmem:[%s3085_s4 + $0xd8] sm:$0xff]  ;;  %v3449_v60 = vld [vmem:[%s3085_s4 + $0x150] sm:$0xff] }
 0x219   : > { %1138 = vmatpush.msra.mxu3 %v3382_v43  ;;  %1116 = vmatpush.msra.mxu2 %v3417_v52  ;;  %4370 = vst [vmem:[#allocation33_spill] sm:$0xff] %v3446_v59  ;;  %v3453_v61 = vld [vmem:[%s3085_s4 + $0xa0] sm:$0xff]  ;;  %v3456_v62 = vld [vmem:[%s3085_s4 + $0xa8] sm:$0xff]  ;;  %v1022_v63 = vld [vmem:[#allocation2 + $0xb0] sm:$0xff] }
 0x21a   : > { %1079 = vmatpush.msra.mxu0 %v3389_v45  ;;  %1099 = vmatpush.msra.mxu1 %v3392_v46  ;;  %4371 = vst [vmem:[#allocation34_spill] sm:$0xff] %v3453_v61  ;;  %v3462_v1 = vld [vmem:[%s3085_s4 + $0xb8] sm:$0xff]  ;;  %v3465_v2 = vld [vmem:[%s3085_s4 + $0x130] sm:$0xff]  ;;  %v2350_v4 = vmul.f32 -1.442695, %v1022_v63  ;;  %v3469_v5 = vld [vmem:[%s3085_s4 + $0x80] sm:$0xff] }
 0x21b   : > { %1139 = vmatpush.msra.mxu3 %v3398_v47  ;;  %4372 = vst [vmem:[#allocation35_spill] sm:$0xff] %v3456_v62  ;;  %1117 = vmatpush.msra.mxu2 %v3433_v56  ;;  %v1024_v3 = vld [vmem:[#allocation2 + $0x18] sm:$0xff]  ;;  %v3472_v6 = vld [vmem:[%s3085_s4 + $0x88] sm:$0xff]  ;;  %v3481_v9 = vld [vmem:[%s3085_s4 + $0x110] sm:$0xff] }
 0x21c   : > { %1080 = vmatpush.msra.mxu0 %v3405_v49  ;;  %1100 = vmatpush.msra.mxu1 %v3408_v50  ;;  %4373 = vst [vmem:[#allocation36_spill] sm:$0xff] %v3462_v1  ;;  %v2351_v7 = vmul.f32 -1.442695, %v1024_v3  ;;  %v3478_v8 = vld [vmem:[%s3085_s4 + $0x98] sm:$0xff]  ;;  %2477 = vpow2.f32 %v2350_v4  ;;  %v3485_v14 = vld [vmem:[%s3085_s4 + $0x60] sm:$0xff]  ;;  %v3488_v15 = vld [vmem:[%s3085_s4 + $0x68] sm:$0xff] }
 0x21d   : > { %1140 = vmatpush.msra.mxu3 %v3414_v51  ;;  %4374 = vst [vmem:[#allocation37_spill] sm:$0xff] %v3469_v5  ;;  %1118 = vmatpush.msra.mxu2 %v3449_v60  ;;  %v3494_v16 = vld [vmem:[%s3085_s4 + $0x78] sm:$0xff]  ;;  %v3498_v17 = vld [vmem:[%s3085_s4 + $0x40] sm:$0xff]  ;;  %v3501_v10 = vld [vmem:[%s3085_s4 + $0x48] sm:$0xff] }
 0x21e   : > { %1081 = vmatpush.msra.mxu0 %v3421_v53  ;;  %1101 = vmatpush.msra.mxu1 %v3424_v54  ;;  %4375 = vst [vmem:[#allocation38_spill] sm:$0xff] %v3472_v6  ;;  %2479 = vpow2.f32 %v2351_v7  ;;  %v3507_v11 = vld [vmem:[%s3085_s4 + $0x58] sm:$0xff]  ;;  %v3510_v12 = vld [vmem:[%s3085_s4 + $0xf0] sm:$0xff]  ;;  %v3514_v13 = vld [vmem:[%s3085_s4 + $0x20] sm:$0xff] }
 0x21f   : > { %1141 = vmatpush.msra.mxu3 %v3430_v55  ;;  %4376 = vst [vmem:[#allocation39_spill] sm:$0xff] %v3478_v8  ;;  %1119 = vmatpush.msra.mxu2 %v3465_v2  ;;  %v3517_v18 = vld [vmem:[%s3085_s4 + $0x28] sm:$0xff]  ;;  %v3523_v20 = vld [vmem:[%s3085_s4 + $0x38] sm:$0xff]  ;;  %v3526_v21 = vld [vmem:[%s3085_s4 + $0xd0] sm:$0xff] }
 0x220   : > { %1082 = vmatpush.msra.mxu0 %v3437_v57  ;;  %1102 = vmatpush.msra.mxu1 %v3440_v58  ;;  %4377 = vst [vmem:[#allocation40_spill] sm:$0xff] %v3485_v14  ;;  %v3529_v22 = vld [vmem:[%s3085_s4 + $0xb0] sm:$0xff]  ;;  %v3533_v28 = vld [vmem:[%s3085_s4] sm:$0xff]  ;;  %v3536_v29 = vld [vmem:[%s3085_s4 + $0x8] sm:$0xff] }
 0x221   : > { %1142 = vmatpush.msra.mxu3 %v3446_v59  ;;  %4378 = vst [vmem:[#allocation41_spill] sm:$0xff] %v3488_v15  ;;  %1120 = vmatpush.msra.mxu2 %v3481_v9  ;;  %v3542_v3 = vld [vmem:[%s3085_s4 + $0x18] sm:$0xff]  ;;  %v3547_v7 = vld [vmem:[%s3085_s4 + $0x90] sm:$0xff] }
 0x222   : > { %1083 = vmatpush.msra.mxu0 %v3453_v61  ;;  %1103 = vmatpush.msra.mxu1 %v3456_v62  ;;  %4379 = vst [vmem:[#allocation42_spill] sm:$0xff] %v3494_v16  ;;  %v2478_v19 = vpop.eup %2477 }
 0x223   : > { %1143 = vmatpush.msra.mxu3 %v3462_v1  ;;  %4380 = vst [vmem:[#allocation43_spill] sm:$0xff] %v3498_v17  ;;  %1121 = vmatpush.msra.mxu2 %v3510_v12  ;;  %v1028_v63 = vadd.f32 1.0, %v2478_v19  ;;  %v3555_v19 = vld [vmem:[%s3085_s4 + $0x70] sm:$0xff] }
 0x224   : > { %1084 = vmatpush.msra.mxu0 %v3469_v5  ;;  %1104 = vmatpush.msra.mxu1 %v3472_v6  ;;  %4381 = vst [vmem:[#allocation44_spill] sm:$0xff] %v3501_v10  ;;  %v2480_v27 = vpop.eup %2479 }
 0x225   : > { %1144 = vmatpush.msra.mxu3 %v3478_v8  ;;  %4382 = vst [vmem:[#allocation45_spill] sm:$0xff] %v3507_v11  ;;  %1122 = vmatpush.msra.mxu2 %v3526_v21  ;;  %v3544_v4 = vadd.f32 1.0, %v2480_v27  ;;  %2481 = vrcp.f32 %v1028_v63  ;;  %v3560_v27 = vld [vmem:[%s3085_s4 + $0x50] sm:$0xff]  ;;  %vm1034_vm0 = vweird.f32 %v1028_v63 }
 0x226   : > { %1085 = vmatpush.msra.mxu0 %v3485_v14  ;;  %1105 = vmatpush.msra.mxu1 %v3488_v15  ;;  %4383 = vst [vmem:[#allocation46_spill] sm:$0xff] %v3514_v13 }
 0x227   : > { %1145 = vmatpush.msra.mxu3 %v3494_v16  ;;  %4384 = vst [vmem:[#allocation47_spill] sm:$0xff] %v3517_v18  ;;  %1123 = vmatpush.msra.mxu2 %v3529_v22  ;;  %2483 = vrcp.f32 %v3544_v4  ;;  %vm1054_vm4 = vweird.f32 %v3544_v4 }
 0x228   : > { %1086 = vmatpush.msra.mxu0 %v3498_v17  ;;  %1106 = vmatpush.msra.mxu1 %v3501_v10  ;;  %4385 = vst [vmem:[#allocation48_spill] sm:$0xff] %v3523_v20 }
 0x229   : > { %4386 = vst [vmem:[#allocation49_spill] sm:$0xff] %v3526_v21  ;;  %1146 = vmatpush.msra.mxu3 %v3507_v11  ;;  %1124 = vmatpush.msra.mxu2 %v3547_v7 }
 0x22a   : > { %4387 = vst [vmem:[#allocation50_spill] sm:$0xff] %v3529_v22  ;;  %1087 = vmatpush.msra.mxu0 %v3514_v13  ;;  %1107 = vmatpush.msra.mxu1 %v3517_v18 }
 0x22b   : > { %4388 = vst [vmem:[#allocation51_spill] sm:$0xff] %v3533_v28  ;;  %1147 = vmatpush.msra.mxu3 %v3523_v20  ;;  %1125 = vmatpush.msra.mxu2 %v3555_v19 }
 0x22c   : > { %4389 = vst [vmem:[#allocation52_spill] sm:$0xff] %v3536_v29  ;;  %1088 = vmatpush.msra.mxu0 %v3533_v28  ;;  %1108 = vmatpush.msra.mxu1 %v3536_v29  ;;  %v1023_v29 = vld [vmem:[#allocation2 + $0xd8] sm:$0xff]  ;;  %v3567_v28 = vld [vmem:[%s3085_s4 + $0x30] sm:$0xff] }
 0x22d   : > { %4390 = vst [vmem:[#allocation53_spill] sm:$0xff] %v3542_v3  ;;  %1148 = vmatpush.msra.mxu3 %v3542_v3  ;;  %v2482_v3 = vpop.eup %2481  ;;  %1126 = vmatpush.msra.mxu2 %v3560_v27  ;;  %2485 = vtanh.f32 %v1023_v29 }
 0x22e   : > { %4391 = vst [vmem:[#allocation54_spill] sm:$0xff] %v3547_v7  ;;  %1227 = vmatpush.msrb.mxu0 %v3314_v23  ;;  %1247 = vmatpush.msrb.mxu1 %v3317_v24  ;;  %v3573_v20 = vpop.eup %2483  ;;  %v1030_v23 = vmul.f32 %v2482_v3, %v1028_v63  ;;  %v3576_v24 = vld [vmem:[%s3085_s4 + $0x10] sm:$0xff]  ;;  %vm1035_vm1 = vweird.f32 %v2482_v3 }
 0x22f   : > { %4392 = vst [vmem:[#allocation55_spill] sm:$0xff] %v3555_v19  ;;  %1287 = vmatpush.msrb.mxu3 %v3320_v25  ;;  %v1040_v25 = vand.u32 2147483648, %v1028_v63  ;;  %1127 = vmatpush.msra.mxu2 %v3567_v28  ;;  %vm3590_vm2 = vmor %vm1034_vm0, %vm1035_vm1  ;;  %vm1055_vm5 = vweird.f32 %v3573_v20 }
 0x230   : > { %4393 = vst [vmem:[#allocation56_spill] sm:$0xff] %v3560_v27  ;;  %1228 = vmatpush.msrb.mxu0 %v3325_v26  ;;  %1248 = vmatpush.msrb.mxu1 %v3328_v30  ;;  %v1050_v26 = vmul.f32 %v3573_v20, %v3544_v4  ;;  %v1031_v30 = vsub.f32 1.0, %v1030_v23  ;;  %vm3612_vm6 = vmor %vm1054_vm4, %vm1055_vm5 }
 0x231   : > { %4394 = vst [vmem:[#allocation57_spill] sm:$0xff] %v3567_v28  ;;  %1288 = vmatpush.msrb.mxu3 %v3331_v31  ;;  %v1038_v31 = vand.u32 2147483647, %v1028_v63  ;;  %1128 = vmatpush.msra.mxu2 %v3576_v24  ;;  %v1041_v23 = vor.u32 1.1754944e-38, %v1040_v25 }
 0x232   : > { %4395 = vst [vmem:[#allocation58_spill] sm:$0xff] %v3576_v24  ;;  %1229 = vmatpush.msrb.mxu0 %v3335_v32  ;;  %1249 = vmatpush.msrb.mxu1 %v3338_v33  ;;  %v1051_v32 = vsub.f32 1.0, %v1050_v26  ;;  %v1032_v29 = vmul.f32 %v2482_v3, %v1031_v30 }
 0x233   : > { %1289 = vmatpush.msrb.mxu3 %v3343_v34  ;;  %1267 = vmatpush.msrb.mxu2 %v3377_v42  ;;  %vm1039_vm3 = vcmp.eq.f32.partialorder %v1038_v31, 8.507059e+37  ;;  %v2486_v30 = vpop.eup %2485 }
 0x234   : > { %1230 = vmatpush.msrb.mxu0 %v3347_v35  ;;  %1250 = vmatpush.msrb.mxu1 %v3350_v36  ;;  %v1052_v63 = vmul.f32 %v3573_v20, %v1051_v32  ;;  %v1033_v26 = vadd.f32 %v2482_v3, %v1032_v29  ;;  %v1060_v32 = vand.u32 2147483648, %v3544_v4 }
 0x235   : > { %1290 = vmatpush.msrb.mxu3 %v3355_v0  ;;  %1268 = vmatpush.msrb.mxu2 %v3385_v44 }
 0x236   : > { %1231 = vmatpush.msrb.mxu0 %v3359_v37  ;;  %1251 = vmatpush.msrb.mxu1 %v3362_v38  ;;  %v1037_v25 = vsel %vm3590_vm2, %v2482_v3, %v1033_v26  ;;  %v1053_v29 = vadd.f32 %v3573_v20, %v1052_v63  ;;  %v1061_v3 = vor.u32 1.1754944e-38, %v1060_v32  ;;  %v4401_v63 = vld [vmem:[#allocation51_spill] sm:$0xff]  ;;  %v4402_v26 = vld [vmem:[#allocation52_spill] sm:$0xff] }
 0x237   : > { %1291 = vmatpush.msrb.mxu3 %v3367_v39  ;;  %1269 = vmatpush.msrb.mxu2 %v3401_v48  ;;  %v1042_v31 = vsel %vm1039_vm3, %v1041_v23, %v1037_v25  ;;  %v4404_v25 = vld [vmem:[#allocation22_spill] sm:$0xff]  ;;  %v4405_v32 = vld [vmem:[#allocation23_spill] sm:$0xff] }
 0x238   : > { %1232 = vmatpush.msrb.mxu0 %v3371_v40  ;;  %1252 = vmatpush.msrb.mxu1 %v3374_v41  ;;  %v1058_v40 = vand.u32 2147483647, %v3544_v4  ;;  %v3616_v34 = vmul.f32 %v2486_v30, %v1042_v31  ;;  %v1057_v4 = vsel %vm3612_vm6, %v3573_v20, %v1053_v29  ;;  %v4400_v20 = vld [vmem:[#allocation48_spill] sm:$0xff]  ;;  %v4403_v30 = vld [vmem:[#allocation53_spill] sm:$0xff] }
 0x239   : > { %1292 = vmatpush.msrb.mxu3 %v3382_v43  ;;  %1270 = vmatpush.msrb.mxu2 %v3417_v52  ;;  %v4406_v31 = vld [vmem:[#allocation24_spill] sm:$0xff]  ;;  %v4407_v29 = vld [vmem:[#allocation25_spill] sm:$0xff] }
 0x23a   : > { %1233 = vmatpush.msrb.mxu0 %v3389_v45  ;;  %1253 = vmatpush.msrb.mxu1 %v3392_v46  ;;  %2487 = vtanh.f32 %v3616_v34  ;;  %vm1059_vm7 = vcmp.eq.f32.partialorder %v1058_v40, 8.507059e+37 }
 0x23b   : > { %1293 = vmatpush.msrb.mxu3 %v3398_v47  ;;  %1271 = vmatpush.msrb.mxu2 %v3433_v56  ;;  %v1062_v23 = vsel %vm1059_vm7, %v1061_v3, %v1057_v4  ;;  %v4408_v3 = vld [vmem:[#allocation26_spill] sm:$0xff]  ;;  %v4409_v4 = vld [vmem:[#allocation27_spill] sm:$0xff] }
 0x23c   : > { %1234 = vmatpush.msrb.mxu0 %v3405_v49  ;;  %1254 = vmatpush.msrb.mxu1 %v3408_v50 }
 0x23d   : > { %1294 = vmatpush.msrb.mxu3 %v3414_v51  ;;  %1272 = vmatpush.msrb.mxu2 %v3449_v60 }
 0x23e   : > { %1235 = vmatpush.msrb.mxu0 %v3421_v53  ;;  %1255 = vmatpush.msrb.mxu1 %v3424_v54 }
 0x23f   : > { %1295 = vmatpush.msrb.mxu3 %v3430_v55  ;;  %1273 = vmatpush.msrb.mxu2 %v3465_v2 }
 0x240   : > { %1236 = vmatpush.msrb.mxu0 %v3437_v57  ;;  %1256 = vmatpush.msrb.mxu1 %v3440_v58  ;;  %v2488_v40 = vpop.eup %2487 }
 0x241   : > { %1296 = vmatpush.msrb.mxu3 %v3446_v59  ;;  %1274 = vmatpush.msrb.mxu2 %v3481_v9  ;;  %v1066_v43 = vmul.f32 %v2488_v40, %v1062_v23  ;;  %v4410_v23 = vld [vmem:[#allocation28_spill] sm:$0xff]  ;;  %v4411_v40 = vld [vmem:[#allocation29_spill] sm:$0xff] }
 0x242   : > { %1237 = vmatpush.msrb.mxu0 %v3453_v61  ;;  %1257 = vmatpush.msrb.mxu1 %v3456_v62 }
 0x243   : > { %1297 = vmatpush.msrb.mxu3 %v3462_v1  ;;  %1275 = vmatpush.msrb.mxu2 %v3510_v12  ;;  %1067 = vst [vmem:[#allocation3] sm:$0xff] %v1066_v43 }
 0x244   : > { %1238 = vmatpush.msrb.mxu0 %v3469_v5  ;;  %1258 = vmatpush.msrb.mxu1 %v3472_v6 }
 0x245   : > { %1298 = vmatpush.msrb.mxu3 %v3478_v8  ;;  %1089 = vmatmul.f32.vlgmr.msra.gmra.mxu0 %v1066_v43 }
 0x246   : > { %1239 = vmatpush.msrb.mxu0 %v3485_v14  ;;  %1109 = vmatmul.f32.vlgmr.msra.gmra.mxu1 %v1066_v43 }
 0x247   : > { %1149 = vmatmul.f32.vlgmr.msra.gmra.mxu3 %v1066_v43  ;;  %1129 = vmatmul.f32.vlgmr.msra.gmra.mxu2 %v1066_v43  ;;  %v4412_v43 = vld [vmem:[#allocation31_spill] sm:$0xff] }
 0x248   : > { %1276 = vmatpush.msrb.mxu2 %v3526_v21  ;;  %1259 = vmatpush.msrb.mxu1 %v3488_v15 }
 0x249   : > { %1299 = vmatpush.msrb.mxu3 %v3494_v16  ;;  %1240 = vmatpush.msrb.mxu0 %v3498_v17 }
 0x24a   : > { %1277 = vmatpush.msrb.mxu2 %v3529_v22  ;;  %1260 = vmatpush.msrb.mxu1 %v3501_v10 }
 0x24b   : > { %1300 = vmatpush.msrb.mxu3 %v3507_v11  ;;  %1241 = vmatpush.msrb.mxu0 %v3514_v13 }
 0x24c   : > { %1278 = vmatpush.msrb.mxu2 %v3547_v7  ;;  %1261 = vmatpush.msrb.mxu1 %v3517_v18 }
 0x24d   : > { %1301 = vmatpush.msrb.mxu3 %v4400_v20  ;;  %1242 = vmatpush.msrb.mxu0 %v4401_v63 }
 0x24e   : > { %1279 = vmatpush.msrb.mxu2 %v3555_v19  ;;  %1262 = vmatpush.msrb.mxu1 %v4402_v26 }
 0x24f   : > { %1302 = vmatpush.msrb.mxu3 %v4403_v30  ;;  %1381 = vmatpush.msra.mxu0 %v4404_v25 }
 0x250   : > { %1280 = vmatpush.msrb.mxu2 %v3560_v27  ;;  %1401 = vmatpush.msra.mxu1 %v4405_v32 }
 0x251   : > { %1441 = vmatpush.msra.mxu3 %v4406_v31  ;;  %1382 = vmatpush.msra.mxu0 %v4407_v29 }
 0x252   : > { %1281 = vmatpush.msrb.mxu2 %v3567_v28  ;;  %1402 = vmatpush.msra.mxu1 %v4408_v3 }
 0x253   : > { %1442 = vmatpush.msra.mxu3 %v4409_v4  ;;  %1383 = vmatpush.msra.mxu0 %v4410_v23 }
 0x254   : > { %1282 = vmatpush.msrb.mxu2 %v3576_v24  ;;  %1403 = vmatpush.msra.mxu1 %v3338_v33 }
 0x255   : > { %1443 = vmatpush.msra.mxu3 %v4411_v40  ;;  %1384 = vmatpush.msra.mxu0 %v3347_v35  ;;  %v4413_v35 = vld [vmem:[#allocation32_spill] sm:$0xff] }
 0x256   : > { %1421 = vmatpush.msra.mxu2 %v3377_v42  ;;  %1404 = vmatpush.msra.mxu1 %v3350_v36 }
 0x257   : > { %1444 = vmatpush.msra.mxu3 %v3355_v0  ;;  %1385 = vmatpush.msra.mxu0 %v3359_v37 }
 0x258   : > { %1422 = vmatpush.msra.mxu2 %v3385_v44  ;;  %1405 = vmatpush.msra.mxu1 %v3362_v38 }
 0x259   : > { %1445 = vmatpush.msra.mxu3 %v3367_v39  ;;  %1386 = vmatpush.msra.mxu0 %v4412_v43 }
 0x25a   : > { %1423 = vmatpush.msra.mxu2 %v3401_v48  ;;  %1406 = vmatpush.msra.mxu1 %v3374_v41 }
 0x25b   : > { %1446 = vmatpush.msra.mxu3 %v4413_v35  ;;  %1387 = vmatpush.msra.mxu0 %v3389_v45 }
 0x25c   : > { %1424 = vmatpush.msra.mxu2 %v3417_v52  ;;  %1407 = vmatpush.msra.mxu1 %v3392_v46 }
 0x25d   : > { %1447 = vmatpush.msra.mxu3 %v3398_v47  ;;  %1388 = vmatpush.msra.mxu0 %v3405_v49 }
 0x25e   : > { %1425 = vmatpush.msra.mxu2 %v3433_v56  ;;  %1408 = vmatpush.msra.mxu1 %v3408_v50 }
 0x25f   : > { %1448 = vmatpush.msra.mxu3 %v3414_v51  ;;  %1389 = vmatpush.msra.mxu0 %v3421_v53 }
 0x260   : > { %1426 = vmatpush.msra.mxu2 %v3449_v60  ;;  %1409 = vmatpush.msra.mxu1 %v3424_v54 }
 0x261   : > { %1449 = vmatpush.msra.mxu3 %v3430_v55  ;;  %1390 = vmatpush.msra.mxu0 %v3437_v57 }
 0x262   : > { %1427 = vmatpush.msra.mxu2 %v3465_v2  ;;  %1410 = vmatpush.msra.mxu1 %v3440_v58 }
 0x263   : > { %1450 = vmatpush.msra.mxu3 %v3446_v59  ;;  %1391 = vmatpush.msra.mxu0 %v3453_v61 }
 0x264   : > { %1428 = vmatpush.msra.mxu2 %v3481_v9  ;;  %1411 = vmatpush.msra.mxu1 %v3456_v62 }
 0x265   : > { %1451 = vmatpush.msra.mxu3 %v3462_v1  ;;  %1392 = vmatpush.msra.mxu0 %v3469_v5 }
 0x266   : > { %1429 = vmatpush.msra.mxu2 %v3510_v12  ;;  %1412 = vmatpush.msra.mxu1 %v3472_v6 }
 0x267   : > { %1452 = vmatpush.msra.mxu3 %v3478_v8  ;;  %1393 = vmatpush.msra.mxu0 %v3485_v14 }
 0x268   : > { %1430 = vmatpush.msra.mxu2 %v3526_v21  ;;  %1413 = vmatpush.msra.mxu1 %v3488_v15 }
 0x269   : > { %1453 = vmatpush.msra.mxu3 %v3494_v16  ;;  %1394 = vmatpush.msra.mxu0 %v3498_v17 }
 0x26a   : > { %1431 = vmatpush.msra.mxu2 %v3529_v22  ;;  %1414 = vmatpush.msra.mxu1 %v3501_v10 }
 0x26b   : > { %1454 = vmatpush.msra.mxu3 %v3507_v11  ;;  %1395 = vmatpush.msra.mxu0 %v3514_v13  ;;  %v1069_v11 = vld [vmem:[#allocation2 + $0x50] sm:$0xff]  ;;  %v1070_v13 = vld [vmem:[#allocation2 + $0x68] sm:$0xff] }
 0x26c   : > { %1432 = vmatpush.msra.mxu2 %v3547_v7  ;;  %1415 = vmatpush.msra.mxu1 %v3517_v18 }
 0x26d   : > { %1455 = vmatpush.msra.mxu3 %v4400_v20  ;;  %1396 = vmatpush.msra.mxu0 %v4401_v63  ;;  %v1072_v63 = vld [vmem:[#allocation2 + $0x48] sm:$0xff] }
 0x26e   : > { %1433 = vmatpush.msra.mxu2 %v3555_v19  ;;  %1416 = vmatpush.msra.mxu1 %v4402_v26 }
 0x26f   : > { %1456 = vmatpush.msra.mxu3 %v4403_v30 }
 0x270   : > { %1434 = vmatpush.msra.mxu2 %v3560_v27 }
 0x272   : > { %1435 = vmatpush.msra.mxu2 %v3567_v28 }
 0x274   : > { %1436 = vmatpush.msra.mxu2 %v3576_v24  ;;  %v1071_v24 = vld [vmem:[#allocation2 + $0x30] sm:$0xff] }
 0x2c2   : > { %v1090_v10 = vpop.f32.mrf.mxu0 }
 0x2c3   : > { %v1110_v18 = vpop.f32.mrf.mxu1  ;;  %v1153_v17 = vadd.f32 %v1090_v10, %v1069_v11 }
 0x2c4   : > { %v1154_v16 = vadd.f32 %v1110_v18, %v1070_v13 }
 0x2c5   : > { %v2352_v19 = vmul.f32 -1.442695, %v1153_v17 }
 0x2c6   : > { %v2353_v20 = vmul.f32 -1.442695, %v1154_v16 }
 0x2c7   : > { %2489 = vpow2.f32 %v2352_v19 }
 0x2c8   : > { %2491 = vpow2.f32 %v2353_v20 }
 0x2ca   : > { %v1150_v26 = vpop.f32.mrf.mxu3  ;;  %v1130_v7 = vpop.f32.mrf.mxu2 }
 0x2cb   : > { %v1156_v15 = vadd.f32 %v1150_v26, %v1072_v63  ;;  %v1155_v10 = vadd.f32 %v1130_v7, %v1071_v24 }
 0x2cd   : > { %v2354_v27 = vmul.f32 -1.442695, %v1156_v15  ;;  %v2490_v14 = vpop.eup %2489 }
 0x2ce   : > { %v2492_v30 = vpop.eup %2491  ;;  %v1160_v8 = vadd.f32 1.0, %v2490_v14 }
 0x2cf   : > { %2493 = vpow2.f32 %v2354_v27  ;;  %v1179_v28 = vadd.f32 1.0, %v2492_v30 }
 0x2d0   : > { %2495 = vrcp.f32 %v1160_v8  ;;  %v1172_v20 = vand.u32 2147483648, %v1160_v8  ;;  %v1170_v27 = vand.u32 2147483647, %v1160_v8  ;;  %vm1166_vm10 = vweird.f32 %v1160_v8 }
 0x2d1   : > { %2497 = vrcp.f32 %v1179_v28  ;;  %v1191_v63 = vand.u32 2147483648, %v1179_v28  ;;  %v1189_v30 = vand.u32 2147483647, %v1179_v28  ;;  %vm1185_vm11 = vweird.f32 %v1179_v28 }
 0x2d2   : > { %v1173_v7 = vor.u32 1.1754944e-38, %v1172_v20  ;;  %vm1171_vm14 = vcmp.eq.f32.partialorder %v1170_v27, 8.507059e+37  ;;  %v1226_v27 = vld [vmem:[#allocation2 + $0xb8] sm:$0xff] }
 0x2d3   : > { %vm1190_vm15 = vcmp.eq.f32.partialorder %v1189_v30, 8.507059e+37 }
 0x2d5   : > { %v2494_v6 = vpop.eup %2493 }
 0x2d6   : > { %v1199_v11 = vadd.f32 1.0, %v2494_v6  ;;  %v2496_v17 = vpop.eup %2495 }
 0x2d7   : > { %v2498_v16 = vpop.eup %2497  ;;  %v1162_v13 = vmul.f32 %v2496_v17, %v1160_v8  ;;  %vm1167_vm8 = vweird.f32 %v2496_v17 }
 0x2d8   : > { %2499 = vrcp.f32 %v1199_v11  ;;  %v1181_v18 = vmul.f32 %v2498_v16, %v1179_v28  ;;  %vm1186_vm9 = vweird.f32 %v2498_v16  ;;  %vm1168_vm12 = vmor %vm1166_vm10, %vm1167_vm8  ;;  %v1211_v21 = vand.u32 2147483648, %v1199_v11 }
 0x2d9   : > { %2501 = vtanh.f32 %v1155_v10  ;;  %v1163_v19 = vsub.f32 1.0, %v1162_v13  ;;  %vm1187_vm13 = vmor %vm1185_vm11, %vm1186_vm9  ;;  %v1192_v10 = vor.u32 1.1754944e-38, %v1191_v63  ;;  %vm1205_vm1 = vweird.f32 %v1199_v11 }
 0x2da   : > { %v1182_v15 = vsub.f32 1.0, %v1181_v18  ;;  %v1209_v20 = vand.u32 2147483647, %v1199_v11 }
 0x2db   : > { %v1164_v14 = vmul.f32 %v2496_v17, %v1163_v19 }
 0x2dc   : > { %v1183_v26 = vmul.f32 %v2498_v16, %v1182_v15  ;;  %vm1210_vm3 = vcmp.eq.f32.partialorder %v1209_v20, 8.507059e+37 }
 0x2dd   : > { %v1165_v1 = vadd.f32 %v2496_v17, %v1164_v14 }
 0x2de   : > { %v2500_v5 = vpop.eup %2499  ;;  %v1184_v22 = vadd.f32 %v2498_v16, %v1183_v26 }
 0x2df   : > { %v2502_v24 = vpop.eup %2501  ;;  %v1201_v6 = vmul.f32 %v2500_v5, %v1199_v11  ;;  %v1169_v13 = vsel %vm1168_vm12, %v2496_v17, %v1165_v1  ;;  %vm1206_vm0 = vweird.f32 %v2500_v5  ;;  %v1212_v17 = vor.u32 1.1754944e-38, %v1211_v21  ;;  %v4436_v21 = vld [vmem:[#allocation48_spill] sm:$0xff] }
 0x2e0   : > { %v1174_v19 = vsel %vm1171_vm14, %v1173_v7, %v1169_v13  ;;  %v1188_v62 = vsel %vm1187_vm13, %v2498_v16, %v1184_v22  ;;  %vm1207_vm2 = vmor %vm1205_vm1, %vm1206_vm0 }
 0x2e1   : > { %v1202_v18 = vsub.f32 1.0, %v1201_v6  ;;  %v1193_v15 = vsel %vm1190_vm15, %v1192_v10, %v1188_v62  ;;  %v1216_v61 = vmul.f32 %v2502_v24, %v1174_v19 }
 0x2e2   : > { %v1215_v14 = vmul.f32 %v1193_v15, %v3616_v34  ;;  %v4437_v34 = vld [vmem:[#allocation51_spill] sm:$0xff] }
 0x2e3   : > { %v1203_v59 = vmul.f32 %v2500_v5, %v1202_v18  ;;  %v1225_v18 = vld [vmem:[#allocation2 + $0xe8] sm:$0xff] }
 0x2e4   : > { %v3727_v8 = vadd.f32 %v1216_v61, %v1215_v14  ;;  %v4434_v61 = vld [vmem:[#allocation47_spill] sm:$0xff] }
 0x2e5   : > { %v1204_v28 = vadd.f32 %v2500_v5, %v1203_v59  ;;  %v4414_v59 = vld [vmem:[#allocation30_spill] sm:$0xff] }
 0x2e6   : > { %2503 = vtanh.f32 %v3727_v8 }
 0x2e7   : > { %v1208_v1 = vsel %vm1207_vm2, %v2500_v5, %v1204_v28  ;;  %v4435_v5 = vld [vmem:[#allocation57_spill] sm:$0xff] }
 0x2e8   : > { %v1213_v16 = vsel %vm1210_vm3, %v1212_v17, %v1208_v1 }
 0x2ec   : > { %v2504_v22 = vpop.eup %2503 }
 0x2ed   : > { %v1219_v62 = vmul.f32 %v2504_v22, %v1213_v16 }
 0x2ef   : > { %1221 = vst [vmem:[#allocation3 + $0x8] sm:$0xff] %v1219_v62  ;;  %1243 = vmatmul.f32.vlgmr.msrb.gmra.mxu0 %v1219_v62  ;;  %1263 = vmatmul.f32.vlgmr.msrb.gmra.mxu1 %v1219_v62 }
 0x2f0   : > { %1283 = vmatmul.f32.vlgmr.msrb.gmra.mxu2 %v1219_v62  ;;  %1303 = vmatmul.f32.vlgmr.msrb.gmra.mxu3 %v1219_v62 }
 0x2f1   : > { %1535 = vmatpush.msrb.mxu0 %v4404_v25  ;;  %1555 = vmatpush.msrb.mxu1 %v4405_v32  ;;  %v4438_v25 = vld [vmem:[#allocation52_spill] sm:$0xff]  ;;  %v4439_v32 = vld [vmem:[#allocation58_spill] sm:$0xff] }
 0x2f2   : > { %1575 = vmatpush.msrb.mxu2 %v3377_v42  ;;  %1595 = vmatpush.msrb.mxu3 %v4406_v31  ;;  %v4440_v31 = vld [vmem:[#allocation53_spill] sm:$0xff] }
 0x2f3   : > { %1536 = vmatpush.msrb.mxu0 %v4407_v29  ;;  %1556 = vmatpush.msrb.mxu1 %v4408_v3  ;;  %v1223_v29 = vld [vmem:[#allocation2 + $0x80] sm:$0xff]  ;;  %v1224_v3 = vld [vmem:[#allocation2 + $0x88] sm:$0xff] }
 0x2f4   : > { %1576 = vmatpush.msrb.mxu2 %v3385_v44  ;;  %1596 = vmatpush.msrb.mxu3 %v4409_v4 }
 0x2f5   : > { %1537 = vmatpush.msrb.mxu0 %v4410_v23  ;;  %1557 = vmatpush.msrb.mxu1 %v3338_v33  ;;  %v4415_v33 = vld [vmem:[#allocation49_spill] sm:$0xff] }
 0x2f6   : > { %1577 = vmatpush.msrb.mxu2 %v3401_v48  ;;  %1597 = vmatpush.msrb.mxu3 %v4411_v40 }
 0x2f7   : > { %1538 = vmatpush.msrb.mxu0 %v4414_v59  ;;  %1558 = vmatpush.msrb.mxu1 %v3350_v36  ;;  %v4417_v36 = vld [vmem:[#allocation34_spill] sm:$0xff] }
 0x2f8   : > { %1578 = vmatpush.msrb.mxu2 %v3417_v52  ;;  %1598 = vmatpush.msrb.mxu3 %v3355_v0  ;;  %v4418_v0 = vld [vmem:[#allocation35_spill] sm:$0xff] }
 0x2f9   : > { %1539 = vmatpush.msrb.mxu0 %v3359_v37  ;;  %1559 = vmatpush.msrb.mxu1 %v3362_v38  ;;  %v4419_v37 = vld [vmem:[#allocation50_spill] sm:$0xff]  ;;  %v4420_v38 = vld [vmem:[#allocation36_spill] sm:$0xff] }
 0x2fa   : > { %1579 = vmatpush.msrb.mxu2 %v3433_v56  ;;  %1599 = vmatpush.msrb.mxu3 %v3367_v39  ;;  %v4421_v39 = vld [vmem:[#allocation37_spill] sm:$0xff] }
 0x2fb   : > { %1540 = vmatpush.msrb.mxu0 %v4412_v43  ;;  %1560 = vmatpush.msrb.mxu1 %v3374_v41  ;;  %v4422_v41 = vld [vmem:[#allocation38_spill] sm:$0xff] }
 0x2fc   : > { %1580 = vmatpush.msrb.mxu2 %v3449_v60  ;;  %1600 = vmatpush.msrb.mxu3 %v4413_v35  ;;  %v4416_v35 = vld [vmem:[#allocation33_spill] sm:$0xff] }
 0x2fd   : > { %1541 = vmatpush.msrb.mxu0 %v3389_v45  ;;  %1561 = vmatpush.msrb.mxu1 %v3392_v46  ;;  %v4423_v45 = vld [vmem:[#allocation54_spill] sm:$0xff]  ;;  %v4424_v46 = vld [vmem:[#allocation39_spill] sm:$0xff] }
 0x2fe   : > { %1581 = vmatpush.msrb.mxu2 %v3465_v2  ;;  %1601 = vmatpush.msrb.mxu3 %v3398_v47  ;;  %v4425_v47 = vld [vmem:[#allocation40_spill] sm:$0xff] }
 0x2ff   : > { %1542 = vmatpush.msrb.mxu0 %v3405_v49  ;;  %1562 = vmatpush.msrb.mxu1 %v3408_v50  ;;  %v4426_v49 = vld [vmem:[#allocation41_spill] sm:$0xff]  ;;  %v4427_v50 = vld [vmem:[#allocation55_spill] sm:$0xff] }
 0x300   : > { %1582 = vmatpush.msrb.mxu2 %v3481_v9  ;;  %1602 = vmatpush.msrb.mxu3 %v3414_v51  ;;  %v4428_v51 = vld [vmem:[#allocation42_spill] sm:$0xff] }
 0x301   : > { %1543 = vmatpush.msrb.mxu0 %v3421_v53  ;;  %1563 = vmatpush.msrb.mxu1 %v3424_v54  ;;  %v4429_v53 = vld [vmem:[#allocation43_spill] sm:$0xff]  ;;  %v4430_v54 = vld [vmem:[#allocation44_spill] sm:$0xff] }
 0x302   : > { %1583 = vmatpush.msrb.mxu2 %v3510_v12  ;;  %1603 = vmatpush.msrb.mxu3 %v3430_v55  ;;  %v4431_v55 = vld [vmem:[#allocation56_spill] sm:$0xff] }
 0x303   : > { %1544 = vmatpush.msrb.mxu0 %v3437_v57  ;;  %1564 = vmatpush.msrb.mxu1 %v3440_v58  ;;  %v4432_v57 = vld [vmem:[#allocation45_spill] sm:$0xff]  ;;  %v4433_v58 = vld [vmem:[#allocation46_spill] sm:$0xff] }
 0x304   : > { %1584 = vmatpush.msrb.mxu2 %v4415_v33  ;;  %1604 = vmatpush.msrb.mxu3 %v4416_v35 }
 0x305   : > { %1545 = vmatpush.msrb.mxu0 %v4417_v36  ;;  %1565 = vmatpush.msrb.mxu1 %v4418_v0 }
 0x306   : > { %1585 = vmatpush.msrb.mxu2 %v4419_v37  ;;  %1605 = vmatpush.msrb.mxu3 %v4420_v38 }
 0x307   : > { %1546 = vmatpush.msrb.mxu0 %v4421_v39  ;;  %1566 = vmatpush.msrb.mxu1 %v4422_v41 }
 0x308   : > { %1586 = vmatpush.msrb.mxu2 %v4423_v45  ;;  %1606 = vmatpush.msrb.mxu3 %v4424_v46 }
 0x309   : > { %1547 = vmatpush.msrb.mxu0 %v4425_v47  ;;  %1567 = vmatpush.msrb.mxu1 %v4426_v49 }
 0x30a   : > { %1587 = vmatpush.msrb.mxu2 %v4427_v50  ;;  %1607 = vmatpush.msrb.mxu3 %v4428_v51 }
 0x30b   : > { %1548 = vmatpush.msrb.mxu0 %v4429_v53  ;;  %1568 = vmatpush.msrb.mxu1 %v4430_v54 }
 0x30c   : > { %1588 = vmatpush.msrb.mxu2 %v4431_v55  ;;  %1608 = vmatpush.msrb.mxu3 %v4432_v57 }
 0x30d   : > { %1549 = vmatpush.msrb.mxu0 %v4433_v58  ;;  %1569 = vmatpush.msrb.mxu1 %v4434_v61 }
 0x30e   : > { %1589 = vmatpush.msrb.mxu2 %v4435_v5  ;;  %1609 = vmatpush.msrb.mxu3 %v4436_v21 }
 0x30f   : > { %1550 = vmatpush.msrb.mxu0 %v4437_v34  ;;  %1570 = vmatpush.msrb.mxu1 %v4438_v25 }
 0x310   : > { %1590 = vmatpush.msrb.mxu2 %v4439_v32  ;;  %1610 = vmatpush.msrb.mxu3 %v4440_v31 }
 0x36c   : > { %v1244_v4 = vpop.f32.mrf.mxu0  ;;  %v1264_v23 = vpop.f32.mrf.mxu1 }
 0x36d   : > { %v1307_v40 = vadd.f32 %v1244_v4, %v1223_v29  ;;  %v1308_v43 = vadd.f32 %v1264_v23, %v1224_v3 }
 0x36f   : > { %v2355_v11 = vmul.f32 -1.442695, %v1307_v40  ;;  %v2356_v63 = vmul.f32 -1.442695, %v1308_v43 }
 0x371   : > { %2505 = vpow2.f32 %v2355_v11 }
 0x372   : > { %2507 = vpow2.f32 %v2356_v63 }
 0x373   : > { %v1304_v26 = vpop.f32.mrf.mxu3  ;;  %v1284_v19 = vpop.f32.mrf.mxu2 }
 0x374   : > { %v1310_v30 = vadd.f32 %v1304_v26, %v1226_v27  ;;  %v1309_v20 = vadd.f32 %v1284_v19, %v1225_v18 }
 0x376   : > { %v2357_v24 = vmul.f32 -1.442695, %v1310_v30 }
 0x377   : > { %v2506_v6 = vpop.eup %2505 }
 0x378   : > { %v2508_v7 = vpop.eup %2507  ;;  %v1314_v10 = vadd.f32 1.0, %v2506_v6  ;;  %2509 = vpow2.f32 %v2357_v24 }
 0x379   : > { %v1333_v13 = vadd.f32 1.0, %v2508_v7 }
 0x37a   : > { %2511 = vrcp.f32 %v1314_v10  ;;  %v1326_v59 = vand.u32 2147483648, %v1314_v10  ;;  %v1324_v4 = vand.u32 2147483647, %v1314_v10  ;;  %vm1320_vm6 = vweird.f32 %v1314_v10 }
 0x37b   : > { %2513 = vrcp.f32 %v1333_v13  ;;  %v1345_v29 = vand.u32 2147483648, %v1333_v13  ;;  %v1343_v40 = vand.u32 2147483647, %v1333_v13  ;;  %vm1339_vm7 = vweird.f32 %v1333_v13 }
 0x37c   : > { %v1327_v63 = vor.u32 1.1754944e-38, %v1326_v59  ;;  %vm1325_vm10 = vcmp.eq.f32.partialorder %v1324_v4, 8.507059e+37  ;;  %v3808_v4 = vld [vmem:[%s3085_s4 + $0x1f8] sm:$0xff] }
 0x37d   : > { %v1346_v30 = vor.u32 1.1754944e-38, %v1345_v29  ;;  %vm1344_vm11 = vcmp.eq.f32.partialorder %v1343_v40, 8.507059e+37  ;;  %v3816_v40 = vld [vmem:[%s3085_s4 + $0x1c8] sm:$0xff] }
 0x37e   : > { %v2510_v15 = vpop.eup %2509 }
 0x37f   : > { %v1353_v14 = vadd.f32 1.0, %v2510_v15 }
 0x380   : > { %v2512_v28 = vpop.eup %2511 }
 0x381   : > { %v2514_v1 = vpop.eup %2513  ;;  %v1316_v17 = vmul.f32 %v2512_v28, %v1314_v10  ;;  %2515 = vrcp.f32 %v1353_v14  ;;  %vm1321_vm4 = vweird.f32 %v2512_v28  ;;  %vm1359_vm13 = vweird.f32 %v1353_v14 }
 0x382   : > { %v1335_v22 = vmul.f32 %v2514_v1, %v1333_v13  ;;  %2517 = vtanh.f32 %v1309_v20  ;;  %vm1340_vm5 = vweird.f32 %v2514_v1  ;;  %vm1322_vm8 = vmor %vm1320_vm6, %vm1321_vm4 }
 0x383   : > { %v1317_v16 = vsub.f32 1.0, %v1316_v17  ;;  %vm1341_vm9 = vmor %vm1339_vm7, %vm1340_vm5 }
 0x384   : > { %v1336_v62 = vsub.f32 1.0, %v1335_v22 }
 0x385   : > { %v1318_v3 = vmul.f32 %v2512_v28, %v1317_v16  ;;  %v1365_v16 = vand.u32 2147483648, %v1353_v14 }
 0x386   : > { %v1337_v23 = vmul.f32 %v2514_v1, %v1336_v62 }
 0x387   : > { %v2516_v43 = vpop.eup %2515  ;;  %v1319_v11 = vadd.f32 %v2512_v28, %v1318_v3  ;;  %v1366_v62 = vor.u32 1.1754944e-38, %v1365_v16  ;;  %v3799_v3 = vld [vmem:[%s3085_s4 + $0x1e0] sm:$0xff] }
 0x388   : > { %v1338_v27 = vadd.f32 %v2514_v1, %v1337_v23  ;;  %v1355_v26 = vmul.f32 %v2516_v43, %v1353_v14  ;;  %v2518_v6 = vpop.eup %2517  ;;  %vm1360_vm12 = vweird.f32 %v2516_v43  ;;  %v3812_v23 = vld [vmem:[%s3085_s4 + $0x1c0] sm:$0xff] }
 0x389   : > { %v1323_v24 = vsel %vm1322_vm8, %v2512_v28, %v1319_v11  ;;  %v1363_v28 = vand.u32 2147483647, %v1353_v14  ;;  %vm1361_vm14 = vmor %vm1359_vm13, %vm1360_vm12  ;;  %v3803_v14 = vld [vmem:[%s3085_s4 + $0x1e8] sm:$0xff] }
 0x38a   : > { %v1328_v7 = vsel %vm1325_vm10, %v1327_v63, %v1323_v24  ;;  %v1342_v18 = vsel %vm1341_vm9, %v2514_v1, %v1338_v27  ;;  %v1356_v19 = vsub.f32 1.0, %v1355_v26  ;;  %v3829_v11 = vld [vmem:[%s3085_s4 + $0x1a8] sm:$0xff]  ;;  %v3834_v63 = vld [vmem:[%s3085_s4 + $0x1b8] sm:$0xff] }
 0x38b   : > { %v1347_v15 = vsel %vm1344_vm11, %v1346_v30, %v1342_v18  ;;  %v1370_v20 = vmul.f32 %v2518_v6, %v1328_v7  ;;  %vm1364_vm15 = vcmp.eq.f32.partialorder %v1363_v28, 8.507059e+37  ;;  %v3842_v27 = vld [vmem:[%s3085_s4 + $0x188] sm:$0xff]  ;;  %v3847_v26 = vld [vmem:[%s3085_s4 + $0x198] sm:$0xff] }
 0x38c   : > { %v1369_v17 = vmul.f32 %v1347_v15, %v3727_v8  ;;  %v1357_v22 = vmul.f32 %v2516_v43, %v1356_v19  ;;  %v3855_v30 = vld [vmem:[%s3085_s4 + $0x168] sm:$0xff]  ;;  %v3860_v24 = vld [vmem:[%s3085_s4 + $0x178] sm:$0xff] }
 0x38d   : > { %v3868_v6 = vld [vmem:[%s3085_s4 + $0x148] sm:$0xff]  ;;  %v3873_v7 = vld [vmem:[%s3085_s4 + $0x158] sm:$0xff] }
 0x38e   : > { %v3795_v10 = vadd.f32 %v1370_v20, %v1369_v17  ;;  %v1358_v13 = vadd.f32 %v2516_v43, %v1357_v22  ;;  %v3881_v18 = vld [vmem:[%s3085_s4 + $0x128] sm:$0xff]  ;;  %v3886_v19 = vld [vmem:[%s3085_s4 + $0x138] sm:$0xff] }
 0x38f   : > { %v3894_v15 = vld [vmem:[%s3085_s4 + $0x108] sm:$0xff]  ;;  %v3899_v20 = vld [vmem:[%s3085_s4 + $0x118] sm:$0xff] }
 0x390   : > { %2519 = vtanh.f32 %v3795_v10  ;;  %v1362_v1 = vsel %vm1361_vm14, %v2516_v43, %v1358_v13  ;;  %v3821_v43 = vld [vmem:[%s3085_s4 + $0x1d8] sm:$0xff]  ;;  %v3907_v17 = vld [vmem:[%s3085_s4 + $0xe8] sm:$0xff]  ;;  %v3916_v13 = vld [vmem:[%s3085_s4 + $0xc0] sm:$0xff] }
 0x391   : > { %v1367_v8 = vsel %vm1364_vm15, %v1366_v62, %v1362_v1  ;;  %v3912_v22 = vld [vmem:[%s3085_s4 + $0xf8] sm:$0xff] }
 0x396   : > { %v2520_v59 = vpop.eup %2519 }
 0x397   : > { %v1373_v29 = vmul.f32 %v2520_v59, %v1367_v8 }
 0x399   : > { %1375 = vst [vmem:[#allocation3 + $0x28] sm:$0xff] %v1373_v29  ;;  %1397 = vmatmul.f32.vlgmr.msra.gmra.mxu0 %v1373_v29  ;;  %1417 = vmatmul.f32.vlgmr.msra.gmra.mxu1 %v1373_v29 }
 0x39a   : > { %1437 = vmatmul.f32.vlgmr.msra.gmra.mxu2 %v1373_v29  ;;  %1457 = vmatmul.f32.vlgmr.msra.gmra.mxu3 %v1373_v29 }
 0x39b   : > { %1689 = vmatpush.msra.mxu0 %v3799_v3  ;;  %1709 = vmatpush.msra.mxu1 %v3803_v14 }
 0x39c   : > { %1729 = vmatpush.msra.mxu2 %v3377_v42  ;;  %1749 = vmatpush.msra.mxu3 %v3808_v4  ;;  %v3825_v42 = vld [vmem:[%s3085_s4 + $0x1a0] sm:$0xff] }
 0x39d   : > { %1690 = vmatpush.msra.mxu0 %v3812_v23  ;;  %1710 = vmatpush.msra.mxu1 %v3816_v40 }
 0x39e   : > { %1730 = vmatpush.msra.mxu2 %v3385_v44  ;;  %1750 = vmatpush.msra.mxu3 %v3821_v43  ;;  %v3838_v44 = vld [vmem:[%s3085_s4 + $0x180] sm:$0xff] }
 0x39f   : > { %1691 = vmatpush.msra.mxu0 %v3825_v42  ;;  %1711 = vmatpush.msra.mxu1 %v3829_v11 }
 0x3a0   : > { %1731 = vmatpush.msra.mxu2 %v3401_v48  ;;  %1751 = vmatpush.msra.mxu3 %v3834_v63  ;;  %v3851_v48 = vld [vmem:[%s3085_s4 + $0x160] sm:$0xff] }
 0x3a1   : > { %1692 = vmatpush.msra.mxu0 %v3838_v44  ;;  %1712 = vmatpush.msra.mxu1 %v3842_v27 }
 0x3a2   : > { %1732 = vmatpush.msra.mxu2 %v3417_v52  ;;  %1752 = vmatpush.msra.mxu3 %v3847_v26  ;;  %v3864_v52 = vld [vmem:[%s3085_s4 + $0x140] sm:$0xff] }
 0x3a3   : > { %1693 = vmatpush.msra.mxu0 %v3851_v48  ;;  %1713 = vmatpush.msra.mxu1 %v3855_v30 }
 0x3a4   : > { %1733 = vmatpush.msra.mxu2 %v3433_v56  ;;  %1753 = vmatpush.msra.mxu3 %v3860_v24  ;;  %v3877_v56 = vld [vmem:[%s3085_s4 + $0x120] sm:$0xff] }
 0x3a5   : > { %1694 = vmatpush.msra.mxu0 %v3864_v52  ;;  %1714 = vmatpush.msra.mxu1 %v3868_v6 }
 0x3a6   : > { %1734 = vmatpush.msra.mxu2 %v3449_v60  ;;  %1754 = vmatpush.msra.mxu3 %v3873_v7  ;;  %v3890_v60 = vld [vmem:[%s3085_s4 + $0x100] sm:$0xff] }
 0x3a7   : > { %1695 = vmatpush.msra.mxu0 %v3877_v56  ;;  %1715 = vmatpush.msra.mxu1 %v3881_v18 }
 0x3a8   : > { %1735 = vmatpush.msra.mxu2 %v3465_v2  ;;  %1755 = vmatpush.msra.mxu3 %v3886_v19  ;;  %v3903_v2 = vld [vmem:[%s3085_s4 + $0xe0] sm:$0xff] }
 0x3a9   : > { %1696 = vmatpush.msra.mxu0 %v3890_v60  ;;  %1716 = vmatpush.msra.mxu1 %v3894_v15 }
 0x3aa   : > { %1736 = vmatpush.msra.mxu2 %v3481_v9  ;;  %1756 = vmatpush.msra.mxu3 %v3899_v20  ;;  %v3920_v9 = vld [vmem:[%s3085_s4 + $0xc8] sm:$0xff] }
 0x3ab   : > { %1697 = vmatpush.msra.mxu0 %v3903_v2  ;;  %1717 = vmatpush.msra.mxu1 %v3907_v17 }
 0x3ac   : > { %1737 = vmatpush.msra.mxu2 %v3510_v12  ;;  %1757 = vmatpush.msra.mxu3 %v3912_v22  ;;  %v1377_v12 = vld [vmem:[#allocation2 + $0x60] sm:$0xff] }
 0x3ad   : > { %1698 = vmatpush.msra.mxu0 %v3916_v13  ;;  %1718 = vmatpush.msra.mxu1 %v3920_v9 }
 0x3ae   : > { %1738 = vmatpush.msra.mxu2 %v4415_v33  ;;  %1758 = vmatpush.msra.mxu3 %v4416_v35  ;;  %v1378_v33 = vld [vmem:[#allocation2 + $0xf0] sm:$0xff] }
 0x3af   : > { %1699 = vmatpush.msra.mxu0 %v4417_v36  ;;  %1719 = vmatpush.msra.mxu1 %v4418_v0 }
 0x3b0   : > { %1739 = vmatpush.msra.mxu2 %v4419_v37  ;;  %1759 = vmatpush.msra.mxu3 %v4420_v38 }
 0x3b1   : > { %1700 = vmatpush.msra.mxu0 %v4421_v39  ;;  %1720 = vmatpush.msra.mxu1 %v4422_v41  ;;  %v1380_v41 = vld [vmem:[#allocation2 + $0x78] sm:$0xff] }
 0x3b2   : > { %1740 = vmatpush.msra.mxu2 %v4423_v45  ;;  %1760 = vmatpush.msra.mxu3 %v4424_v46 }
 0x3b3   : > { %1701 = vmatpush.msra.mxu0 %v4425_v47  ;;  %1721 = vmatpush.msra.mxu1 %v4426_v49 }
 0x3b4   : > { %1741 = vmatpush.msra.mxu2 %v4427_v50  ;;  %1761 = vmatpush.msra.mxu3 %v4428_v51 }
 0x3b5   : > { %1702 = vmatpush.msra.mxu0 %v4429_v53  ;;  %1722 = vmatpush.msra.mxu1 %v4430_v54  ;;  %v1379_v54 = vld [vmem:[#allocation2 + $0x8] sm:$0xff] }
 0x3b6   : > { %1742 = vmatpush.msra.mxu2 %v4431_v55  ;;  %1762 = vmatpush.msra.mxu3 %v4432_v57 }
 0x3b7   : > { %1703 = vmatpush.msra.mxu0 %v4433_v58  ;;  %1723 = vmatpush.msra.mxu1 %v4434_v61 }
 0x3b8   : > { %1743 = vmatpush.msra.mxu2 %v4435_v5  ;;  %1763 = vmatpush.msra.mxu3 %v4436_v21 }
 0x3b9   : > { %1704 = vmatpush.msra.mxu0 %v4437_v34  ;;  %1724 = vmatpush.msra.mxu1 %v4438_v25 }
 0x3ba   : > { %1744 = vmatpush.msra.mxu2 %v4439_v32  ;;  %1764 = vmatpush.msra.mxu3 %v4440_v31 }
 0x416   : > { %v1398_v35 = vpop.f32.mrf.mxu0  ;;  %v1418_v36 = vpop.f32.mrf.mxu1 }
 0x417   : > { %v1461_v0 = vadd.f32 %v1398_v35, %v1377_v12  ;;  %v1462_v37 = vadd.f32 %v1418_v36, %v1378_v33 }
 0x419   : > { %v2358_v38 = vmul.f32 -1.442695, %v1461_v0  ;;  %v2359_v39 = vmul.f32 -1.442695, %v1462_v37 }
 0x41b   : > { %2521 = vpow2.f32 %v2358_v38 }
 0x41c   : > { %2523 = vpow2.f32 %v2359_v39 }
 0x41d   : > { %v1458_v45 = vpop.f32.mrf.mxu3  ;;  %v1438_v55 = vpop.f32.mrf.mxu2 }
 0x41e   : > { %v1464_v46 = vadd.f32 %v1458_v45, %v1380_v41  ;;  %v1463_v5 = vadd.f32 %v1438_v55, %v1379_v54 }
 0x420   : > { %v2360_v47 = vmul.f32 -1.442695, %v1464_v46 }
 0x421   : > { %v2522_v49 = vpop.eup %2521 }
 0x422   : > { %v2524_v50 = vpop.eup %2523  ;;  %v1468_v51 = vadd.f32 1.0, %v2522_v49  ;;  %2525 = vpow2.f32 %v2360_v47 }
 0x423   : > { %v1487_v53 = vadd.f32 1.0, %v2524_v50 }
 0x424   : > { %2527 = vrcp.f32 %v1468_v51  ;;  %v1480_v16 = vand.u32 2147483648, %v1468_v51  ;;  %v1478_v62 = vand.u32 2147483647, %v1468_v51  ;;  %vm1474_vm2 = vweird.f32 %v1468_v51 }
 0x425   : > { %2529 = vrcp.f32 %v1487_v53  ;;  %v1499_v28 = vand.u32 2147483648, %v1487_v53  ;;  %v1497_v8 = vand.u32 2147483647, %v1487_v53  ;;  %vm1493_vm3 = vweird.f32 %v1487_v53 }
 0x426   : > { %v1481_v33 = vor.u32 1.1754944e-38, %v1480_v16  ;;  %vm1479_vm6 = vcmp.eq.f32.partialorder %v1478_v62, 8.507059e+37  ;;  %v3991_v16 = vld [vmem:[%s3085_s4 + $0x150] sm:$0xff] }
 0x427   : > { %v1500_v0 = vor.u32 1.1754944e-38, %v1499_v28  ;;  %vm1498_vm7 = vcmp.eq.f32.partialorder %v1497_v8, 8.507059e+37  ;;  %v3998_v28 = vld [vmem:[%s3085_s4 + $0x130] sm:$0xff]  ;;  %v4023_v8 = vld [vmem:[%s3085_s4 + $0xd8] sm:$0xff] }
 0x428   : > { %v2526_v57 = vpop.eup %2525  ;;  %v4012_v62 = vld [vmem:[%s3085_s4 + $0xf0] sm:$0xff]  ;;  %4442 = vst [vmem:[#allocation23_spill] sm:$0xff] %v4023_v8 }
 0x429   : > { %v1507_v58 = vadd.f32 1.0, %v2526_v57 }
 0x42a   : > { %v2528_v61 = vpop.eup %2527 }
 0x42b   : > { %v2530_v21 = vpop.eup %2529  ;;  %v1470_v34 = vmul.f32 %v2528_v61, %v1468_v51  ;;  %2531 = vrcp.f32 %v1507_v58  ;;  %vm1475_vm0 = vweird.f32 %v2528_v61  ;;  %v1519_v54 = vand.u32 2147483648, %v1507_v58 }
 0x42c   : > { %v1489_v25 = vmul.f32 %v2530_v21, %v1487_v53  ;;  %2533 = vtanh.f32 %v1463_v5  ;;  %vm1494_vm1 = vweird.f32 %v2530_v21  ;;  %vm1476_vm4 = vmor %vm1474_vm2, %vm1475_vm0  ;;  %vm1513_vm9 = vweird.f32 %v1507_v58 }
 0x42d   : > { %v1471_v32 = vsub.f32 1.0, %v1470_v34  ;;  %vm1495_vm5 = vmor %vm1493_vm3, %vm1494_vm1  ;;  %v1517_v55 = vand.u32 2147483647, %v1507_v58 }
 0x42e   : > { %v1490_v31 = vsub.f32 1.0, %v1489_v25  ;;  %v3970_v25 = vld [vmem:[%s3085_s4 + $0x1b0] sm:$0xff] }
 0x42f   : > { %v1472_v1 = vmul.f32 %v2528_v61, %v1471_v32  ;;  %vm1518_vm11 = vcmp.eq.f32.partialorder %v1517_v55, 8.507059e+37  ;;  %v3977_v32 = vld [vmem:[%s3085_s4 + $0x190] sm:$0xff]  ;;  %v4095_v55 = vld [vmem:[%s3085_s4 + $0x28] sm:$0xff] }
 0x430   : > { %v1491_v59 = vmul.f32 %v2530_v21, %v1490_v31  ;;  %v3984_v31 = vld [vmem:[%s3085_s4 + $0x170] sm:$0xff]  ;;  %4460 = vst [vmem:[#allocation54_spill] sm:$0xff] %v4095_v55 }
 0x431   : > { %v2532_v29 = vpop.eup %2531  ;;  %v1473_v12 = vadd.f32 %v2528_v61, %v1472_v1  ;;  %v4005_v1 = vld [vmem:[%s3085_s4 + $0x110] sm:$0xff] }
 0x432   : > { %v1492_v35 = vadd.f32 %v2530_v21, %v1491_v59  ;;  %v1509_v36 = vmul.f32 %v2532_v29, %v1507_v58  ;;  %v2534_v38 = vpop.eup %2533  ;;  %vm1514_vm8 = vweird.f32 %v2532_v29  ;;  %v3963_v58 = vld [vmem:[%s3085_s4 + $0x1d0] sm:$0xff] }
 0x433   : > { %v1477_v37 = vsel %vm1476_vm4, %v2528_v61, %v1473_v12  ;;  %vm1515_vm10 = vmor %vm1513_vm9, %vm1514_vm8  ;;  %v1520_v61 = vor.u32 1.1754944e-38, %v1519_v54  ;;  %v4019_v59 = vld [vmem:[%s3085_s4 + $0xd0] sm:$0xff]  ;;  %v4031_v12 = vld [vmem:[%s3085_s4 + $0xa8] sm:$0xff] }
 0x434   : > { %v1482_v39 = vsel %vm1479_vm6, %v1481_v33, %v1477_v37  ;;  %v1496_v41 = vsel %vm1495_vm5, %v2530_v21, %v1492_v35  ;;  %v1510_v45 = vsub.f32 1.0, %v1509_v36  ;;  %4441 = vst [vmem:[#allocation22_spill] sm:$0xff] %v4019_v59  ;;  %v4035_v33 = vld [vmem:[%s3085_s4 + $0xb0] sm:$0xff]  ;;  %v4039_v35 = vld [vmem:[%s3085_s4 + $0xb8] sm:$0xff]  ;;  %v4043_v36 = vld [vmem:[%s3085_s4 + $0x80] sm:$0xff] }
 0x435   : > { %v1501_v46 = vsel %vm1498_vm7, %v1500_v0, %v1496_v41  ;;  %v1524_v47 = vmul.f32 %v2534_v38, %v1482_v39  ;;  %4444 = vst [vmem:[#allocation25_spill] sm:$0xff] %v4031_v12  ;;  %v4047_v0 = vld [vmem:[%s3085_s4 + $0x88] sm:$0xff]  ;;  %v4051_v37 = vld [vmem:[%s3085_s4 + $0x90] sm:$0xff]  ;;  %v4055_v38 = vld [vmem:[%s3085_s4 + $0x98] sm:$0xff] }
 0x436   : > { %v1523_v49 = vmul.f32 %v1501_v46, %v3795_v10  ;;  %v1511_v50 = vmul.f32 %v2532_v29, %v1510_v45  ;;  %v3956_v10 = vld [vmem:[%s3085_s4 + $0x1f0] sm:$0xff]  ;;  %4445 = vst [vmem:[#allocation26_spill] sm:$0xff] %v4035_v33  ;;  %v4059_v39 = vld [vmem:[%s3085_s4 + $0x60] sm:$0xff]  ;;  %v4063_v41 = vld [vmem:[%s3085_s4 + $0x68] sm:$0xff] }
 0x437   : > { %4446 = vst [vmem:[#allocation27_spill] sm:$0xff] %v4039_v35  ;;  %v4067_v45 = vld [vmem:[%s3085_s4 + $0x70] sm:$0xff]  ;;  %v4071_v46 = vld [vmem:[%s3085_s4 + $0x78] sm:$0xff]  ;;  %v4091_v54 = vld [vmem:[%s3085_s4 + $0x20] sm:$0xff] }
 0x438   : > { %v3950_v51 = vadd.f32 %v1524_v47, %v1523_v49  ;;  %v1512_v53 = vadd.f32 %v2532_v29, %v1511_v50  ;;  %4447 = vst [vmem:[#allocation28_spill] sm:$0xff] %v4043_v36  ;;  %v4075_v47 = vld [vmem:[%s3085_s4 + $0x40] sm:$0xff]  ;;  %v4079_v49 = vld [vmem:[%s3085_s4 + $0x48] sm:$0xff]  ;;  %v4083_v50 = vld [vmem:[%s3085_s4 + $0x50] sm:$0xff] }
 0x439   : > { %4448 = vst [vmem:[#allocation29_spill] sm:$0xff] %v4047_v0 }
 0x43a   : > { %2535 = vtanh.f32 %v3950_v51  ;;  %v1516_v57 = vsel %vm1515_vm10, %v2532_v29, %v1512_v53  ;;  %v4027_v29 = vld [vmem:[%s3085_s4 + $0xa0] sm:$0xff]  ;;  %4449 = vst [vmem:[#allocation31_spill] sm:$0xff] %v4051_v37  ;;  %v4087_v53 = vld [vmem:[%s3085_s4 + $0x58] sm:$0xff] }
 0x43b   : > { %v1521_v21 = vsel %vm1518_vm11, %v1520_v61, %v1516_v57  ;;  %4443 = vst [vmem:[#allocation24_spill] sm:$0xff] %v4027_v29  ;;  %v4099_v57 = vld [vmem:[%s3085_s4 + $0x30] sm:$0xff]  ;;  %v4103_v61 = vld [vmem:[%s3085_s4 + $0x38] sm:$0xff] }
 0x43c   : > { %4450 = vst [vmem:[#allocation32_spill] sm:$0xff] %v4055_v38 }
 0x43d   : > { %4451 = vst [vmem:[#allocation30_spill] sm:$0xff] %v4059_v39 }
 0x43e   : > { %4452 = vst [vmem:[#allocation49_spill] sm:$0xff] %v4063_v41 }
 0x43f   : > { %4453 = vst [vmem:[#allocation33_spill] sm:$0xff] %v4067_v45 }
 0x440   : > { %v2536_v5 = vpop.eup %2535  ;;  %4454 = vst [vmem:[#allocation34_spill] sm:$0xff] %v4071_v46 }
 0x441   : > { %v1527_v34 = vmul.f32 %v2536_v5, %v1521_v21  ;;  %4455 = vst [vmem:[#allocation35_spill] sm:$0xff] %v4075_v47  ;;  %v4107_v5 = vld [vmem:[%s3085_s4] sm:$0xff]  ;;  %v4111_v21 = vld [vmem:[%s3085_s4 + $0x8] sm:$0xff] }
 0x442   : > { %4456 = vst [vmem:[#allocation50_spill] sm:$0xff] %v4079_v49 }
 0x443   : > { %1529 = vst [vmem:[#allocation3 + $0x38] sm:$0xff] %v1527_v34  ;;  %1551 = vmatmul.f32.vlgmr.msrb.gmra.mxu0 %v1527_v34  ;;  %1571 = vmatmul.f32.vlgmr.msrb.gmra.mxu1 %v1527_v34 }
 0x444   : > { %1591 = vmatmul.f32.vlgmr.msrb.gmra.mxu2 %v1527_v34  ;;  %1611 = vmatmul.f32.vlgmr.msrb.gmra.mxu3 %v1527_v34  ;;  %4457 = vst [vmem:[#allocation36_spill] sm:$0xff] %v4083_v50  ;;  %v4115_v34 = vld [vmem:[%s3085_s4 + $0x10] sm:$0xff] }
 0x445   : > { %1843 = vmatpush.msrb.mxu0 %v3799_v3  ;;  %1863 = vmatpush.msrb.mxu1 %v3803_v14  ;;  %4458 = vst [vmem:[#allocation37_spill] sm:$0xff] %v4087_v53 }
 0x446   : > { %1883 = vmatpush.msrb.mxu2 %v3956_v10  ;;  %1903 = vmatpush.msrb.mxu3 %v3808_v4  ;;  %4459 = vst [vmem:[#allocation38_spill] sm:$0xff] %v4091_v54 }
 0x447   : > { %1844 = vmatpush.msrb.mxu0 %v3812_v23  ;;  %1864 = vmatpush.msrb.mxu1 %v3816_v40  ;;  %4461 = vst [vmem:[#allocation39_spill] sm:$0xff] %v4099_v57 }
 0x448   : > { %1884 = vmatpush.msrb.mxu2 %v3963_v58  ;;  %1904 = vmatpush.msrb.mxu3 %v3821_v43  ;;  %4462 = vst [vmem:[#allocation40_spill] sm:$0xff] %v4103_v61 }
 0x449   : > { %1845 = vmatpush.msrb.mxu0 %v3825_v42  ;;  %1865 = vmatpush.msrb.mxu1 %v3829_v11  ;;  %4463 = vst [vmem:[#allocation41_spill] sm:$0xff] %v4107_v5 }
 0x44a   : > { %1885 = vmatpush.msrb.mxu2 %v3970_v25  ;;  %1905 = vmatpush.msrb.mxu3 %v3834_v63  ;;  %4464 = vst [vmem:[#allocation55_spill] sm:$0xff] %v4111_v21 }
 0x44b   : > { %1846 = vmatpush.msrb.mxu0 %v3838_v44  ;;  %1866 = vmatpush.msrb.mxu1 %v3842_v27  ;;  %4465 = vst [vmem:[#allocation42_spill] sm:$0xff] %v4115_v34 }
 0x44c   : > { %1886 = vmatpush.msrb.mxu2 %v3977_v32  ;;  %1906 = vmatpush.msrb.mxu3 %v3847_v26 }
 0x44d   : > { %1847 = vmatpush.msrb.mxu0 %v3851_v48  ;;  %1867 = vmatpush.msrb.mxu1 %v3855_v30 }
 0x44e   : > { %1887 = vmatpush.msrb.mxu2 %v3984_v31  ;;  %1907 = vmatpush.msrb.mxu3 %v3860_v24 }
 0x44f   : > { %1848 = vmatpush.msrb.mxu0 %v3864_v52  ;;  %1868 = vmatpush.msrb.mxu1 %v3868_v6 }
 0x450   : > { %1888 = vmatpush.msrb.mxu2 %v3991_v16  ;;  %1908 = vmatpush.msrb.mxu3 %v3873_v7 }
 0x451   : > { %1849 = vmatpush.msrb.mxu0 %v3877_v56  ;;  %1869 = vmatpush.msrb.mxu1 %v3881_v18 }
 0x452   : > { %1889 = vmatpush.msrb.mxu2 %v3998_v28  ;;  %1909 = vmatpush.msrb.mxu3 %v3886_v19 }
 0x453   : > { %1850 = vmatpush.msrb.mxu0 %v3890_v60  ;;  %1870 = vmatpush.msrb.mxu1 %v3894_v15 }
 0x454   : > { %1890 = vmatpush.msrb.mxu2 %v4005_v1  ;;  %1910 = vmatpush.msrb.mxu3 %v3899_v20 }
 0x455   : > { %1851 = vmatpush.msrb.mxu0 %v3903_v2  ;;  %1871 = vmatpush.msrb.mxu1 %v3907_v17 }
 0x456   : > { %1891 = vmatpush.msrb.mxu2 %v4012_v62  ;;  %1911 = vmatpush.msrb.mxu3 %v3912_v22 }
 0x457   : > { %1852 = vmatpush.msrb.mxu0 %v3916_v13  ;;  %1872 = vmatpush.msrb.mxu1 %v3920_v9 }
 0x458   : > { %1892 = vmatpush.msrb.mxu2 %v4019_v59  ;;  %1912 = vmatpush.msrb.mxu3 %v4023_v8 }
 0x459   : > { %1853 = vmatpush.msrb.mxu0 %v4027_v29  ;;  %1873 = vmatpush.msrb.mxu1 %v4031_v12 }
 0x45a   : > { %1893 = vmatpush.msrb.mxu2 %v4035_v33  ;;  %1913 = vmatpush.msrb.mxu3 %v4039_v35 }
 0x45b   : > { %1854 = vmatpush.msrb.mxu0 %v4043_v36  ;;  %1874 = vmatpush.msrb.mxu1 %v4047_v0 }
 0x45c   : > { %1894 = vmatpush.msrb.mxu2 %v4051_v37  ;;  %1914 = vmatpush.msrb.mxu3 %v4055_v38 }
 0x45d   : > { %1855 = vmatpush.msrb.mxu0 %v4059_v39  ;;  %1875 = vmatpush.msrb.mxu1 %v4063_v41 }
 0x45e   : > { %1895 = vmatpush.msrb.mxu2 %v4067_v45  ;;  %1915 = vmatpush.msrb.mxu3 %v4071_v46  ;;  %v1534_v46 = vld [vmem:[#allocation2 + $0xc8] sm:$0xff] }
 0x45f   : > { %1856 = vmatpush.msrb.mxu0 %v4075_v47  ;;  %1876 = vmatpush.msrb.mxu1 %v4079_v49 }
 0x460   : > { %1896 = vmatpush.msrb.mxu2 %v4083_v50  ;;  %1916 = vmatpush.msrb.mxu3 %v4087_v53 }
 0x461   : > { %1857 = vmatpush.msrb.mxu0 %v4091_v54  ;;  %1877 = vmatpush.msrb.mxu1 %v4095_v55  ;;  %v4119_v55 = vld [vmem:[%s3085_s4 + $0x18] sm:$0xff] }
 0x462   : > { %1897 = vmatpush.msrb.mxu2 %v4099_v57  ;;  %1917 = vmatpush.msrb.mxu3 %v4103_v61  ;;  %4466 = vst [vmem:[#allocation43_spill] sm:$0xff] %v4119_v55  ;;  %v1531_v57 = vld [vmem:[#allocation2 + $0x38] sm:$0xff] }
 0x463   : > { %1858 = vmatpush.msrb.mxu0 %v4107_v5  ;;  %1878 = vmatpush.msrb.mxu1 %v4111_v21  ;;  %v1532_v54 = vld [vmem:[#allocation2 + $0x58] sm:$0xff] }
 0x464   : > { %1898 = vmatpush.msrb.mxu2 %v4115_v34  ;;  %1918 = vmatpush.msrb.mxu3 %v4119_v55  ;;  %v1533_v55 = vld [vmem:[#allocation2 + $0x40] sm:$0xff] }
 0x4c0   : > { %v1552_v53 = vpop.f32.mrf.mxu0  ;;  %v1572_v61 = vpop.f32.mrf.mxu1 }
 0x4c1   : > { %v1615_v50 = vadd.f32 %v1552_v53, %v1531_v57  ;;  %v1616_v49 = vadd.f32 %v1572_v61, %v1532_v54 }
 0x4c3   : > { %v2361_v47 = vmul.f32 -1.442695, %v1615_v50  ;;  %v2362_v5 = vmul.f32 -1.442695, %v1616_v49 }
 0x4c5   : > { %2537 = vpow2.f32 %v2361_v47 }
 0x4c6   : > { %2539 = vpow2.f32 %v2362_v5 }
 0x4c7   : > { %v1612_v21 = vpop.f32.mrf.mxu3  ;;  %v1592_v0 = vpop.f32.mrf.mxu2 }
 0x4c8   : > { %v1618_v45 = vadd.f32 %v1612_v21, %v1534_v46  ;;  %v1617_v50 = vadd.f32 %v1592_v0, %v1533_v55 }
 0x4ca   : > { %v2363_v41 = vmul.f32 -1.442695, %v1618_v45 }
 0x4cb   : > { %v2538_v39 = vpop.eup %2537 }
 0x4cc   : > { %v2540_v34 = vpop.eup %2539  ;;  %v1622_v38 = vadd.f32 1.0, %v2538_v39  ;;  %2541 = vpow2.f32 %v2363_v41 }
 0x4cd   : > { %v1641_v37 = vadd.f32 1.0, %v2540_v34 }
 0x4ce   : > { %2543 = vrcp.f32 %v1622_v38  ;;  %v1634_v45 = vand.u32 2147483648, %v1622_v38  ;;  %v1632_v41 = vand.u32 2147483647, %v1622_v38  ;;  %vm1628_vm14 = vweird.f32 %v1622_v38 }
 0x4cf   : > { %2545 = vrcp.f32 %v1641_v37  ;;  %v1653_v5 = vand.u32 2147483648, %v1641_v37  ;;  %v1651_v34 = vand.u32 2147483647, %v1641_v37  ;;  %vm1647_vm15 = vweird.f32 %v1641_v37 }
 0x4d0   : > { %vm1633_vm2 = vcmp.eq.f32.partialorder %v1632_v41, 8.507059e+37 }
 0x4d1   : > { %vm1652_vm3 = vcmp.eq.f32.partialorder %v1651_v34, 8.507059e+37 }
 0x4d2   : > { %v2542_v36 = vpop.eup %2541 }
 0x4d3   : > { %v1661_v53 = vadd.f32 1.0, %v2542_v36  ;;  %v1635_v36 = vor.u32 1.1754944e-38, %v1634_v45 }
 0x4d4   : > { %v2544_v54 = vpop.eup %2543 }
 0x4d5   : > { %v2546_v49 = vpop.eup %2545  ;;  %v1624_v47 = vmul.f32 %v2544_v54, %v1622_v38  ;;  %2547 = vrcp.f32 %v1661_v53  ;;  %vm1629_vm12 = vweird.f32 %v2544_v54  ;;  %v1673_v45 = vand.u32 2147483648, %v1661_v53 }
 0x4d6   : > { %v1643_v57 = vmul.f32 %v2546_v49, %v1641_v37  ;;  %2549 = vtanh.f32 %v1617_v50  ;;  %vm1648_vm13 = vweird.f32 %v2546_v49  ;;  %vm1630_vm0 = vmor %vm1628_vm14, %vm1629_vm12  ;;  %vm1667_vm5 = vweird.f32 %v1661_v53 }
 0x4d7   : > { %v1625_v61 = vsub.f32 1.0, %v1624_v47  ;;  %vm1649_vm1 = vmor %vm1647_vm15, %vm1648_vm13  ;;  %v1654_v47 = vor.u32 1.1754944e-38, %v1653_v5  ;;  %v1674_v5 = vor.u32 1.1754944e-38, %v1673_v45 }
 0x4d8   : > { %v1644_v46 = vsub.f32 1.0, %v1643_v57 }
 0x4d9   : > { %v1626_v39 = vmul.f32 %v2544_v54, %v1625_v61 }
 0x4da   : > { %v1645_v21 = vmul.f32 %v2546_v49, %v1644_v46 }
 0x4db   : > { %v2548_v35 = vpop.eup %2547  ;;  %v1627_v33 = vadd.f32 %v2544_v54, %v1626_v39 }
 0x4dc   : > { %v1646_v0 = vadd.f32 %v2546_v49, %v1645_v21  ;;  %v1663_v55 = vmul.f32 %v2548_v35, %v1661_v53  ;;  %v2550_v50 = vpop.eup %2549  ;;  %vm1668_vm4 = vweird.f32 %v2548_v35 }
 0x4dd   : > { %v1631_v57 = vsel %vm1630_vm0, %v2544_v54, %v1627_v33  ;;  %v1671_v33 = vand.u32 2147483647, %v1661_v53  ;;  %vm1669_vm6 = vmor %vm1667_vm5, %vm1668_vm4 }
 0x4de   : > { %v1636_v12 = vsel %vm1633_vm2, %v1635_v36, %v1631_v57  ;;  %v1650_v61 = vsel %vm1649_vm1, %v2546_v49, %v1646_v0  ;;  %v1664_v29 = vsub.f32 1.0, %v1663_v55 }
 0x4df   : > { %v1655_v46 = vsel %vm1652_vm3, %v1654_v47, %v1650_v61  ;;  %v1678_v8 = vmul.f32 %v2550_v50, %v1636_v12  ;;  %vm1672_vm7 = vcmp.eq.f32.partialorder %v1671_v33, 8.507059e+37  ;;  %v1687_v12 = vld [vmem:[#allocation2 + $0x70] sm:$0xff] }
 0x4e0   : > { %v1677_v59 = vmul.f32 %v1655_v46, %v3950_v51  ;;  %v1665_v39 = vmul.f32 %v2548_v35, %v1664_v29 }
 0x4e2   : > { %v4123_v38 = vadd.f32 %v1678_v8, %v1677_v59  ;;  %v1666_v37 = vadd.f32 %v2548_v35, %v1665_v39 }
 0x4e4   : > { %2551 = vtanh.f32 %v4123_v38  ;;  %v1670_v54 = vsel %vm1669_vm6, %v2548_v35, %v1666_v37 }
 0x4e5   : > { %v1675_v41 = vsel %vm1672_vm7, %v1674_v5, %v1670_v54 }
 0x4ea   : > { %v2552_v49 = vpop.eup %2551 }
 0x4eb   : > { %v1681_v21 = vmul.f32 %v2552_v49, %v1675_v41 }
 0x4ed   : > { %1683 = vst [vmem:[#allocation3 + $0x10] sm:$0xff] %v1681_v21  ;;  %1705 = vmatmul.f32.vlgmr.msra.gmra.mxu0 %v1681_v21  ;;  %1725 = vmatmul.f32.vlgmr.msra.gmra.mxu1 %v1681_v21 }
 0x4ee   : > { %1745 = vmatmul.f32.vlgmr.msra.gmra.mxu2 %v1681_v21  ;;  %1765 = vmatmul.f32.vlgmr.msra.gmra.mxu3 %v1681_v21 }
 0x4ef   : > { %1997 = vmatpush.msra.mxu0 %v3799_v3  ;;  %2017 = vmatpush.msra.mxu1 %v3803_v14  ;;  %v4467_v3 = vld [vmem:[#allocation22_spill] sm:$0xff]  ;;  %v4468_v14 = vld [vmem:[#allocation23_spill] sm:$0xff] }
 0x4f0   : > { %2037 = vmatpush.msra.mxu2 %v3956_v10  ;;  %2057 = vmatpush.msra.mxu3 %v3808_v4  ;;  %v4469_v4 = vld [vmem:[#allocation24_spill] sm:$0xff] }
 0x4f1   : > { %1998 = vmatpush.msra.mxu0 %v3812_v23  ;;  %2018 = vmatpush.msra.mxu1 %v3816_v40  ;;  %v4470_v23 = vld [vmem:[#allocation25_spill] sm:$0xff]  ;;  %v4471_v40 = vld [vmem:[#allocation26_spill] sm:$0xff] }
 0x4f2   : > { %2038 = vmatpush.msra.mxu2 %v3963_v58  ;;  %2058 = vmatpush.msra.mxu3 %v3821_v43  ;;  %v4472_v43 = vld [vmem:[#allocation27_spill] sm:$0xff] }
 0x4f3   : > { %1999 = vmatpush.msra.mxu0 %v3825_v42  ;;  %2019 = vmatpush.msra.mxu1 %v3829_v11  ;;  %v4473_v42 = vld [vmem:[#allocation28_spill] sm:$0xff]  ;;  %v4474_v11 = vld [vmem:[#allocation29_spill] sm:$0xff] }
 0x4f4   : > { %2039 = vmatpush.msra.mxu2 %v3970_v25  ;;  %2059 = vmatpush.msra.mxu3 %v3834_v63  ;;  %v4475_v63 = vld [vmem:[#allocation31_spill] sm:$0xff] }
 0x4f5   : > { %2000 = vmatpush.msra.mxu0 %v3838_v44  ;;  %2020 = vmatpush.msra.mxu1 %v3842_v27  ;;  %v4476_v44 = vld [vmem:[#allocation32_spill] sm:$0xff]  ;;  %v4477_v27 = vld [vmem:[#allocation30_spill] sm:$0xff] }
 0x4f6   : > { %2040 = vmatpush.msra.mxu2 %v3977_v32  ;;  %2060 = vmatpush.msra.mxu3 %v3847_v26  ;;  %v4478_v26 = vld [vmem:[#allocation49_spill] sm:$0xff] }
 0x4f7   : > { %2001 = vmatpush.msra.mxu0 %v3851_v48  ;;  %2021 = vmatpush.msra.mxu1 %v3855_v30  ;;  %v4479_v48 = vld [vmem:[#allocation33_spill] sm:$0xff]  ;;  %v4480_v30 = vld [vmem:[#allocation34_spill] sm:$0xff] }
 0x4f8   : > { %2041 = vmatpush.msra.mxu2 %v3984_v31  ;;  %2061 = vmatpush.msra.mxu3 %v3860_v24  ;;  %v4481_v24 = vld [vmem:[#allocation35_spill] sm:$0xff]  ;;  %v1688_v31 = vld [vmem:[#allocation2 + $0xc0] sm:$0xff] }
 0x4f9   : > { %2002 = vmatpush.msra.mxu0 %v3864_v52  ;;  %2022 = vmatpush.msra.mxu1 %v3868_v6  ;;  %v4482_v52 = vld [vmem:[#allocation50_spill] sm:$0xff]  ;;  %v4483_v6 = vld [vmem:[#allocation36_spill] sm:$0xff] }
 0x4fa   : > { %2042 = vmatpush.msra.mxu2 %v3991_v16  ;;  %2062 = vmatpush.msra.mxu3 %v3873_v7  ;;  %v4484_v7 = vld [vmem:[#allocation37_spill] sm:$0xff] }
 0x4fb   : > { %2003 = vmatpush.msra.mxu0 %v3877_v56  ;;  %2023 = vmatpush.msra.mxu1 %v3881_v18  ;;  %v4485_v56 = vld [vmem:[#allocation38_spill] sm:$0xff] }
 0x4fc   : > { %2043 = vmatpush.msra.mxu2 %v3998_v28  ;;  %2063 = vmatpush.msra.mxu3 %v3886_v19  ;;  %v4486_v18 = vld [vmem:[#allocation54_spill] sm:$0xff]  ;;  %v4487_v19 = vld [vmem:[#allocation39_spill] sm:$0xff] }
 0x4fd   : > { %2004 = vmatpush.msra.mxu0 %v3890_v60  ;;  %2024 = vmatpush.msra.mxu1 %v3894_v15  ;;  %v4488_v60 = vld [vmem:[#allocation40_spill] sm:$0xff]  ;;  %v4489_v15 = vld [vmem:[#allocation41_spill] sm:$0xff] }
 0x4fe   : > { %2044 = vmatpush.msra.mxu2 %v4005_v1  ;;  %2064 = vmatpush.msra.mxu3 %v3899_v20  ;;  %v4490_v20 = vld [vmem:[#allocation55_spill] sm:$0xff] }
 0x4ff   : > { %2005 = vmatpush.msra.mxu0 %v3903_v2  ;;  %2025 = vmatpush.msra.mxu1 %v3907_v17  ;;  %v4491_v2 = vld [vmem:[#allocation42_spill] sm:$0xff]  ;;  %v4492_v17 = vld [vmem:[#allocation43_spill] sm:$0xff] }
 0x500   : > { %2045 = vmatpush.msra.mxu2 %v4012_v62  ;;  %2065 = vmatpush.msra.mxu3 %v3912_v22  ;;  %v1685_v22 = vld [vmem:[#allocation2 + $0xe0] sm:$0xff] }
 0x501   : > { %2006 = vmatpush.msra.mxu0 %v3916_v13  ;;  %2026 = vmatpush.msra.mxu1 %v3920_v9  ;;  %v1686_v13 = vld [vmem:[#allocation2 + $0x90] sm:$0xff] }
 0x502   : > { %2046 = vmatpush.msra.mxu2 %v4467_v3  ;;  %2066 = vmatpush.msra.mxu3 %v4468_v14 }
 0x503   : > { %2007 = vmatpush.msra.mxu0 %v4469_v4  ;;  %2027 = vmatpush.msra.mxu1 %v4470_v23 }
 0x504   : > { %2047 = vmatpush.msra.mxu2 %v4471_v40  ;;  %2067 = vmatpush.msra.mxu3 %v4472_v43 }
 0x505   : > { %2008 = vmatpush.msra.mxu0 %v4473_v42  ;;  %2028 = vmatpush.msra.mxu1 %v4474_v11 }
 0x506   : > { %2048 = vmatpush.msra.mxu2 %v4475_v63  ;;  %2068 = vmatpush.msra.mxu3 %v4476_v44 }
 0x507   : > { %2009 = vmatpush.msra.mxu0 %v4477_v27  ;;  %2029 = vmatpush.msra.mxu1 %v4478_v26 }
 0x508   : > { %2049 = vmatpush.msra.mxu2 %v4479_v48  ;;  %2069 = vmatpush.msra.mxu3 %v4480_v30 }
 0x509   : > { %2010 = vmatpush.msra.mxu0 %v4481_v24  ;;  %2030 = vmatpush.msra.mxu1 %v4482_v52 }
 0x50a   : > { %2050 = vmatpush.msra.mxu2 %v4483_v6  ;;  %2070 = vmatpush.msra.mxu3 %v4484_v7 }
 0x50b   : > { %2011 = vmatpush.msra.mxu0 %v4485_v56  ;;  %2031 = vmatpush.msra.mxu1 %v4486_v18 }
 0x50c   : > { %2051 = vmatpush.msra.mxu2 %v4487_v19  ;;  %2071 = vmatpush.msra.mxu3 %v4488_v60  ;;  %v1840_v19 = vld [vmem:[#allocation2 + $0xd0] sm:$0xff] }
 0x50d   : > { %2012 = vmatpush.msra.mxu0 %v4489_v15  ;;  %2032 = vmatpush.msra.mxu1 %v4490_v20 }
 0x50e   : > { %2052 = vmatpush.msra.mxu2 %v4491_v2  ;;  %2072 = vmatpush.msra.mxu3 %v4492_v17 }
 0x56a   : > { %v1706_v9 = vpop.f32.mrf.mxu0  ;;  %v1726_v51 = vpop.f32.mrf.mxu1 }
 0x56b   : > { %v1769_v10 = vadd.f32 %v1706_v9, %v1685_v22  ;;  %v1770_v58 = vadd.f32 %v1726_v51, %v1686_v13  ;;  %v1842_v13 = vld [vmem:[#allocation2 + $0x28] sm:$0xff] }
 0x56d   : > { %v2364_v25 = vmul.f32 -1.442695, %v1769_v10  ;;  %v2365_v32 = vmul.f32 -1.442695, %v1770_v58 }
 0x56f   : > { %2553 = vpow2.f32 %v2364_v25 }
 0x570   : > { %2555 = vpow2.f32 %v2365_v32 }
 0x571   : > { %v1766_v16 = vpop.f32.mrf.mxu3  ;;  %v1746_v35 = vpop.f32.mrf.mxu2 }
 0x572   : > { %v1772_v28 = vadd.f32 %v1766_v16, %v1688_v31  ;;  %v1771_v0 = vadd.f32 %v1746_v35, %v1687_v12  ;;  %v1841_v16 = vld [vmem:[#allocation2 + $0x10] sm:$0xff] }
 0x574   : > { %v2366_v1 = vmul.f32 -1.442695, %v1772_v28 }
 0x575   : > { %v2554_v62 = vpop.eup %2553 }
 0x576   : > { %v2556_v59 = vpop.eup %2555  ;;  %v1776_v8 = vadd.f32 1.0, %v2554_v62  ;;  %2557 = vpow2.f32 %v2366_v1 }
 0x577   : > { %v1795_v29 = vadd.f32 1.0, %v2556_v59 }
 0x578   : > { %2559 = vrcp.f32 %v1776_v8  ;;  %v1788_v46 = vand.u32 2147483648, %v1776_v8  ;;  %v1786_v45 = vand.u32 2147483647, %v1776_v8  ;;  %vm1782_vm10 = vweird.f32 %v1776_v8 }
 0x579   : > { %2561 = vrcp.f32 %v1795_v29  ;;  %v1807_v39 = vand.u32 2147483648, %v1795_v29  ;;  %v1805_v54 = vand.u32 2147483647, %v1795_v29  ;;  %vm1801_vm11 = vweird.f32 %v1795_v29 }
 0x57a   : > { %v1789_v41 = vor.u32 1.1754944e-38, %v1788_v46  ;;  %vm1787_vm14 = vcmp.eq.f32.partialorder %v1786_v45, 8.507059e+37 }
 0x57b   : > { %v1808_v14 = vor.u32 1.1754944e-38, %v1807_v39  ;;  %vm1806_vm15 = vcmp.eq.f32.partialorder %v1805_v54, 8.507059e+37 }
 0x57c   : > { %v2558_v53 = vpop.eup %2557 }
 0x57d   : > { %v1815_v34 = vadd.f32 1.0, %v2558_v53 }
 0x57e   : > { %v2560_v36 = vpop.eup %2559 }
 0x57f   : > { %v2562_v55 = vpop.eup %2561  ;;  %v1778_v47 = vmul.f32 %v2560_v36, %v1776_v8  ;;  %2563 = vrcp.f32 %v1815_v34  ;;  %vm1783_vm8 = vweird.f32 %v2560_v36  ;;  %v1827_v30 = vand.u32 2147483648, %v1815_v34 }
 0x580   : > { %v1797_v57 = vmul.f32 %v2562_v55, %v1795_v29  ;;  %2565 = vtanh.f32 %v1771_v0  ;;  %vm1802_vm9 = vweird.f32 %v2562_v55  ;;  %vm1784_vm12 = vmor %vm1782_vm10, %vm1783_vm8  ;;  %vm1821_vm1 = vweird.f32 %v1815_v34 }
 0x581   : > { %v1779_v50 = vsub.f32 1.0, %v1778_v47  ;;  %vm1803_vm13 = vmor %vm1801_vm11, %vm1802_vm9  ;;  %v1825_v24 = vand.u32 2147483647, %v1815_v34  ;;  %v1828_v6 = vor.u32 1.1754944e-38, %v1827_v30 }
 0x582   : > { %v1798_v61 = vsub.f32 1.0, %v1797_v57 }
 0x583   : > { %v1780_v37 = vmul.f32 %v2560_v36, %v1779_v50  ;;  %vm1826_vm3 = vcmp.eq.f32.partialorder %v1825_v24, 8.507059e+37  ;;  %v1994_v24 = vld [vmem:[#allocation2 + $0xf8] sm:$0xff] }
 0x584   : > { %v1799_v33 = vmul.f32 %v2562_v55, %v1798_v61 }
 0x585   : > { %v2564_v5 = vpop.eup %2563  ;;  %v1781_v49 = vadd.f32 %v2560_v36, %v1780_v37 }
 0x586   : > { %v1800_v21 = vadd.f32 %v2562_v55, %v1799_v33  ;;  %v1817_v3 = vmul.f32 %v2564_v5, %v1815_v34  ;;  %v2566_v23 = vpop.eup %2565  ;;  %vm1822_vm0 = vweird.f32 %v2564_v5 }
 0x587   : > { %v1785_v4 = vsel %vm1784_vm12, %v2560_v36, %v1781_v49  ;;  %vm1823_vm2 = vmor %vm1821_vm1, %vm1822_vm0 }
 0x588   : > { %v1790_v40 = vsel %vm1787_vm14, %v1789_v41, %v1785_v4  ;;  %v1804_v43 = vsel %vm1803_vm13, %v2562_v55, %v1800_v21  ;;  %v1818_v42 = vsub.f32 1.0, %v1817_v3 }
 0x589   : > { %v1809_v11 = vsel %vm1806_vm15, %v1808_v14, %v1804_v43  ;;  %v1832_v63 = vmul.f32 %v2566_v23, %v1790_v40 }
 0x58a   : > { %v1831_v44 = vmul.f32 %v1809_v11, %v4123_v38  ;;  %v1819_v27 = vmul.f32 %v2564_v5, %v1818_v42  ;;  %v1839_v38 = vld [vmem:[#allocation2 + $0xa8] sm:$0xff] }
 0x58c   : > { %v4191_v26 = vadd.f32 %v1832_v63, %v1831_v44  ;;  %v1820_v48 = vadd.f32 %v2564_v5, %v1819_v27 }
 0x58e   : > { %2567 = vtanh.f32 %v4191_v26  ;;  %v1824_v52 = vsel %vm1823_vm2, %v2564_v5, %v1820_v48 }
 0x58f   : > { %v1829_v56 = vsel %vm1826_vm3, %v1828_v6, %v1824_v52 }
 0x594   : > { %v2568_v7 = vpop.eup %2567 }
 0x595   : > { %v1835_v18 = vmul.f32 %v2568_v7, %v1829_v56 }
 0x597   : > { %1837 = vst [vmem:[#allocation3 + $0x30] sm:$0xff] %v1835_v18  ;;  %1859 = vmatmul.f32.vlgmr.msrb.gmra.mxu0 %v1835_v18  ;;  %1879 = vmatmul.f32.vlgmr.msrb.gmra.mxu1 %v1835_v18 }
 0x598   : > { %1899 = vmatmul.f32.vlgmr.msrb.gmra.mxu2 %v1835_v18  ;;  %1919 = vmatmul.f32.vlgmr.msrb.gmra.mxu3 %v1835_v18 }
 0x614   : > { %v1860_v60 = vpop.f32.mrf.mxu0  ;;  %v1880_v15 = vpop.f32.mrf.mxu1 }
 0x615   : > { %v1923_v20 = vadd.f32 %v1860_v60, %v1839_v38  ;;  %v1924_v2 = vadd.f32 %v1880_v15, %v1840_v19  ;;  %v1996_v19 = vld [vmem:[#allocation2 + $0x98] sm:$0xff] }
 0x617   : > { %v2367_v17 = vmul.f32 -1.442695, %v1923_v20  ;;  %v2368_v22 = vmul.f32 -1.442695, %v1924_v2 }
 0x619   : > { %2569 = vpow2.f32 %v2367_v17 }
 0x61a   : > { %2571 = vpow2.f32 %v2368_v22 }
 0x61b   : > { %v1920_v9 = vpop.f32.mrf.mxu3  ;;  %v1900_v28 = vpop.f32.mrf.mxu2 }
 0x61c   : > { %v1926_v51 = vadd.f32 %v1920_v9, %v1842_v13  ;;  %v1925_v8 = vadd.f32 %v1900_v28, %v1841_v16  ;;  %v1995_v9 = vld [vmem:[#allocation2 + $0x20] sm:$0xff] }
 0x61e   : > { %v2369_v10 = vmul.f32 -1.442695, %v1926_v51 }
 0x61f   : > { %v2570_v58 = vpop.eup %2569 }
 0x620   : > { %v2572_v25 = vpop.eup %2571  ;;  %v1930_v32 = vadd.f32 1.0, %v2570_v58  ;;  %2573 = vpow2.f32 %v2369_v10 }
 0x621   : > { %v1949_v31 = vadd.f32 1.0, %v2572_v25 }
 0x622   : > { %2575 = vrcp.f32 %v1930_v32  ;;  %v1942_v36 = vand.u32 2147483648, %v1930_v32  ;;  %v1940_v47 = vand.u32 2147483647, %v1930_v32  ;;  %vm1936_vm6 = vweird.f32 %v1930_v32 }
 0x623   : > { %2577 = vrcp.f32 %v1949_v31  ;;  %v1961_v0 = vand.u32 2147483648, %v1949_v31  ;;  %v1959_v50 = vand.u32 2147483647, %v1949_v31  ;;  %vm1955_vm7 = vweird.f32 %v1949_v31 }
 0x624   : > { %v1943_v39 = vor.u32 1.1754944e-38, %v1942_v36  ;;  %vm1941_vm10 = vcmp.eq.f32.partialorder %v1940_v47, 8.507059e+37 }
 0x625   : > { %v1962_v33 = vor.u32 1.1754944e-38, %v1961_v0  ;;  %vm1960_vm11 = vcmp.eq.f32.partialorder %v1959_v50, 8.507059e+37 }
 0x626   : > { %v2574_v1 = vpop.eup %2573 }
 0x627   : > { %v1969_v62 = vadd.f32 1.0, %v2574_v1 }
 0x628   : > { %v2576_v59 = vpop.eup %2575 }
 0x629   : > { %v2578_v29 = vpop.eup %2577  ;;  %v1932_v12 = vmul.f32 %v2576_v59, %v1930_v32  ;;  %2579 = vrcp.f32 %v1969_v62  ;;  %vm1937_vm4 = vweird.f32 %v2576_v59  ;;  %v1981_v42 = vand.u32 2147483648, %v1969_v62 }
 0x62a   : > { %v1951_v35 = vmul.f32 %v2578_v29, %v1949_v31  ;;  %2581 = vtanh.f32 %v1925_v8  ;;  %vm1956_vm5 = vweird.f32 %v2578_v29  ;;  %vm1938_vm8 = vmor %vm1936_vm6, %vm1937_vm4  ;;  %vm1975_vm13 = vweird.f32 %v1969_v62 }
 0x62b   : > { %v1933_v53 = vsub.f32 1.0, %v1932_v12  ;;  %vm1957_vm9 = vmor %vm1955_vm7, %vm1956_vm5  ;;  %v1979_v11 = vand.u32 2147483647, %v1969_v62  ;;  %v1982_v44 = vor.u32 1.1754944e-38, %v1981_v42 }
 0x62c   : > { %v1952_v34 = vsub.f32 1.0, %v1951_v35 }
 0x62d   : > { %v1934_v55 = vmul.f32 %v2576_v59, %v1933_v53  ;;  %vm1980_vm15 = vcmp.eq.f32.partialorder %v1979_v11, 8.507059e+37 }
 0x62e   : > { %v1953_v57 = vmul.f32 %v2578_v29, %v1952_v34 }
 0x62f   : > { %v2580_v61 = vpop.eup %2579  ;;  %v1935_v46 = vadd.f32 %v2576_v59, %v1934_v55 }
 0x630   : > { %v1954_v37 = vadd.f32 %v2578_v29, %v1953_v57  ;;  %v1971_v45 = vmul.f32 %v2580_v61, %v1969_v62  ;;  %v2582_v5 = vpop.eup %2581  ;;  %vm1976_vm12 = vweird.f32 %v2580_v61 }
 0x631   : > { %v1939_v54 = vsel %vm1938_vm8, %v2576_v59, %v1935_v46  ;;  %vm1977_vm14 = vmor %vm1975_vm13, %vm1976_vm12 }
 0x632   : > { %v1944_v49 = vsel %vm1941_vm10, %v1943_v39, %v1939_v54  ;;  %v1958_v41 = vsel %vm1957_vm9, %v2578_v29, %v1954_v37  ;;  %v1972_v21 = vsub.f32 1.0, %v1971_v45 }
 0x633   : > { %v1963_v3 = vsel %vm1960_vm11, %v1962_v33, %v1958_v41  ;;  %v1986_v14 = vmul.f32 %v2582_v5, %v1944_v49 }
 0x634   : > { %v1985_v4 = vmul.f32 %v1963_v3, %v4191_v26  ;;  %v1973_v23 = vmul.f32 %v2580_v61, %v1972_v21  ;;  %v1993_v26 = vld [vmem:[#allocation2 + $0xa0] sm:$0xff] }
 0x636   : > { %v4195_v40 = vadd.f32 %v1986_v14, %v1985_v4  ;;  %v1974_v43 = vadd.f32 %v2580_v61, %v1973_v23 }
 0x638   : > { %2583 = vtanh.f32 %v4195_v40  ;;  %v1978_v63 = vsel %vm1977_vm14, %v2580_v61, %v1974_v43 }
 0x639   : > { %v1983_v48 = vsel %vm1980_vm15, %v1982_v44, %v1978_v63 }
 0x63e   : > { %v2584_v27 = vpop.eup %2583 }
 0x63f   : > { %v1989_v30 = vmul.f32 %v2584_v27, %v1983_v48 }
 0x641   : > { %1991 = vst [vmem:[#allocation3 + $0x18] sm:$0xff] %v1989_v30  ;;  %2013 = vmatmul.f32.vlgmr.msra.gmra.mxu0 %v1989_v30  ;;  %2033 = vmatmul.f32.vlgmr.msra.gmra.mxu1 %v1989_v30 }
 0x642   : > { %2053 = vmatmul.f32.vlgmr.msra.gmra.mxu2 %v1989_v30  ;;  %2073 = vmatmul.f32.vlgmr.msra.gmra.mxu3 %v1989_v30 }
 0x6be   : > { %v2014_v52 = vpop.f32.mrf.mxu0  ;;  %v2034_v6 = vpop.f32.mrf.mxu1 }
 0x6bf   : > { %v2077_v7 = vadd.f32 %v2014_v52, %v1993_v26  ;;  %v2078_v56 = vadd.f32 %v2034_v6, %v1994_v24 }
 0x6c1   : > { %v2370_v18 = vmul.f32 -1.442695, %v2077_v7  ;;  %v2371_v38 = vmul.f32 -1.442695, %v2078_v56 }
 0x6c3   : > { %2585 = vpow2.f32 %v2370_v18 }
 0x6c4   : > { %2587 = vpow2.f32 %v2371_v38 }
 0x6c5   : > { %v2074_v60 = vpop.f32.mrf.mxu3  ;;  %v2054_v51 = vpop.f32.mrf.mxu2 }
 0x6c6   : > { %v2080_v15 = vadd.f32 %v2074_v60, %v1996_v19  ;;  %v2079_v32 = vadd.f32 %v2054_v51, %v1995_v9 }
 0x6c8   : > { %v2372_v20 = vmul.f32 -1.442695, %v2080_v15 }
 0x6c9   : > { %v2586_v2 = vpop.eup %2585 }
 0x6ca   : > { %v2588_v17 = vpop.eup %2587  ;;  %v2084_v22 = vadd.f32 1.0, %v2586_v2  ;;  %2589 = vpow2.f32 %v2372_v20 }
 0x6cb   : > { %v2103_v13 = vadd.f32 1.0, %v2588_v17 }
 0x6cc   : > { %2591 = vrcp.f32 %v2084_v22  ;;  %v2096_v59 = vand.u32 2147483648, %v2084_v22  ;;  %v2094_v12 = vand.u32 2147483647, %v2084_v22  ;;  %vm2090_vm2 = vweird.f32 %v2084_v22 }
 0x6cd   : > { %2593 = vrcp.f32 %v2103_v13  ;;  %v2115_v8 = vand.u32 2147483648, %v2103_v13  ;;  %v2113_v53 = vand.u32 2147483647, %v2103_v13  ;;  %vm2109_vm3 = vweird.f32 %v2103_v13 }
 0x6ce   : > { %v2097_v0 = vor.u32 1.1754944e-38, %v2096_v59  ;;  %vm2095_vm6 = vcmp.eq.f32.partialorder %v2094_v12, 8.507059e+37 }
 0x6cf   : > { %v2116_v57 = vor.u32 1.1754944e-38, %v2115_v8  ;;  %vm2114_vm7 = vcmp.eq.f32.partialorder %v2113_v53, 8.507059e+37 }
 0x6d0   : > { %v2590_v10 = vpop.eup %2589 }
 0x6d1   : > { %v2123_v58 = vadd.f32 1.0, %v2590_v10 }
 0x6d2   : > { %v2592_v25 = vpop.eup %2591 }
 0x6d3   : > { %v2594_v31 = vpop.eup %2593  ;;  %v2086_v16 = vmul.f32 %v2592_v25, %v2084_v22  ;;  %2595 = vrcp.f32 %v2123_v58  ;;  %vm2091_vm0 = vweird.f32 %v2592_v25  ;;  %v2135_v21 = vand.u32 2147483648, %v2123_v58 }
 0x6d4   : > { %v2105_v28 = vmul.f32 %v2594_v31, %v2103_v13  ;;  %2597 = vtanh.f32 %v2079_v32  ;;  %vm2110_vm1 = vweird.f32 %v2594_v31  ;;  %vm2092_vm4 = vmor %vm2090_vm2, %vm2091_vm0  ;;  %vm2129_vm9 = vweird.f32 %v2123_v58 }
 0x6d5   : > { %v2087_v1 = vsub.f32 1.0, %v2086_v16  ;;  %vm2111_vm5 = vmor %vm2109_vm3, %vm2110_vm1  ;;  %v2133_v3 = vand.u32 2147483647, %v2123_v58  ;;  %v2136_v4 = vor.u32 1.1754944e-38, %v2135_v21 }
 0x6d6   : > { %v2106_v62 = vsub.f32 1.0, %v2105_v28 }
 0x6d7   : > { %v2088_v29 = vmul.f32 %v2592_v25, %v2087_v1  ;;  %vm2134_vm11 = vcmp.eq.f32.partialorder %v2133_v3, 8.507059e+37 }
 0x6d8   : > { %v2107_v35 = vmul.f32 %v2594_v31, %v2106_v62 }
 0x6d9   : > { %v2596_v34 = vpop.eup %2595  ;;  %v2089_v36 = vadd.f32 %v2592_v25, %v2088_v29 }
 0x6da   : > { %v2108_v55 = vadd.f32 %v2594_v31, %v2107_v35  ;;  %v2125_v47 = vmul.f32 %v2596_v34, %v2123_v58  ;;  %v2598_v61 = vpop.eup %2597  ;;  %vm2130_vm8 = vweird.f32 %v2596_v34 }
 0x6db   : > { %v2093_v50 = vsel %vm2092_vm4, %v2592_v25, %v2089_v36  ;;  %vm2131_vm10 = vmor %vm2129_vm9, %vm2130_vm8 }
 0x6dc   : > { %v2098_v46 = vsel %vm2095_vm6, %v2097_v0, %v2093_v50  ;;  %v2112_v39 = vsel %vm2111_vm5, %v2594_v31, %v2108_v55  ;;  %v2126_v37 = vsub.f32 1.0, %v2125_v47 }
 0x6dd   : > { %v2117_v45 = vsel %vm2114_vm7, %v2116_v57, %v2112_v39  ;;  %v2140_v33 = vmul.f32 %v2598_v61, %v2098_v46 }
 0x6de   : > { %v2139_v54 = vmul.f32 %v2117_v45, %v4195_v40  ;;  %v2127_v5 = vmul.f32 %v2596_v34, %v2126_v37 }
 0x6e0   : > { %v2141_v49 = vadd.f32 %v2140_v33, %v2139_v54  ;;  %v2128_v41 = vadd.f32 %v2596_v34, %v2127_v5 }
 0x6e2   : > { %2599 = vtanh.f32 %v2141_v49  ;;  %v2132_v14 = vsel %vm2131_vm10, %v2596_v34, %v2128_v41 }
 0x6e3   : > { %v2137_v43 = vsel %vm2134_vm11, %v2136_v4, %v2132_v14 }
 0x6e7   : > { %2149 = sbr.rel (%p2373_p3) target bundleno = 1933 (0x78d), region = 76 }
 0x6e8   : > { %v2600_v23 = vpop.eup %2599 }
 0x6e9   : > { %v2143_v42 = vmul.f32 %v2600_v23, %v2137_v43 }
 0x6eb   : > { %2145 = vst [vmem:[#allocation3 + $0x20] sm:$0xff] %v2143_v42 }
 0x6ec   : > { %v2165_v40 = vld [vmem:[#allocation12 + $0x78] sm:$0xff]  ;;  %v2164_v11 = vld [vmem:[#allocation12 + $0x70] sm:$0xff]  ;;  %v2163_v63 = vld [vmem:[#allocation12 + $0x68] sm:$0xff] }
 0x6ed   : > { %2170 = vmatpush.msra.mxu0 %v2165_v40  ;;  %v2162_v44 = vld [vmem:[#allocation12 + $0x60] sm:$0xff]  ;;  %v2161_v27 = vld [vmem:[#allocation12 + $0x58] sm:$0xff]  ;;  %v2160_v48 = vld [vmem:[#allocation12 + $0x50] sm:$0xff] }
 0x6ee   : > { %v2159_v30 = vld [vmem:[#allocation12 + $0x48] sm:$0xff]  ;;  %v2158_v26 = vld [vmem:[#allocation12 + $0x40] sm:$0xff]  ;;  %v2157_v24 = vld [vmem:[#allocation12 + $0x38] sm:$0xff] }
 0x6ef   : > { %2171 = vmatpush.msra.mxu0 %v2164_v11  ;;  %v2156_v52 = vld [vmem:[#allocation12 + $0x30] sm:$0xff]  ;;  %v2155_v6 = vld [vmem:[#allocation12 + $0x28] sm:$0xff]  ;;  %v2154_v7 = vld [vmem:[#allocation12 + $0x20] sm:$0xff] }
 0x6f0   : > { %v2153_v56 = vld [vmem:[#allocation12 + $0x18] sm:$0xff]  ;;  %v2152_v18 = vld [vmem:[#allocation12 + $0x10] sm:$0xff]  ;;  %v2151_v38 = vld [vmem:[#allocation12 + $0x8] sm:$0xff] }
 0x6f1   : > { %2172 = vmatpush.msra.mxu0 %v2163_v63  ;;  %v2150_v19 = vld [vmem:[#allocation12] sm:$0xff]  ;;  %v2665_v60 = vld [vmem:[%s4493_s15] ss:$0 sm:$0xff] }
 0x6f3   : > { %2173 = vmatpush.msra.mxu0 %v2162_v44 }
 0x6f5   : > { %2174 = vmatpush.msra.mxu0 %v2161_v27 }
 0x6f7   : > { %2175 = vmatpush.msra.mxu0 %v2160_v48 }
 0x6f9   : > { %2176 = vmatpush.msra.mxu0 %v2159_v30 }
 0x6fb   : > { %2177 = vmatpush.msra.mxu0 %v2158_v26 }
 0x6fd   : > { %2178 = vmatpush.msra.mxu0 %v2157_v24 }
 0x6ff   : > { %2179 = vmatpush.msra.mxu0 %v2156_v52 }
 0x701   : > { %2180 = vmatpush.msra.mxu0 %v2155_v6 }
 0x703   : > { %2181 = vmatpush.msra.mxu0 %v2154_v7 }
 0x705   : > { %2182 = vmatpush.msra.mxu0 %v2153_v56 }
 0x707   : > { %2183 = vmatpush.msra.mxu0 %v2152_v18 }
 0x709   : > { %2184 = vmatpush.msra.mxu0 %v2151_v38 }
 0x70b   : > { %2185 = vmatpush.msra.mxu0 %v2150_v19 }
 0x70c   : > { %2186 = vmatmul.f32.vlgmr.msra.gmra.mxu0 %v2143_v42 }
 0x789   : > { %v2187_v15 = vpop.f32.mrf.mxu0 }
 0x78a   : > { %v2188_v20 = vadd.f32 %v2665_v60, %v2187_v15 }
 0x78c   : > { %2190 = vst [vmem:[#allocation13] sm:$0xff] %v2188_v20 }
 0x78d PF: > { %p2420_p4 = scmp.eq.s32.totalorder %s2983_s27, 1  ;;  %s4494_s13 = sld [smem:[#allocation63_spill]] }
 0x78e   : > { %s2918_s7 = smov [#allocation13]  }
 0x78f   : > { %s2199_s20 = sshll.u32 %s2918_s7, 4  ;;  %s2200_s20 = int_to_ptr.vmem [resolvable:$true] %s2199_s20 }
 0x793   : > { %s2201_s10 = sshll.u32 %s4494_s13, 4  ;;  %s2202_s10 = int_to_ptr.hbm [resolvable:$true] %s2201_s10 }
 0x794   : > { %2395 = dma.vmem_to_hbm [thread:$0]  (%p2420_p4), %s2200_s20, 128, %s2202_s10, [#allocation6]  }
 0x795   : > { %2885 = dma.done.wait (%p2420_p4), [#allocation6], 128  }
 0x796   : > { %2887 = vsyncadd (%p2420_p4), [#allocation6], 4294967168 }
 0x797 PF: > { %s24_s26 = sadd.s32 1, %s2910_s26   ;;  %s4495_s30 = sld [smem:[#allocation19_spill]] }
 0x798   : > { %p21_p5 = scmp.ge.s32.totalorder %s24_s26, 4   ;;  %s4496_s23 = sld [smem:[#allocation21_spill]] }
 0x799   : > { %s4497_s27 = sld [smem:[#allocation20_spill]]  ;;  %s4498_s21 = smov %s2894_s22 }
 0x79a   : > { %s4500_s24 = smov %s2906_s25 }
 0x79b   :  { %23 = sbr.rel (!%p21_p5) target bundleno = 14 (0xe), region = 142 }
 0x79d   : > { %s4499_s22 = smov %s4495_s30 }
 0x79f   : > { %s4501_s25 = smov %s4497_s27 }
 0x7a0   :  { %2215 = vsyncpa [#allocation5], 1 }
 0x7a1   :  { %2217 = vsyncpa [#allocation5 + $0x1], 1 }
 0x7a2   :  { %2218 = vsyncpa [#allocation8], 1 }
 0x7a3   :  { %2220 = vsyncpa [#allocation8 + $0x1], 1 }
 0x7a4   :  { %2221 = vsyncpa [#allocation11], 1 }
 0x7a5   :  { %2223 = vsyncpa [#allocation11 + $0x1], 1 }
 0x7a6   :  { %2224 = vsyncpa [#allocation6], 1 }
 0x7a7   :  { %2226 = vsyncpa [#allocation6 + $0x1], 1 }

</bundles_post_ra>
